<compile_context>
chip_gen: v6e
topology: v6e:2x2x1
jax: 0.10.0
libtpu: 0.0.40
codegen_flags: <defaults>
</compile_context>

<pallas_src>
import functools

import jax
import jax.numpy as jnp
from jax.experimental import pallas as pl
from jax.experimental.pallas import tpu as pltpu

# Default coefficients from InferLoss_4p_string.read_cfg(None)
K_CE = 1.0
K_L1 = 5.0
K_GIOU = 2.0
K_L11 = 5.0
K_GIOU1 = 2.0
K_STRING = 10.0
VOID_CLASS_IDX = 0
VOID_CLASS_WEIGHT = 0.1


# ----------------------------- box helpers (traced inside the kernel) -----------------------------
def _giou_pairwise(p, t):
    # torchvision.ops.generalized_box_iou semantics (elementwise via broadcasting, no eps)
    px1, py1, px2, py2 = p
    tx1, ty1, tx2, ty2 = t
    area_p = (px2 - px1) * (py2 - py1)
    area_t = (tx2 - tx1) * (ty2 - ty1)
    ix1, iy1 = jnp.maximum(px1, tx1), jnp.maximum(py1, ty1)
    ix2, iy2 = jnp.minimum(px2, tx2), jnp.minimum(py2, ty2)
    inter = jnp.maximum(ix2 - ix1, 0.0) * jnp.maximum(iy2 - iy1, 0.0)
    union = area_p + area_t - inter
    iou = inter / union
    cx1, cy1 = jnp.minimum(px1, tx1), jnp.minimum(py1, ty1)
    cx2, cy2 = jnp.maximum(px2, tx2), jnp.maximum(py2, ty2)
    area_c = jnp.maximum(cx2 - cx1, 0.0) * jnp.maximum(cy2 - cy1, 0.0)
    return iou - (area_c - union) / area_c


def _giou_loss(p, t, eps=1e-7):
    # torchvision.ops.generalized_box_iou_loss semantics: 1 - GIoU (eps-stabilized)
    px1, py1, px2, py2 = p
    tx1, ty1, tx2, ty2 = t
    ix1, iy1 = jnp.maximum(px1, tx1), jnp.maximum(py1, ty1)
    ix2, iy2 = jnp.minimum(px2, tx2), jnp.minimum(py2, ty2)
    overlap = jnp.logical_and(ix2 > ix1, iy2 > iy1)
    inter = jnp.where(overlap, (ix2 - ix1) * (iy2 - iy1), 0.0)
    union = (px2 - px1) * (py2 - py1) + (tx2 - tx1) * (ty2 - ty1) - inter
    iou = inter / (union + eps)
    cx1, cy1 = jnp.minimum(px1, tx1), jnp.minimum(py1, ty1)
    cx2, cy2 = jnp.maximum(px2, tx2), jnp.maximum(py2, ty2)
    area_c = (cx2 - cx1) * (cy2 - cy1)
    giou = iou - (area_c - union) / (area_c + eps)
    return 1.0 - giou


# ----------------------------- fused matcher + loss kernel -----------------------------
def _fused_kernel(logits_ref, boxes_ref, string_ref, labels_ref,
                  tbox_ref, lps_ref, pool_ref, charpos_ref, out_ref, *, two_class):
    # Per grid step (Bt batch rows):
    #   logits_ref  (Bt, N, C)       boxes_ref  (Bt, N, 8)      string_ref  (Bt, Cs, N*L)
    #   labels_ref  (Bt, 1) i32      tbox_ref   (Bt, 8) f32     lps_ref     (Bt, L) i32
    #   pool_ref    (N*L, N) f32     charpos_ref (1, N*L) i32   (both constant across steps)
    #   out_ref     (Bt, 8) packed:
    #       [ce_num, ce_den, l1_sum, giou_loss, l11_sum, giou1_loss, str_nll_sum, 0]
    Bt, N, C = logits_ref.shape
    Cs, NL = string_ref.shape[1], string_ref.shape[2]
    L = lps_ref.shape[1]
    f32 = jnp.float32

    lab = labels_ref[...]                                   # (Bt, 1) i32
    tb = tbox_ref[...]                                      # (Bt, 8) f32: xyxy ‖ xyxy

    # --- class: matching cost (pieces reused by the CE loss below) ---
    logits = logits_ref[...].astype(f32)                    # (Bt, N, C)
    if two_class:
        # closed-form 2-class math on lane-dense (Bt, N): no lane reductions, no one-hot over C
        z0 = logits[..., 0]                                 # (Bt, N)
        z1 = logits[..., 1]
        d = z1 - z0                                         # logit(class1) - logit(class0)
        d_lab = jnp.where(lab == 1, d, -d)                  # logit(target) - logit(other)
        cost_class = -1.0 / (1.0 + jnp.exp(-d_lab))         # = -softmax(logits)[target]
        logp_cls = None
    else:
        m = jnp.max(logits, axis=-1, keepdims=True)
        e = jnp.exp(logits - m)
        sum_e = jnp.sum(e, axis=-1, keepdims=True)
        prob = e / sum_e
        logp_cls = (logits - m) - jnp.log(sum_e)
        c_iota3 = jax.lax.broadcasted_iota(jnp.int32, (Bt, 1, C), 2)
        onehot_lab = (c_iota3 == lab[:, :, None]).astype(f32)
        cost_class = -jnp.sum(prob * onehot_lab, axis=-1)   # (Bt, N)

    # --- bbox matching costs, all lane-dense (Bt, N) per coordinate ---
    pb = boxes_ref[...].astype(f32)                         # (Bt, N, 8)
    pcx0, pcy0, pw0, ph0 = pb[..., 0], pb[..., 1], pb[..., 2], pb[..., 3]   # (Bt, N)
    pcx1, pcy1, pw1, ph1 = pb[..., 4], pb[..., 5], pb[..., 6], pb[..., 7]
    tx1a, ty1a, tx2a, ty2a = tb[:, 0:1], tb[:, 1:2], tb[:, 2:3], tb[:, 3:4]  # (Bt, 1)
    tx1b, ty1b, tx2b, ty2b = tb[:, 4:5], tb[:, 5:6], tb[:, 6:7], tb[:, 7:8]

    # torch.cdist(p=1) between raw cxcywh predictions and xyxy targets (faithful to the matcher)
    cost_bbox = (jnp.abs(pcx0 - tx1a) + jnp.abs(pcy0 - ty1a)
                 + jnp.abs(pw0 - tx2a) + jnp.abs(ph0 - ty2a))
    cost_bbox1 = (jnp.abs(pcx1 - tx1b) + jnp.abs(pcy1 - ty1b)
                  + jnp.abs(pw1 - tx2b) + jnp.abs(ph1 - ty2b))

    # cxcywh -> xyxy for the predictions (used by both the GIoU cost and the matched GIoU loss)
    px1a, py1a = pcx0 - 0.5 * pw0, pcy0 - 0.5 * ph0
    px2a, py2a = pcx0 + 0.5 * pw0, pcy0 + 0.5 * ph0
    px1b, py1b = pcx1 - 0.5 * pw1, pcy1 - 0.5 * ph1
    px2b, py2b = pcx1 + 0.5 * pw1, pcy1 + 0.5 * ph1
    t0 = (tx1a, ty1a, tx2a, ty2a)
    t1 = (tx1b, ty1b, tx2b, ty2b)
    cost_giou = -_giou_pairwise((px1a, py1a, px2a, py2a), t0)    # (Bt, N)
    cost_giou1 = -_giou_pairwise((px1b, py1b, px2b, py2b), t1)

    # --- string per-(query,char) NLL on the lane-dense flattened (N*L) axis, computed once ---
    s = string_ref[...].astype(f32)                         # (Bt, Cs, N*L)
    sm = jnp.max(s, axis=1, keepdims=True)
    slse = jnp.log(jnp.sum(jnp.exp(s - sm), axis=1, keepdims=True)) + sm
    slogp = s - slse                                        # log-softmax over the char classes

    # per-lane target char id, rebuilt from the compact (Bt, L) LP string (no HBM-side N-repeat)
    lps = lps_ref[...]                                      # (Bt, L) i32
    cpos = charpos_ref[...]                                 # (1, N*L) i32, lane -> char position
    lps_rep = jnp.where(cpos == 0, lps[:, 0:1], 0)          # (Bt, N*L) i32
    for l in range(1, L):                                   # L is small & static; unrolled
        lps_rep = lps_rep + jnp.where(cpos == l, lps[:, l:l + 1], 0)

    cs_iota = jax.lax.broadcasted_iota(jnp.int32, (Bt, Cs, NL), 1)
    onehot_lp = (cs_iota == lps_rep[:, None, :]).astype(f32)
    nll_flat = -jnp.sum(slogp * onehot_lp, axis=1)          # (Bt, N*L)

    # per-query mean over L: one small MXU matmul against the hoisted constant pooling matrix
    cost_string = jnp.dot(nll_flat, pool_ref[...],
                          precision=jax.lax.Precision.HIGHEST,
                          preferred_element_type=jnp.float32) * (1.0 / L)   # (Bt, N)

    # --- matcher: total cost and argmin over queries (ties -> lowest index) ---
    cost = (K_CE * cost_class + K_L1 * cost_bbox + K_GIOU * cost_giou
            + K_L11 * cost_bbox1 + K_GIOU1 * cost_giou1 + K_STRING * cost_string)   # (Bt, N)
    # degenerate (zero-area) boxes can make the GIoU cost NaN; treat those lanes as +inf so
    # a valid query is always selected instead of silently matching nothing
    cost = jnp.where(jnp.isnan(cost), jnp.inf, cost)
    cmin = jnp.min(cost, axis=-1, keepdims=True)            # (Bt, 1)
    n_iota = jax.lax.broadcasted_iota(jnp.int32, (Bt, N), 1)
    idx = jnp.min(jnp.where(cost == cmin, n_iota, N), axis=-1, keepdims=True)   # (Bt, 1)
    sel_i = n_iota == idx                                   # (Bt, N) one-hot bool
    sel = sel_i.astype(f32)

    # --- weighted class CE over all N query slots (void class on unmatched slots) ---
    tgt_cls = jnp.where(sel_i, lab, 0)                      # (Bt, N) i32
    if two_class:
        d_tgt = jnp.where(tgt_cls == 1, d, -d)              # logit(target) - logit(other)
        # CE = softplus(-(z_tgt - z_other)), numerically stable form
        nll_cls = jnp.maximum(-d_tgt, 0.0) + jnp.log(1.0 + jnp.exp(-jnp.abs(d_tgt)))
    else:
        c_iota2 = jax.lax.broadcasted_iota(jnp.int32, (Bt, N, C), 2)
        onehot_t = (c_iota2 == tgt_cls[:, :, None]).astype(f32)
        nll_cls = -jnp.sum(logp_cls * onehot_t, axis=-1)    # (Bt, N)
    w = jnp.where(tgt_cls == VOID_CLASS_IDX, VOID_CLASS_WEIGHT, 1.0).astype(f32)
    ce_num = jnp.sum(w * nll_cls, axis=-1, keepdims=True)   # (Bt, 1)
    ce_den = jnp.sum(w, axis=-1, keepdims=True)             # (Bt, 1)

    # --- matched box losses (one-hot select of the matched query; exact since weights are 0/1) ---
    def pick(x):                                            # (Bt, N) -> (Bt, 1) matched value
        return jnp.sum(x * sel, axis=-1, keepdims=True)

    m0 = (pick(px1a), pick(py1a), pick(px2a), pick(py2a))   # matched box 0, xyxy
    m1 = (pick(px1b), pick(py1b), pick(px2b), pick(py2b))   # matched box 1, xyxy
    l1_sum = (jnp.abs(m0[0] - tx1a) + jnp.abs(m0[1] - ty1a)
              + jnp.abs(m0[2] - tx2a) + jnp.abs(m0[3] - ty2a))       # (Bt, 1)
    l11_sum = (jnp.abs(m1[0] - tx1b) + jnp.abs(m1[1] - ty1b)
               + jnp.abs(m1[2] - tx2b) + jnp.abs(m1[3] - ty2b))
    giou_l = _giou_loss(m0, t0)                             # (Bt, 1): 1 - GIoU
    giou1_l = _giou_loss(m1, t1)

    # --- string CE on the matched query: sum over L == L * matched per-query mean ---
    str_sum = float(L) * jnp.sum(cost_string * sel, axis=-1, keepdims=True)   # (Bt, 1)

    # --- single packed store: lane index selects the partial ---
    col = jax.lax.broadcasted_iota(jnp.int32, (1, 8), 1)
    out_ref[...] = (ce_num * (col == 0).astype(f32)
                    + ce_den * (col == 1).astype(f32)
                    + l1_sum * (col == 2).astype(f32)
                    + giou_l * (col == 3).astype(f32)
                    + l11_sum * (col == 4).astype(f32)
                    + giou1_l * (col == 5).astype(f32)
                    + str_sum * (col == 6).astype(f32))     # (Bt, 8)


# ----------------------------- tiling / VMEM planning -----------------------------
def _padded_tile_bytes(shape, itemsize):
    """Bytes of one VMEM block with the last two dims rounded up to (8, 128) tiles."""
    dims = list(shape)
    if len(dims) == 1:
        dims = [1] + dims
    dims[-1] = -(-dims[-1] // 128) * 128
    dims[-2] = -(-dims[-2] // 8) * 8
    n = itemsize
    for d in dims:
        n *= d
    return n


def _plan_tiling(B, N, C, Cs, L, itemsizes):
    """Pick Bt (batch rows per grid step) with a padding- and double-buffer-aware VMEM model.

    Prefers >=2 grid steps so the 'parallel' batch axis can be split across v7x's two
    TensorCores; 2-D output/labels/tbox/LPs blocks require Bt % 8 == 0 (or Bt == B)."""
    NL = N * L
    logits_isz, boxes_isz, string_isz = itemsizes

    def block_bytes(bt):
        return (_padded_tile_bytes((bt, N, C), logits_isz)
                + _padded_tile_bytes((bt, N, 8), boxes_isz)
                + _padded_tile_bytes((bt, Cs, NL), string_isz)
                + _padded_tile_bytes((bt, 1), 4)      # labels
                + _padded_tile_bytes((bt, 8), 4)      # tbox
                + _padded_tile_bytes((bt, L), 4)      # LPs
                + _padded_tile_bytes((bt, 8), 4))     # packed output

    fixed = _padded_tile_bytes((NL, N), 4) + _padded_tile_bytes((1, NL), 4)   # pool + charpos
    budget = 24 << 20                                 # double-buffered block-bytes target

    candidates = [bt for bt in range(8, B + 1, 8) if B % bt == 0]
    fits = [bt for bt in candidates if 2 * (block_bytes(bt) + fixed) <= budget]
    multi = [bt for bt in fits if B // bt >= 2]       # >=2 grid steps (v7x megacore)
    if multi:
        bt = max(multi)
    elif fits:
        bt = max(fits)
    elif candidates:
        bt = min(candidates)
    else:
        bt = B                                        # tiny batch: single step over whole batch

    need = 2 * (block_bytes(bt) + fixed)
    # explicit scoped-VMEM limit: raise v5e's 16 MiB default, stay well under v7x's 64 MiB physical
    vmem_limit = int(min(48 << 20, max(32 << 20, need + (8 << 20))))
    return bt, vmem_limit


# ----------------------------- wrapper -----------------------------
def hungarian_loss(pred_logits, pred_boxes, pred_string_logits, labels, boxes, boxes_1, LPs):
    B, N, C = pred_logits.shape
    Cs, L = pred_string_logits.shape[1], pred_string_logits.shape[3]
    NL = N * L
    two_class = (C == 2)

    # big streams keep their storage dtype (bf16 accepted); math is f32 inside the kernel
    string_flat = pred_string_logits.reshape(B, Cs, NL)          # lane-dense (query, char)
    labels_i = labels.astype(jnp.int32).reshape(B, 1)
    tbox = jnp.concatenate([boxes.astype(jnp.float32).reshape(B, 4),
                            boxes_1.astype(jnp.float32).reshape(B, 4)], axis=-1)   # (B, 8)
    lps_i = LPs.astype(jnp.int32).reshape(B, L)

    # constants hoisted out of the kernel body (JAX does not CSE broadcast_in_dim):
    #   pool[j, q] = 1 if lane j belongs to query q; charpos[0, j] = j's char position in [0, L)
    q_of_lane = jnp.arange(NL, dtype=jnp.int32) // L
    pool = (q_of_lane[:, None] == jnp.arange(N, dtype=jnp.int32)[None, :]).astype(jnp.float32)
    charpos = (jnp.arange(NL, dtype=jnp.int32) - q_of_lane * L).reshape(1, NL)

    Bt, vmem_limit = _plan_tiling(
        B, N, C, Cs, L,
        (pred_logits.dtype.itemsize, pred_boxes.dtype.itemsize, pred_string_logits.dtype.itemsize))
    grid = (B // Bt,)

    kernel = functools.partial(_fused_kernel, two_class=two_class)

    parts = pl.pallas_call(
        kernel,
        out_shape=jax.ShapeDtypeStruct((B, 8), jnp.float32),
        grid=grid,
        in_specs=[
            pl.BlockSpec((Bt, N, C), lambda b: (b, 0, 0)),     # pred_logits
            pl.BlockSpec((Bt, N, 8), lambda b: (b, 0, 0)),     # pred_boxes
            pl.BlockSpec((Bt, Cs, NL), lambda b: (b, 0, 0)),   # pred_string_logits (lane-dense)
            pl.BlockSpec((Bt, 1), lambda b: (b, 0)),           # labels
            pl.BlockSpec((Bt, 8), lambda b: (b, 0)),           # target boxes ‖ boxes_1
            pl.BlockSpec((Bt, L), lambda b: (b, 0)),           # LPs (compact, no N-repeat)
            pl.BlockSpec((NL, N), lambda b: (0, 0)),           # constant pooling matrix
            pl.BlockSpec((1, NL), lambda b: (0, 0)),           # constant lane -> char position
        ],
        out_specs=pl.BlockSpec((Bt, 8), lambda b: (b, 0)),
        compiler_params=pltpu.CompilerParams(dimension_semantics=("parallel",),
                                             vmem_limit_bytes=vmem_limit),
    )(pred_logits, pred_boxes, string_flat, labels_i, tbox, lps_i, pool, charpos)

    # final reductions over the batch (cheap glue outside the kernel)
    ce = jnp.sum(parts[:, 0]) / jnp.sum(parts[:, 1])   # weighted-mean CE (nn.CrossEntropyLoss w/ weights)
    l1 = jnp.sum(parts[:, 2]) / (B * 4.0)              # nn.L1Loss mean over B*4 elements
    giou = jnp.sum(parts[:, 3]) / B                    # generalized_box_iou_loss(reduction='mean')
    l11 = jnp.sum(parts[:, 4]) / (B * 4.0)
    giou1 = jnp.sum(parts[:, 5]) / B
    str_loss = jnp.sum(parts[:, 6]) / (B * L)          # string CE mean over B*L characters
    return (K_CE * ce + K_L1 * l1 + K_GIOU * giou
            + K_L11 * l11 + K_GIOU1 * giou1 + K_STRING * str_loss)


if __name__ == "__main__":
    B, N, C, Cs, L = 16, 8, 2, 16, 8      # small shapes; B=16 exercises the multi-step grid
    key = jax.random.PRNGKey(0)
    k1, k2, k3, k4, k5, k6, k7, k8 = jax.random.split(key, 8)

    pred_logits = jax.random.normal(k1, (B, N, C), jnp.float32)
    u = jax.random.uniform(k2, (B, N, 8), jnp.float32)
    center_mask = jnp.array([1, 1, 0, 0, 1, 1, 0, 0], dtype=bool)    # (cx,cy) vs (w,h) columns
    pred_boxes = jnp.where(center_mask, 0.3 + 0.4 * u, 0.1 + 0.3 * u)
    pred_string_logits = jax.random.normal(k3, (B, Cs, N, L), jnp.float32)

    labels = jnp.ones((B, 1), jnp.int32)                             # class 1 = license plate
    xy1 = 0.1 + 0.3 * jax.random.uniform(k4, (B, 1, 2), jnp.float32)
    wh = 0.2 + 0.2 * jax.random.uniform(k5, (B, 1, 2), jnp.float32)
    boxes = jnp.concatenate([xy1, xy1 + wh], axis=-1)                # xyxy
    xy1b = 0.1 + 0.3 * jax.random.uniform(k6, (B, 1, 2), jnp.float32)
    whb = 0.2 + 0.2 * jax.random.uniform(k7, (B, 1, 2), jnp.float32)
    boxes_1 = jnp.concatenate([xy1b, xy1b + whb], axis=-1)           # xyxy
    LPs = jax.random.randint(k8, (B, L), 0, Cs, jnp.int32)

    loss = hungarian_loss(pred_logits, pred_boxes, pred_string_logits,
                          labels, boxes, boxes_1, LPs)
    jax.block_until_ready(loss)
    print("KERNEL_OK")
</pallas_src>

<mosaic_0001>
module attributes {stable_mosaic.version = 11 : i64} {
  func.func @_fused_kernel(%arg0: i32, %arg1: memref<8x8x2xf32, #tpu.memory_space<vmem>>, %arg2: memref<8x8x8xf32, #tpu.memory_space<vmem>>, %arg3: memref<8x16x64xf32, #tpu.memory_space<vmem>>, %arg4: memref<8x1xi32, #tpu.memory_space<vmem>>, %arg5: memref<8x8xf32, #tpu.memory_space<vmem>>, %arg6: memref<8x8xi32, #tpu.memory_space<vmem>>, %arg7: memref<64x8xf32, #tpu.memory_space<vmem>>, %arg8: memref<1x64xi32, #tpu.memory_space<vmem>>, %arg9: memref<8x8xf32, #tpu.memory_space<vmem>>) attributes {dimension_semantics = [#tpu.dimension_semantics<parallel>], iteration_bounds = array<i64: 2>, scalar_prefetch = 0 : i64, scratch_operands = 0 : i64, tpu.core_type = #tpu.core_type<tc>, window_params = [{transform_indices = @transform_0, window_bounds = array<i64: 8, 8, 2>}, {transform_indices = @transform_1, window_bounds = array<i64: 8, 8, 8>}, {transform_indices = @transform_2, window_bounds = array<i64: 8, 16, 64>}, {transform_indices = @transform_3, window_bounds = array<i64: 8, 1>}, {transform_indices = @transform_4, window_bounds = array<i64: 8, 8>}, {transform_indices = @transform_5, window_bounds = array<i64: 8, 8>}, {pipeline_mode = #tpu.pipeline_mode<synchronous>, transform_indices = @transform_6, window_bounds = array<i64: 64, 8>}, {pipeline_mode = #tpu.pipeline_mode<synchronous>, transform_indices = @transform_7, window_bounds = array<i64: 1, 64>}, {transform_indices = @transform_8, window_bounds = array<i64: 8, 8>}]} {
    %c0 = arith.constant 0 : index
    %c0_0 = arith.constant 0 : index
    %0 = vector.load %arg4[%c0, %c0_0] : memref<8x1xi32, #tpu.memory_space<vmem>>, vector<8x1xi32>
    %c0_1 = arith.constant 0 : index
    %c0_2 = arith.constant 0 : index
    %1 = vector.load %arg5[%c0_1, %c0_2] : memref<8x8xf32, #tpu.memory_space<vmem>>, vector<8x8xf32>
    %c0_3 = arith.constant 0 : index
    %c0_4 = arith.constant 0 : index
    %c0_5 = arith.constant 0 : index
    %2 = vector.load %arg1[%c0_3, %c0_4, %c0_5] : memref<8x8x2xf32, #tpu.memory_space<vmem>>, vector<8x8x2xf32>
    %3 = vector.extract_strided_slice %2 {offsets = [0, 0, 0], sizes = [8, 8, 1], strides = [1, 1, 1]} : vector<8x8x2xf32> to vector<8x8x1xf32>
    %4 = vector.shape_cast %3 : vector<8x8x1xf32> to vector<8x8xf32>
    %5 = vector.extract_strided_slice %2 {offsets = [0, 0, 1], sizes = [8, 8, 1], strides = [1, 1, 1]} : vector<8x8x2xf32> to vector<8x8x1xf32>
    %6 = vector.shape_cast %5 : vector<8x8x1xf32> to vector<8x8xf32>
    %7 = arith.subf %6, %4 : vector<8x8xf32>
    %c1_i32 = arith.constant 1 : i32
    %8 = vector.broadcast %c1_i32 : i32 to vector<8x1xi32>
    %9 = arith.cmpi eq, %0, %8 : vector<8x1xi32>
    %cst = arith.constant 0.000000e+00 : f32
    %10 = vector.broadcast %cst : f32 to vector<8x8xf32>
    %11 = arith.subf %10, %7 : vector<8x8xf32>
    %12 = vector.shape_cast %9 : vector<8x1xi1> to vector<8x1xi1>
    %13 = vector.broadcast %12 : vector<8x1xi1> to vector<8x8xi1>
    %14 = arith.select %13, %7, %11 : vector<8x8xi1>, vector<8x8xf32>
    %cst_6 = arith.constant 0.000000e+00 : f32
    %15 = vector.broadcast %cst_6 : f32 to vector<8x8xf32>
    %16 = arith.subf %15, %14 : vector<8x8xf32>
    %17 = math.exp %16 : vector<8x8xf32>
    %cst_7 = arith.constant 1.000000e+00 : f32
    %18 = vector.broadcast %cst_7 : f32 to vector<8x8xf32>
    %19 = arith.addf %18, %17 : vector<8x8xf32>
    %cst_8 = arith.constant -1.000000e+00 : f32
    %20 = vector.broadcast %cst_8 : f32 to vector<8x8xf32>
    %21 = arith.divf %20, %19 : vector<8x8xf32>
    %c0_9 = arith.constant 0 : index
    %c0_10 = arith.constant 0 : index
    %c0_11 = arith.constant 0 : index
    %22 = vector.load %arg2[%c0_9, %c0_10, %c0_11] : memref<8x8x8xf32, #tpu.memory_space<vmem>>, vector<8x8x8xf32>
    %23 = vector.extract_strided_slice %22 {offsets = [0, 0, 0], sizes = [8, 8, 1], strides = [1, 1, 1]} : vector<8x8x8xf32> to vector<8x8x1xf32>
    %24 = vector.shape_cast %23 : vector<8x8x1xf32> to vector<8x8xf32>
    %25 = vector.extract_strided_slice %22 {offsets = [0, 0, 1], sizes = [8, 8, 1], strides = [1, 1, 1]} : vector<8x8x8xf32> to vector<8x8x1xf32>
    %26 = vector.shape_cast %25 : vector<8x8x1xf32> to vector<8x8xf32>
    %27 = vector.extract_strided_slice %22 {offsets = [0, 0, 2], sizes = [8, 8, 1], strides = [1, 1, 1]} : vector<8x8x8xf32> to vector<8x8x1xf32>
    %28 = vector.shape_cast %27 : vector<8x8x1xf32> to vector<8x8xf32>
    %29 = vector.extract_strided_slice %22 {offsets = [0, 0, 3], sizes = [8, 8, 1], strides = [1, 1, 1]} : vector<8x8x8xf32> to vector<8x8x1xf32>
    %30 = vector.shape_cast %29 : vector<8x8x1xf32> to vector<8x8xf32>
    %31 = vector.extract_strided_slice %22 {offsets = [0, 0, 4], sizes = [8, 8, 1], strides = [1, 1, 1]} : vector<8x8x8xf32> to vector<8x8x1xf32>
    %32 = vector.shape_cast %31 : vector<8x8x1xf32> to vector<8x8xf32>
    %33 = vector.extract_strided_slice %22 {offsets = [0, 0, 5], sizes = [8, 8, 1], strides = [1, 1, 1]} : vector<8x8x8xf32> to vector<8x8x1xf32>
    %34 = vector.shape_cast %33 : vector<8x8x1xf32> to vector<8x8xf32>
    %35 = vector.extract_strided_slice %22 {offsets = [0, 0, 6], sizes = [8, 8, 1], strides = [1, 1, 1]} : vector<8x8x8xf32> to vector<8x8x1xf32>
    %36 = vector.shape_cast %35 : vector<8x8x1xf32> to vector<8x8xf32>
    %37 = vector.extract_strided_slice %22 {offsets = [0, 0, 7], sizes = [8, 8, 1], strides = [1, 1, 1]} : vector<8x8x8xf32> to vector<8x8x1xf32>
    %38 = vector.shape_cast %37 : vector<8x8x1xf32> to vector<8x8xf32>
    %39 = vector.extract_strided_slice %1 {offsets = [0, 0], sizes = [8, 1], strides = [1, 1]} : vector<8x8xf32> to vector<8x1xf32>
    %40 = vector.extract_strided_slice %1 {offsets = [0, 1], sizes = [8, 1], strides = [1, 1]} : vector<8x8xf32> to vector<8x1xf32>
    %41 = vector.extract_strided_slice %1 {offsets = [0, 2], sizes = [8, 1], strides = [1, 1]} : vector<8x8xf32> to vector<8x1xf32>
    %42 = vector.extract_strided_slice %1 {offsets = [0, 3], sizes = [8, 1], strides = [1, 1]} : vector<8x8xf32> to vector<8x1xf32>
    %43 = vector.extract_strided_slice %1 {offsets = [0, 4], sizes = [8, 1], strides = [1, 1]} : vector<8x8xf32> to vector<8x1xf32>
    %44 = vector.extract_strided_slice %1 {offsets = [0, 5], sizes = [8, 1], strides = [1, 1]} : vector<8x8xf32> to vector<8x1xf32>
    %45 = vector.extract_strided_slice %1 {offsets = [0, 6], sizes = [8, 1], strides = [1, 1]} : vector<8x8xf32> to vector<8x1xf32>
    %46 = vector.extract_strided_slice %1 {offsets = [0, 7], sizes = [8, 1], strides = [1, 1]} : vector<8x8xf32> to vector<8x1xf32>
    %47 = vector.broadcast %39 : vector<8x1xf32> to vector<8x8xf32>
    %48 = arith.subf %24, %47 : vector<8x8xf32>
    %49 = math.absf %48 : vector<8x8xf32>
    %50 = vector.broadcast %40 : vector<8x1xf32> to vector<8x8xf32>
    %51 = arith.subf %26, %50 : vector<8x8xf32>
    %52 = math.absf %51 : vector<8x8xf32>
    %53 = arith.addf %49, %52 : vector<8x8xf32>
    %54 = vector.broadcast %41 : vector<8x1xf32> to vector<8x8xf32>
    %55 = arith.subf %28, %54 : vector<8x8xf32>
    %56 = math.absf %55 : vector<8x8xf32>
    %57 = arith.addf %53, %56 : vector<8x8xf32>
    %58 = vector.broadcast %42 : vector<8x1xf32> to vector<8x8xf32>
    %59 = arith.subf %30, %58 : vector<8x8xf32>
    %60 = math.absf %59 : vector<8x8xf32>
    %61 = arith.addf %57, %60 : vector<8x8xf32>
    %62 = vector.broadcast %43 : vector<8x1xf32> to vector<8x8xf32>
    %63 = arith.subf %32, %62 : vector<8x8xf32>
    %64 = math.absf %63 : vector<8x8xf32>
    %65 = vector.broadcast %44 : vector<8x1xf32> to vector<8x8xf32>
    %66 = arith.subf %34, %65 : vector<8x8xf32>
    %67 = math.absf %66 : vector<8x8xf32>
    %68 = arith.addf %64, %67 : vector<8x8xf32>
    %69 = vector.broadcast %45 : vector<8x1xf32> to vector<8x8xf32>
    %70 = arith.subf %36, %69 : vector<8x8xf32>
    %71 = math.absf %70 : vector<8x8xf32>
    %72 = arith.addf %68, %71 : vector<8x8xf32>
    %73 = vector.broadcast %46 : vector<8x1xf32> to vector<8x8xf32>
    %74 = arith.subf %38, %73 : vector<8x8xf32>
    %75 = math.absf %74 : vector<8x8xf32>
    %76 = arith.addf %72, %75 : vector<8x8xf32>
    %cst_12 = arith.constant 5.000000e-01 : f32
    %77 = vector.broadcast %cst_12 : f32 to vector<8x8xf32>
    %78 = arith.mulf %77, %28 : vector<8x8xf32>
    %79 = arith.subf %24, %78 : vector<8x8xf32>
    %cst_13 = arith.constant 5.000000e-01 : f32
    %80 = vector.broadcast %cst_13 : f32 to vector<8x8xf32>
    %81 = arith.mulf %80, %30 : vector<8x8xf32>
    %82 = arith.subf %26, %81 : vector<8x8xf32>
    %cst_14 = arith.constant 5.000000e-01 : f32
    %83 = vector.broadcast %cst_14 : f32 to vector<8x8xf32>
    %84 = arith.mulf %83, %28 : vector<8x8xf32>
    %85 = arith.addf %24, %84 : vector<8x8xf32>
    %cst_15 = arith.constant 5.000000e-01 : f32
    %86 = vector.broadcast %cst_15 : f32 to vector<8x8xf32>
    %87 = arith.mulf %86, %30 : vector<8x8xf32>
    %88 = arith.addf %26, %87 : vector<8x8xf32>
    %cst_16 = arith.constant 5.000000e-01 : f32
    %89 = vector.broadcast %cst_16 : f32 to vector<8x8xf32>
    %90 = arith.mulf %89, %36 : vector<8x8xf32>
    %91 = arith.subf %32, %90 : vector<8x8xf32>
    %cst_17 = arith.constant 5.000000e-01 : f32
    %92 = vector.broadcast %cst_17 : f32 to vector<8x8xf32>
    %93 = arith.mulf %92, %38 : vector<8x8xf32>
    %94 = arith.subf %34, %93 : vector<8x8xf32>
    %cst_18 = arith.constant 5.000000e-01 : f32
    %95 = vector.broadcast %cst_18 : f32 to vector<8x8xf32>
    %96 = arith.mulf %95, %36 : vector<8x8xf32>
    %97 = arith.addf %32, %96 : vector<8x8xf32>
    %cst_19 = arith.constant 5.000000e-01 : f32
    %98 = vector.broadcast %cst_19 : f32 to vector<8x8xf32>
    %99 = arith.mulf %98, %38 : vector<8x8xf32>
    %100 = arith.addf %34, %99 : vector<8x8xf32>
    %101 = arith.subf %85, %79 : vector<8x8xf32>
    %102 = arith.subf %88, %82 : vector<8x8xf32>
    %103 = arith.mulf %101, %102 : vector<8x8xf32>
    %104 = arith.subf %41, %39 : vector<8x1xf32>
    %105 = arith.subf %42, %40 : vector<8x1xf32>
    %106 = arith.mulf %104, %105 : vector<8x1xf32>
    %107 = vector.broadcast %39 : vector<8x1xf32> to vector<8x8xf32>
    %108 = arith.maximumf %79, %107 : vector<8x8xf32>
    %109 = vector.broadcast %40 : vector<8x1xf32> to vector<8x8xf32>
    %110 = arith.maximumf %82, %109 : vector<8x8xf32>
    %111 = vector.broadcast %41 : vector<8x1xf32> to vector<8x8xf32>
    %112 = arith.minimumf %85, %111 : vector<8x8xf32>
    %113 = vector.broadcast %42 : vector<8x1xf32> to vector<8x8xf32>
    %114 = arith.minimumf %88, %113 : vector<8x8xf32>
    %115 = arith.subf %112, %108 : vector<8x8xf32>
    %cst_20 = arith.constant 0.000000e+00 : f32
    %116 = vector.broadcast %cst_20 : f32 to vector<8x8xf32>
    %117 = arith.maximumf %115, %116 : vector<8x8xf32>
    %118 = arith.subf %114, %110 : vector<8x8xf32>
    %cst_21 = arith.constant 0.000000e+00 : f32
    %119 = vector.broadcast %cst_21 : f32 to vector<8x8xf32>
    %120 = arith.maximumf %118, %119 : vector<8x8xf32>
    %121 = arith.mulf %117, %120 : vector<8x8xf32>
    %122 = vector.broadcast %106 : vector<8x1xf32> to vector<8x8xf32>
    %123 = arith.addf %103, %122 : vector<8x8xf32>
    %124 = arith.subf %123, %121 : vector<8x8xf32>
    %125 = arith.divf %121, %124 : vector<8x8xf32>
    %126 = vector.broadcast %39 : vector<8x1xf32> to vector<8x8xf32>
    %127 = arith.minimumf %79, %126 : vector<8x8xf32>
    %128 = vector.broadcast %40 : vector<8x1xf32> to vector<8x8xf32>
    %129 = arith.minimumf %82, %128 : vector<8x8xf32>
    %130 = vector.broadcast %41 : vector<8x1xf32> to vector<8x8xf32>
    %131 = arith.maximumf %85, %130 : vector<8x8xf32>
    %132 = vector.broadcast %42 : vector<8x1xf32> to vector<8x8xf32>
    %133 = arith.maximumf %88, %132 : vector<8x8xf32>
    %134 = arith.subf %131, %127 : vector<8x8xf32>
    %cst_22 = arith.constant 0.000000e+00 : f32
    %135 = vector.broadcast %cst_22 : f32 to vector<8x8xf32>
    %136 = arith.maximumf %134, %135 : vector<8x8xf32>
    %137 = arith.subf %133, %129 : vector<8x8xf32>
    %cst_23 = arith.constant 0.000000e+00 : f32
    %138 = vector.broadcast %cst_23 : f32 to vector<8x8xf32>
    %139 = arith.maximumf %137, %138 : vector<8x8xf32>
    %140 = arith.mulf %136, %139 : vector<8x8xf32>
    %141 = arith.subf %140, %124 : vector<8x8xf32>
    %142 = arith.divf %141, %140 : vector<8x8xf32>
    %143 = arith.subf %125, %142 : vector<8x8xf32>
    %cst_24 = arith.constant 0.000000e+00 : f32
    %144 = vector.broadcast %cst_24 : f32 to vector<8x8xf32>
    %145 = arith.subf %144, %143 : vector<8x8xf32>
    %146 = arith.subf %97, %91 : vector<8x8xf32>
    %147 = arith.subf %100, %94 : vector<8x8xf32>
    %148 = arith.mulf %146, %147 : vector<8x8xf32>
    %149 = arith.subf %45, %43 : vector<8x1xf32>
    %150 = arith.subf %46, %44 : vector<8x1xf32>
    %151 = arith.mulf %149, %150 : vector<8x1xf32>
    %152 = vector.broadcast %43 : vector<8x1xf32> to vector<8x8xf32>
    %153 = arith.maximumf %91, %152 : vector<8x8xf32>
    %154 = vector.broadcast %44 : vector<8x1xf32> to vector<8x8xf32>
    %155 = arith.maximumf %94, %154 : vector<8x8xf32>
    %156 = vector.broadcast %45 : vector<8x1xf32> to vector<8x8xf32>
    %157 = arith.minimumf %97, %156 : vector<8x8xf32>
    %158 = vector.broadcast %46 : vector<8x1xf32> to vector<8x8xf32>
    %159 = arith.minimumf %100, %158 : vector<8x8xf32>
    %160 = arith.subf %157, %153 : vector<8x8xf32>
    %cst_25 = arith.constant 0.000000e+00 : f32
    %161 = vector.broadcast %cst_25 : f32 to vector<8x8xf32>
    %162 = arith.maximumf %160, %161 : vector<8x8xf32>
    %163 = arith.subf %159, %155 : vector<8x8xf32>
    %cst_26 = arith.constant 0.000000e+00 : f32
    %164 = vector.broadcast %cst_26 : f32 to vector<8x8xf32>
    %165 = arith.maximumf %163, %164 : vector<8x8xf32>
    %166 = arith.mulf %162, %165 : vector<8x8xf32>
    %167 = vector.broadcast %151 : vector<8x1xf32> to vector<8x8xf32>
    %168 = arith.addf %148, %167 : vector<8x8xf32>
    %169 = arith.subf %168, %166 : vector<8x8xf32>
    %170 = arith.divf %166, %169 : vector<8x8xf32>
    %171 = vector.broadcast %43 : vector<8x1xf32> to vector<8x8xf32>
    %172 = arith.minimumf %91, %171 : vector<8x8xf32>
    %173 = vector.broadcast %44 : vector<8x1xf32> to vector<8x8xf32>
    %174 = arith.minimumf %94, %173 : vector<8x8xf32>
    %175 = vector.broadcast %45 : vector<8x1xf32> to vector<8x8xf32>
    %176 = arith.maximumf %97, %175 : vector<8x8xf32>
    %177 = vector.broadcast %46 : vector<8x1xf32> to vector<8x8xf32>
    %178 = arith.maximumf %100, %177 : vector<8x8xf32>
    %179 = arith.subf %176, %172 : vector<8x8xf32>
    %cst_27 = arith.constant 0.000000e+00 : f32
    %180 = vector.broadcast %cst_27 : f32 to vector<8x8xf32>
    %181 = arith.maximumf %179, %180 : vector<8x8xf32>
    %182 = arith.subf %178, %174 : vector<8x8xf32>
    %cst_28 = arith.constant 0.000000e+00 : f32
    %183 = vector.broadcast %cst_28 : f32 to vector<8x8xf32>
    %184 = arith.maximumf %182, %183 : vector<8x8xf32>
    %185 = arith.mulf %181, %184 : vector<8x8xf32>
    %186 = arith.subf %185, %169 : vector<8x8xf32>
    %187 = arith.divf %186, %185 : vector<8x8xf32>
    %188 = arith.subf %170, %187 : vector<8x8xf32>
    %cst_29 = arith.constant 0.000000e+00 : f32
    %189 = vector.broadcast %cst_29 : f32 to vector<8x8xf32>
    %190 = arith.subf %189, %188 : vector<8x8xf32>
    %c0_30 = arith.constant 0 : index
    %c0_31 = arith.constant 0 : index
    %c0_32 = arith.constant 0 : index
    %191 = vector.load %arg3[%c0_30, %c0_31, %c0_32] : memref<8x16x64xf32, #tpu.memory_space<vmem>>, vector<8x16x64xf32>
    %cst_33 = arith.constant dense<0xFF800000> : vector<8x64xf32>
    %192 = vector.multi_reduction <maximumf>, %191, %cst_33 [1] : vector<8x16x64xf32> to vector<8x64xf32>
    %193 = vector.shape_cast %192 : vector<8x64xf32> to vector<8x1x64xf32>
    %194 = vector.broadcast %193 : vector<8x1x64xf32> to vector<8x16x64xf32>
    %195 = arith.subf %191, %194 : vector<8x16x64xf32>
    %196 = math.exp %195 : vector<8x16x64xf32>
    %cst_34 = arith.constant dense<0.000000e+00> : vector<8x64xf32>
    %197 = vector.multi_reduction <add>, %196, %cst_34 [1] : vector<8x16x64xf32> to vector<8x64xf32>
    %198 = vector.shape_cast %197 : vector<8x64xf32> to vector<8x1x64xf32>
    %199 = math.log %198 : vector<8x1x64xf32>
    %200 = arith.addf %199, %193 : vector<8x1x64xf32>
    %201 = vector.broadcast %200 : vector<8x1x64xf32> to vector<8x16x64xf32>
    %202 = arith.subf %191, %201 : vector<8x16x64xf32>
    %c0_35 = arith.constant 0 : index
    %c0_36 = arith.constant 0 : index
    %203 = vector.load %arg6[%c0_35, %c0_36] : memref<8x8xi32, #tpu.memory_space<vmem>>, vector<8x8xi32>
    %c0_37 = arith.constant 0 : index
    %c0_38 = arith.constant 0 : index
    %204 = vector.load %arg8[%c0_37, %c0_38] : memref<1x64xi32, #tpu.memory_space<vmem>>, vector<1x64xi32>
    %c0_i32 = arith.constant 0 : i32
    %205 = vector.broadcast %c0_i32 : i32 to vector<1x64xi32>
    %206 = arith.cmpi eq, %204, %205 : vector<1x64xi32>
    %207 = vector.extract_strided_slice %203 {offsets = [0, 0], sizes = [8, 1], strides = [1, 1]} : vector<8x8xi32> to vector<8x1xi32>
    %c0_i32_39 = arith.constant 0 : i32
    %208 = vector.shape_cast %206 : vector<1x64xi1> to vector<1x64xi1>
    %209 = vector.broadcast %208 : vector<1x64xi1> to vector<8x64xi1>
    %210 = vector.shape_cast %207 : vector<8x1xi32> to vector<8x1xi32>
    %211 = vector.broadcast %210 : vector<8x1xi32> to vector<8x64xi32>
    %212 = vector.broadcast %c0_i32_39 : i32 to vector<8x64xi32>
    %213 = arith.select %209, %211, %212 : vector<8x64xi1>, vector<8x64xi32>
    %c1_i32_40 = arith.constant 1 : i32
    %214 = vector.broadcast %c1_i32_40 : i32 to vector<1x64xi32>
    %215 = arith.cmpi eq, %204, %214 : vector<1x64xi32>
    %216 = vector.extract_strided_slice %203 {offsets = [0, 1], sizes = [8, 1], strides = [1, 1]} : vector<8x8xi32> to vector<8x1xi32>
    %c0_i32_41 = arith.constant 0 : i32
    %217 = vector.shape_cast %215 : vector<1x64xi1> to vector<1x64xi1>
    %218 = vector.broadcast %217 : vector<1x64xi1> to vector<8x64xi1>
    %219 = vector.shape_cast %216 : vector<8x1xi32> to vector<8x1xi32>
    %220 = vector.broadcast %219 : vector<8x1xi32> to vector<8x64xi32>
    %221 = vector.broadcast %c0_i32_41 : i32 to vector<8x64xi32>
    %222 = arith.select %218, %220, %221 : vector<8x64xi1>, vector<8x64xi32>
    %223 = arith.addi %213, %222 : vector<8x64xi32>
    %c2_i32 = arith.constant 2 : i32
    %224 = vector.broadcast %c2_i32 : i32 to vector<1x64xi32>
    %225 = arith.cmpi eq, %204, %224 : vector<1x64xi32>
    %226 = vector.extract_strided_slice %203 {offsets = [0, 2], sizes = [8, 1], strides = [1, 1]} : vector<8x8xi32> to vector<8x1xi32>
    %c0_i32_42 = arith.constant 0 : i32
    %227 = vector.shape_cast %225 : vector<1x64xi1> to vector<1x64xi1>
    %228 = vector.broadcast %227 : vector<1x64xi1> to vector<8x64xi1>
    %229 = vector.shape_cast %226 : vector<8x1xi32> to vector<8x1xi32>
    %230 = vector.broadcast %229 : vector<8x1xi32> to vector<8x64xi32>
    %231 = vector.broadcast %c0_i32_42 : i32 to vector<8x64xi32>
    %232 = arith.select %228, %230, %231 : vector<8x64xi1>, vector<8x64xi32>
    %233 = arith.addi %223, %232 : vector<8x64xi32>
    %c3_i32 = arith.constant 3 : i32
    %234 = vector.broadcast %c3_i32 : i32 to vector<1x64xi32>
    %235 = arith.cmpi eq, %204, %234 : vector<1x64xi32>
    %236 = vector.extract_strided_slice %203 {offsets = [0, 3], sizes = [8, 1], strides = [1, 1]} : vector<8x8xi32> to vector<8x1xi32>
    %c0_i32_43 = arith.constant 0 : i32
    %237 = vector.shape_cast %235 : vector<1x64xi1> to vector<1x64xi1>
    %238 = vector.broadcast %237 : vector<1x64xi1> to vector<8x64xi1>
    %239 = vector.shape_cast %236 : vector<8x1xi32> to vector<8x1xi32>
    %240 = vector.broadcast %239 : vector<8x1xi32> to vector<8x64xi32>
    %241 = vector.broadcast %c0_i32_43 : i32 to vector<8x64xi32>
    %242 = arith.select %238, %240, %241 : vector<8x64xi1>, vector<8x64xi32>
    %243 = arith.addi %233, %242 : vector<8x64xi32>
    %c4_i32 = arith.constant 4 : i32
    %244 = vector.broadcast %c4_i32 : i32 to vector<1x64xi32>
    %245 = arith.cmpi eq, %204, %244 : vector<1x64xi32>
    %246 = vector.extract_strided_slice %203 {offsets = [0, 4], sizes = [8, 1], strides = [1, 1]} : vector<8x8xi32> to vector<8x1xi32>
    %c0_i32_44 = arith.constant 0 : i32
    %247 = vector.shape_cast %245 : vector<1x64xi1> to vector<1x64xi1>
    %248 = vector.broadcast %247 : vector<1x64xi1> to vector<8x64xi1>
    %249 = vector.shape_cast %246 : vector<8x1xi32> to vector<8x1xi32>
    %250 = vector.broadcast %249 : vector<8x1xi32> to vector<8x64xi32>
    %251 = vector.broadcast %c0_i32_44 : i32 to vector<8x64xi32>
    %252 = arith.select %248, %250, %251 : vector<8x64xi1>, vector<8x64xi32>
    %253 = arith.addi %243, %252 : vector<8x64xi32>
    %c5_i32 = arith.constant 5 : i32
    %254 = vector.broadcast %c5_i32 : i32 to vector<1x64xi32>
    %255 = arith.cmpi eq, %204, %254 : vector<1x64xi32>
    %256 = vector.extract_strided_slice %203 {offsets = [0, 5], sizes = [8, 1], strides = [1, 1]} : vector<8x8xi32> to vector<8x1xi32>
    %c0_i32_45 = arith.constant 0 : i32
    %257 = vector.shape_cast %255 : vector<1x64xi1> to vector<1x64xi1>
    %258 = vector.broadcast %257 : vector<1x64xi1> to vector<8x64xi1>
    %259 = vector.shape_cast %256 : vector<8x1xi32> to vector<8x1xi32>
    %260 = vector.broadcast %259 : vector<8x1xi32> to vector<8x64xi32>
    %261 = vector.broadcast %c0_i32_45 : i32 to vector<8x64xi32>
    %262 = arith.select %258, %260, %261 : vector<8x64xi1>, vector<8x64xi32>
    %263 = arith.addi %253, %262 : vector<8x64xi32>
    %c6_i32 = arith.constant 6 : i32
    %264 = vector.broadcast %c6_i32 : i32 to vector<1x64xi32>
    %265 = arith.cmpi eq, %204, %264 : vector<1x64xi32>
    %266 = vector.extract_strided_slice %203 {offsets = [0, 6], sizes = [8, 1], strides = [1, 1]} : vector<8x8xi32> to vector<8x1xi32>
    %c0_i32_46 = arith.constant 0 : i32
    %267 = vector.shape_cast %265 : vector<1x64xi1> to vector<1x64xi1>
    %268 = vector.broadcast %267 : vector<1x64xi1> to vector<8x64xi1>
    %269 = vector.shape_cast %266 : vector<8x1xi32> to vector<8x1xi32>
    %270 = vector.broadcast %269 : vector<8x1xi32> to vector<8x64xi32>
    %271 = vector.broadcast %c0_i32_46 : i32 to vector<8x64xi32>
    %272 = arith.select %268, %270, %271 : vector<8x64xi1>, vector<8x64xi32>
    %273 = arith.addi %263, %272 : vector<8x64xi32>
    %c7_i32 = arith.constant 7 : i32
    %274 = vector.broadcast %c7_i32 : i32 to vector<1x64xi32>
    %275 = arith.cmpi eq, %204, %274 : vector<1x64xi32>
    %276 = vector.extract_strided_slice %203 {offsets = [0, 7], sizes = [8, 1], strides = [1, 1]} : vector<8x8xi32> to vector<8x1xi32>
    %c0_i32_47 = arith.constant 0 : i32
    %277 = vector.shape_cast %275 : vector<1x64xi1> to vector<1x64xi1>
    %278 = vector.broadcast %277 : vector<1x64xi1> to vector<8x64xi1>
    %279 = vector.shape_cast %276 : vector<8x1xi32> to vector<8x1xi32>
    %280 = vector.broadcast %279 : vector<8x1xi32> to vector<8x64xi32>
    %281 = vector.broadcast %c0_i32_47 : i32 to vector<8x64xi32>
    %282 = arith.select %278, %280, %281 : vector<8x64xi1>, vector<8x64xi32>
    %283 = arith.addi %273, %282 : vector<8x64xi32>
    %284 = tpu.iota {dimensions = array<i32: 1>} : vector<8x16x64xi32>
    %285 = vector.shape_cast %283 : vector<8x64xi32> to vector<8x1x64xi32>
    %286 = vector.broadcast %285 : vector<8x1x64xi32> to vector<8x16x64xi32>
    %287 = arith.cmpi eq, %284, %286 : vector<8x16x64xi32>
    %288 = arith.extui %287 : vector<8x16x64xi1> to vector<8x16x64xi32>
    %289 = arith.sitofp %288 : vector<8x16x64xi32> to vector<8x16x64xf32>
    %290 = arith.mulf %202, %289 : vector<8x16x64xf32>
    %cst_48 = arith.constant dense<0.000000e+00> : vector<8x64xf32>
    %291 = vector.multi_reduction <add>, %290, %cst_48 [1] : vector<8x16x64xf32> to vector<8x64xf32>
    %cst_49 = arith.constant 0.000000e+00 : f32
    %292 = vector.broadcast %cst_49 : f32 to vector<8x64xf32>
    %293 = arith.subf %292, %291 : vector<8x64xf32>
    %c0_50 = arith.constant 0 : index
    %c0_51 = arith.constant 0 : index
    %294 = vector.load %arg7[%c0_50, %c0_51] : memref<64x8xf32, #tpu.memory_space<vmem>>, vector<64x8xf32>
    %cst_52 = arith.constant dense<0.000000e+00> : vector<8x8xf32>
    %295 = tpu.matmul %293, %294, %cst_52 {dimension_numbers = #tpu.dot_dimension_numbers<[1], [0], [0], [1], [0, 0, 1, 1], [], []>, precision = #tpu.contract_precision<fp32>} : vector<8x64xf32>, vector<64x8xf32>, vector<8x8xf32> -> vector<8x8xf32>
    %cst_53 = arith.constant 1.250000e-01 : f32
    %296 = vector.broadcast %cst_53 : f32 to vector<8x8xf32>
    %297 = arith.mulf %295, %296 : vector<8x8xf32>
    %cst_54 = arith.constant 1.000000e+00 : f32
    %298 = vector.broadcast %cst_54 : f32 to vector<8x8xf32>
    %299 = arith.mulf %298, %21 : vector<8x8xf32>
    %cst_55 = arith.constant 5.000000e+00 : f32
    %300 = vector.broadcast %cst_55 : f32 to vector<8x8xf32>
    %301 = arith.mulf %300, %61 : vector<8x8xf32>
    %302 = arith.addf %299, %301 : vector<8x8xf32>
    %cst_56 = arith.constant 2.000000e+00 : f32
    %303 = vector.broadcast %cst_56 : f32 to vector<8x8xf32>
    %304 = arith.mulf %303, %145 : vector<8x8xf32>
    %305 = arith.addf %302, %304 : vector<8x8xf32>
    %cst_57 = arith.constant 5.000000e+00 : f32
    %306 = vector.broadcast %cst_57 : f32 to vector<8x8xf32>
    %307 = arith.mulf %306, %76 : vector<8x8xf32>
    %308 = arith.addf %305, %307 : vector<8x8xf32>
    %cst_58 = arith.constant 2.000000e+00 : f32
    %309 = vector.broadcast %cst_58 : f32 to vector<8x8xf32>
    %310 = arith.mulf %309, %190 : vector<8x8xf32>
    %311 = arith.addf %308, %310 : vector<8x8xf32>
    %cst_59 = arith.constant 1.000000e+01 : f32
    %312 = vector.broadcast %cst_59 : f32 to vector<8x8xf32>
    %313 = arith.mulf %312, %297 : vector<8x8xf32>
    %314 = arith.addf %311, %313 : vector<8x8xf32>
    %315 = arith.cmpf one, %314, %314 : vector<8x8xf32>
    %cst_60 = arith.constant 0x7F800000 : f32
    %316 = vector.broadcast %cst_60 : f32 to vector<8x8xf32>
    %317 = arith.select %315, %316, %314 : vector<8x8xi1>, vector<8x8xf32>
    %cst_61 = arith.constant dense<0x7F800000> : vector<8xf32>
    %318 = vector.multi_reduction <minimumf>, %317, %cst_61 [1] : vector<8x8xf32> to vector<8xf32>
    %319 = vector.shape_cast %318 : vector<8xf32> to vector<8x1xf32>
    %320 = tpu.iota {dimensions = array<i32: 1>} : vector<8x8xi32>
    %321 = vector.broadcast %319 : vector<8x1xf32> to vector<8x8xf32>
    %322 = arith.cmpf oeq, %317, %321 : vector<8x8xf32>
    %c8_i32 = arith.constant 8 : i32
    %323 = vector.broadcast %c8_i32 : i32 to vector<8x8xi32>
    %324 = arith.select %322, %320, %323 : vector<8x8xi1>, vector<8x8xi32>
    %cst_62 = arith.constant dense<2147483647> : vector<8xi32>
    %325 = vector.multi_reduction <minsi>, %324, %cst_62 [1] : vector<8x8xi32> to vector<8xi32>
    %326 = vector.shape_cast %325 : vector<8xi32> to vector<8x1xi32>
    %327 = vector.broadcast %326 : vector<8x1xi32> to vector<8x8xi32>
    %328 = arith.cmpi eq, %320, %327 : vector<8x8xi32>
    %329 = arith.extui %328 : vector<8x8xi1> to vector<8x8xi32>
    %330 = arith.sitofp %329 : vector<8x8xi32> to vector<8x8xf32>
    %c0_i32_63 = arith.constant 0 : i32
    %331 = vector.shape_cast %0 : vector<8x1xi32> to vector<8x1xi32>
    %332 = vector.broadcast %331 : vector<8x1xi32> to vector<8x8xi32>
    %333 = vector.broadcast %c0_i32_63 : i32 to vector<8x8xi32>
    %334 = arith.select %328, %332, %333 : vector<8x8xi1>, vector<8x8xi32>
    %c1_i32_64 = arith.constant 1 : i32
    %335 = vector.broadcast %c1_i32_64 : i32 to vector<8x8xi32>
    %336 = arith.cmpi eq, %334, %335 : vector<8x8xi32>
    %cst_65 = arith.constant 0.000000e+00 : f32
    %337 = vector.broadcast %cst_65 : f32 to vector<8x8xf32>
    %338 = arith.subf %337, %7 : vector<8x8xf32>
    %339 = arith.select %336, %7, %338 : vector<8x8xi1>, vector<8x8xf32>
    %cst_66 = arith.constant 0.000000e+00 : f32
    %340 = vector.broadcast %cst_66 : f32 to vector<8x8xf32>
    %341 = arith.subf %340, %339 : vector<8x8xf32>
    %cst_67 = arith.constant 0.000000e+00 : f32
    %342 = vector.broadcast %cst_67 : f32 to vector<8x8xf32>
    %343 = arith.maximumf %341, %342 : vector<8x8xf32>
    %344 = math.absf %339 : vector<8x8xf32>
    %cst_68 = arith.constant 0.000000e+00 : f32
    %345 = vector.broadcast %cst_68 : f32 to vector<8x8xf32>
    %346 = arith.subf %345, %344 : vector<8x8xf32>
    %347 = math.exp %346 : vector<8x8xf32>
    %cst_69 = arith.constant 1.000000e+00 : f32
    %348 = vector.broadcast %cst_69 : f32 to vector<8x8xf32>
    %349 = arith.addf %348, %347 : vector<8x8xf32>
    %350 = math.log %349 : vector<8x8xf32>
    %351 = arith.addf %343, %350 : vector<8x8xf32>
    %c0_i32_70 = arith.constant 0 : i32
    %352 = vector.broadcast %c0_i32_70 : i32 to vector<8x8xi32>
    %353 = arith.cmpi eq, %334, %352 : vector<8x8xi32>
    %cst_71 = arith.constant 1.000000e-01 : f32
    %cst_72 = arith.constant 1.000000e+00 : f32
    %354 = vector.broadcast %cst_71 : f32 to vector<8x8xf32>
    %355 = vector.broadcast %cst_72 : f32 to vector<8x8xf32>
    %356 = arith.select %353, %354, %355 : vector<8x8xi1>, vector<8x8xf32>
    %357 = arith.mulf %356, %351 : vector<8x8xf32>
    %cst_73 = arith.constant dense<0.000000e+00> : vector<8xf32>
    %358 = vector.multi_reduction <add>, %357, %cst_73 [1] : vector<8x8xf32> to vector<8xf32>
    %359 = vector.shape_cast %358 : vector<8xf32> to vector<8x1xf32>
    %cst_74 = arith.constant dense<0.000000e+00> : vector<8xf32>
    %360 = vector.multi_reduction <add>, %356, %cst_74 [1] : vector<8x8xf32> to vector<8xf32>
    %361 = vector.shape_cast %360 : vector<8xf32> to vector<8x1xf32>
    %362 = arith.mulf %79, %330 : vector<8x8xf32>
    %cst_75 = arith.constant dense<0.000000e+00> : vector<8xf32>
    %363 = vector.multi_reduction <add>, %362, %cst_75 [1] : vector<8x8xf32> to vector<8xf32>
    %364 = vector.shape_cast %363 : vector<8xf32> to vector<8x1xf32>
    %365 = arith.mulf %82, %330 : vector<8x8xf32>
    %cst_76 = arith.constant dense<0.000000e+00> : vector<8xf32>
    %366 = vector.multi_reduction <add>, %365, %cst_76 [1] : vector<8x8xf32> to vector<8xf32>
    %367 = vector.shape_cast %366 : vector<8xf32> to vector<8x1xf32>
    %368 = arith.mulf %85, %330 : vector<8x8xf32>
    %cst_77 = arith.constant dense<0.000000e+00> : vector<8xf32>
    %369 = vector.multi_reduction <add>, %368, %cst_77 [1] : vector<8x8xf32> to vector<8xf32>
    %370 = vector.shape_cast %369 : vector<8xf32> to vector<8x1xf32>
    %371 = arith.mulf %88, %330 : vector<8x8xf32>
    %cst_78 = arith.constant dense<0.000000e+00> : vector<8xf32>
    %372 = vector.multi_reduction <add>, %371, %cst_78 [1] : vector<8x8xf32> to vector<8xf32>
    %373 = vector.shape_cast %372 : vector<8xf32> to vector<8x1xf32>
    %374 = arith.mulf %91, %330 : vector<8x8xf32>
    %cst_79 = arith.constant dense<0.000000e+00> : vector<8xf32>
    %375 = vector.multi_reduction <add>, %374, %cst_79 [1] : vector<8x8xf32> to vector<8xf32>
    %376 = vector.shape_cast %375 : vector<8xf32> to vector<8x1xf32>
    %377 = arith.mulf %94, %330 : vector<8x8xf32>
    %cst_80 = arith.constant dense<0.000000e+00> : vector<8xf32>
    %378 = vector.multi_reduction <add>, %377, %cst_80 [1] : vector<8x8xf32> to vector<8xf32>
    %379 = vector.shape_cast %378 : vector<8xf32> to vector<8x1xf32>
    %380 = arith.mulf %97, %330 : vector<8x8xf32>
    %cst_81 = arith.constant dense<0.000000e+00> : vector<8xf32>
    %381 = vector.multi_reduction <add>, %380, %cst_81 [1] : vector<8x8xf32> to vector<8xf32>
    %382 = vector.shape_cast %381 : vector<8xf32> to vector<8x1xf32>
    %383 = arith.mulf %100, %330 : vector<8x8xf32>
    %cst_82 = arith.constant dense<0.000000e+00> : vector<8xf32>
    %384 = vector.multi_reduction <add>, %383, %cst_82 [1] : vector<8x8xf32> to vector<8xf32>
    %385 = vector.shape_cast %384 : vector<8xf32> to vector<8x1xf32>
    %386 = arith.subf %364, %39 : vector<8x1xf32>
    %387 = math.absf %386 : vector<8x1xf32>
    %388 = arith.subf %367, %40 : vector<8x1xf32>
    %389 = math.absf %388 : vector<8x1xf32>
    %390 = arith.addf %387, %389 : vector<8x1xf32>
    %391 = arith.subf %370, %41 : vector<8x1xf32>
    %392 = math.absf %391 : vector<8x1xf32>
    %393 = arith.addf %390, %392 : vector<8x1xf32>
    %394 = arith.subf %373, %42 : vector<8x1xf32>
    %395 = math.absf %394 : vector<8x1xf32>
    %396 = arith.addf %393, %395 : vector<8x1xf32>
    %397 = arith.subf %376, %43 : vector<8x1xf32>
    %398 = math.absf %397 : vector<8x1xf32>
    %399 = arith.subf %379, %44 : vector<8x1xf32>
    %400 = math.absf %399 : vector<8x1xf32>
    %401 = arith.addf %398, %400 : vector<8x1xf32>
    %402 = arith.subf %382, %45 : vector<8x1xf32>
    %403 = math.absf %402 : vector<8x1xf32>
    %404 = arith.addf %401, %403 : vector<8x1xf32>
    %405 = arith.subf %385, %46 : vector<8x1xf32>
    %406 = math.absf %405 : vector<8x1xf32>
    %407 = arith.addf %404, %406 : vector<8x1xf32>
    %408 = arith.maximumf %364, %39 : vector<8x1xf32>
    %409 = arith.maximumf %367, %40 : vector<8x1xf32>
    %410 = arith.minimumf %370, %41 : vector<8x1xf32>
    %411 = arith.minimumf %373, %42 : vector<8x1xf32>
    %412 = arith.cmpf ogt, %410, %408 : vector<8x1xf32>
    %413 = arith.cmpf ogt, %411, %409 : vector<8x1xf32>
    %414 = arith.andi %412, %413 : vector<8x1xi1>
    %415 = arith.subf %410, %408 : vector<8x1xf32>
    %416 = arith.subf %411, %409 : vector<8x1xf32>
    %417 = arith.mulf %415, %416 : vector<8x1xf32>
    %cst_83 = arith.constant 0.000000e+00 : f32
    %418 = vector.broadcast %cst_83 : f32 to vector<8x1xf32>
    %419 = arith.select %414, %417, %418 : vector<8x1xi1>, vector<8x1xf32>
    %420 = arith.subf %370, %364 : vector<8x1xf32>
    %421 = arith.subf %373, %367 : vector<8x1xf32>
    %422 = arith.mulf %420, %421 : vector<8x1xf32>
    %423 = arith.subf %41, %39 : vector<8x1xf32>
    %424 = arith.subf %42, %40 : vector<8x1xf32>
    %425 = arith.mulf %423, %424 : vector<8x1xf32>
    %426 = arith.addf %422, %425 : vector<8x1xf32>
    %427 = arith.subf %426, %419 : vector<8x1xf32>
    %cst_84 = arith.constant 1.000000e-07 : f32
    %428 = vector.broadcast %cst_84 : f32 to vector<8x1xf32>
    %429 = arith.addf %427, %428 : vector<8x1xf32>
    %430 = arith.divf %419, %429 : vector<8x1xf32>
    %431 = arith.minimumf %364, %39 : vector<8x1xf32>
    %432 = arith.minimumf %367, %40 : vector<8x1xf32>
    %433 = arith.maximumf %370, %41 : vector<8x1xf32>
    %434 = arith.maximumf %373, %42 : vector<8x1xf32>
    %435 = arith.subf %433, %431 : vector<8x1xf32>
    %436 = arith.subf %434, %432 : vector<8x1xf32>
    %437 = arith.mulf %435, %436 : vector<8x1xf32>
    %438 = arith.subf %437, %427 : vector<8x1xf32>
    %cst_85 = arith.constant 1.000000e-07 : f32
    %439 = vector.broadcast %cst_85 : f32 to vector<8x1xf32>
    %440 = arith.addf %437, %439 : vector<8x1xf32>
    %441 = arith.divf %438, %440 : vector<8x1xf32>
    %442 = arith.subf %430, %441 : vector<8x1xf32>
    %cst_86 = arith.constant 1.000000e+00 : f32
    %443 = vector.broadcast %cst_86 : f32 to vector<8x1xf32>
    %444 = arith.subf %443, %442 : vector<8x1xf32>
    %445 = arith.maximumf %376, %43 : vector<8x1xf32>
    %446 = arith.maximumf %379, %44 : vector<8x1xf32>
    %447 = arith.minimumf %382, %45 : vector<8x1xf32>
    %448 = arith.minimumf %385, %46 : vector<8x1xf32>
    %449 = arith.cmpf ogt, %447, %445 : vector<8x1xf32>
    %450 = arith.cmpf ogt, %448, %446 : vector<8x1xf32>
    %451 = arith.andi %449, %450 : vector<8x1xi1>
    %452 = arith.subf %447, %445 : vector<8x1xf32>
    %453 = arith.subf %448, %446 : vector<8x1xf32>
    %454 = arith.mulf %452, %453 : vector<8x1xf32>
    %cst_87 = arith.constant 0.000000e+00 : f32
    %455 = vector.broadcast %cst_87 : f32 to vector<8x1xf32>
    %456 = arith.select %451, %454, %455 : vector<8x1xi1>, vector<8x1xf32>
    %457 = arith.subf %382, %376 : vector<8x1xf32>
    %458 = arith.subf %385, %379 : vector<8x1xf32>
    %459 = arith.mulf %457, %458 : vector<8x1xf32>
    %460 = arith.subf %45, %43 : vector<8x1xf32>
    %461 = arith.subf %46, %44 : vector<8x1xf32>
    %462 = arith.mulf %460, %461 : vector<8x1xf32>
    %463 = arith.addf %459, %462 : vector<8x1xf32>
    %464 = arith.subf %463, %456 : vector<8x1xf32>
    %cst_88 = arith.constant 1.000000e-07 : f32
    %465 = vector.broadcast %cst_88 : f32 to vector<8x1xf32>
    %466 = arith.addf %464, %465 : vector<8x1xf32>
    %467 = arith.divf %456, %466 : vector<8x1xf32>
    %468 = arith.minimumf %376, %43 : vector<8x1xf32>
    %469 = arith.minimumf %379, %44 : vector<8x1xf32>
    %470 = arith.maximumf %382, %45 : vector<8x1xf32>
    %471 = arith.maximumf %385, %46 : vector<8x1xf32>
    %472 = arith.subf %470, %468 : vector<8x1xf32>
    %473 = arith.subf %471, %469 : vector<8x1xf32>
    %474 = arith.mulf %472, %473 : vector<8x1xf32>
    %475 = arith.subf %474, %464 : vector<8x1xf32>
    %cst_89 = arith.constant 1.000000e-07 : f32
    %476 = vector.broadcast %cst_89 : f32 to vector<8x1xf32>
    %477 = arith.addf %474, %476 : vector<8x1xf32>
    %478 = arith.divf %475, %477 : vector<8x1xf32>
    %479 = arith.subf %467, %478 : vector<8x1xf32>
    %cst_90 = arith.constant 1.000000e+00 : f32
    %480 = vector.broadcast %cst_90 : f32 to vector<8x1xf32>
    %481 = arith.subf %480, %479 : vector<8x1xf32>
    %482 = arith.mulf %297, %330 : vector<8x8xf32>
    %cst_91 = arith.constant dense<0.000000e+00> : vector<8xf32>
    %483 = vector.multi_reduction <add>, %482, %cst_91 [1] : vector<8x8xf32> to vector<8xf32>
    %484 = vector.shape_cast %483 : vector<8xf32> to vector<8x1xf32>
    %cst_92 = arith.constant 8.000000e+00 : f32
    %485 = vector.broadcast %cst_92 : f32 to vector<8x1xf32>
    %486 = arith.mulf %485, %484 : vector<8x1xf32>
    %487 = tpu.iota {dimensions = array<i32: 1>} : vector<1x8xi32>
    %c0_i32_93 = arith.constant 0 : i32
    %488 = vector.broadcast %c0_i32_93 : i32 to vector<1x8xi32>
    %489 = arith.cmpi eq, %487, %488 : vector<1x8xi32>
    %490 = arith.extui %489 : vector<1x8xi1> to vector<1x8xi32>
    %491 = arith.sitofp %490 : vector<1x8xi32> to vector<1x8xf32>
    %492 = vector.broadcast %359 : vector<8x1xf32> to vector<8x8xf32>
    %493 = vector.broadcast %491 : vector<1x8xf32> to vector<8x8xf32>
    %494 = arith.mulf %492, %493 : vector<8x8xf32>
    %c1_i32_94 = arith.constant 1 : i32
    %495 = vector.broadcast %c1_i32_94 : i32 to vector<1x8xi32>
    %496 = arith.cmpi eq, %487, %495 : vector<1x8xi32>
    %497 = arith.extui %496 : vector<1x8xi1> to vector<1x8xi32>
    %498 = arith.sitofp %497 : vector<1x8xi32> to vector<1x8xf32>
    %499 = vector.broadcast %361 : vector<8x1xf32> to vector<8x8xf32>
    %500 = vector.broadcast %498 : vector<1x8xf32> to vector<8x8xf32>
    %501 = arith.mulf %499, %500 : vector<8x8xf32>
    %502 = arith.addf %494, %501 : vector<8x8xf32>
    %c2_i32_95 = arith.constant 2 : i32
    %503 = vector.broadcast %c2_i32_95 : i32 to vector<1x8xi32>
    %504 = arith.cmpi eq, %487, %503 : vector<1x8xi32>
    %505 = arith.extui %504 : vector<1x8xi1> to vector<1x8xi32>
    %506 = arith.sitofp %505 : vector<1x8xi32> to vector<1x8xf32>
    %507 = vector.broadcast %396 : vector<8x1xf32> to vector<8x8xf32>
    %508 = vector.broadcast %506 : vector<1x8xf32> to vector<8x8xf32>
    %509 = arith.mulf %507, %508 : vector<8x8xf32>
    %510 = arith.addf %502, %509 : vector<8x8xf32>
    %c3_i32_96 = arith.constant 3 : i32
    %511 = vector.broadcast %c3_i32_96 : i32 to vector<1x8xi32>
    %512 = arith.cmpi eq, %487, %511 : vector<1x8xi32>
    %513 = arith.extui %512 : vector<1x8xi1> to vector<1x8xi32>
    %514 = arith.sitofp %513 : vector<1x8xi32> to vector<1x8xf32>
    %515 = vector.broadcast %444 : vector<8x1xf32> to vector<8x8xf32>
    %516 = vector.broadcast %514 : vector<1x8xf32> to vector<8x8xf32>
    %517 = arith.mulf %515, %516 : vector<8x8xf32>
    %518 = arith.addf %510, %517 : vector<8x8xf32>
    %c4_i32_97 = arith.constant 4 : i32
    %519 = vector.broadcast %c4_i32_97 : i32 to vector<1x8xi32>
    %520 = arith.cmpi eq, %487, %519 : vector<1x8xi32>
    %521 = arith.extui %520 : vector<1x8xi1> to vector<1x8xi32>
    %522 = arith.sitofp %521 : vector<1x8xi32> to vector<1x8xf32>
    %523 = vector.broadcast %407 : vector<8x1xf32> to vector<8x8xf32>
    %524 = vector.broadcast %522 : vector<1x8xf32> to vector<8x8xf32>
    %525 = arith.mulf %523, %524 : vector<8x8xf32>
    %526 = arith.addf %518, %525 : vector<8x8xf32>
    %c5_i32_98 = arith.constant 5 : i32
    %527 = vector.broadcast %c5_i32_98 : i32 to vector<1x8xi32>
    %528 = arith.cmpi eq, %487, %527 : vector<1x8xi32>
    %529 = arith.extui %528 : vector<1x8xi1> to vector<1x8xi32>
    %530 = arith.sitofp %529 : vector<1x8xi32> to vector<1x8xf32>
    %531 = vector.broadcast %481 : vector<8x1xf32> to vector<8x8xf32>
    %532 = vector.broadcast %530 : vector<1x8xf32> to vector<8x8xf32>
    %533 = arith.mulf %531, %532 : vector<8x8xf32>
    %534 = arith.addf %526, %533 : vector<8x8xf32>
    %c6_i32_99 = arith.constant 6 : i32
    %535 = vector.broadcast %c6_i32_99 : i32 to vector<1x8xi32>
    %536 = arith.cmpi eq, %487, %535 : vector<1x8xi32>
    %537 = arith.extui %536 : vector<1x8xi1> to vector<1x8xi32>
    %538 = arith.sitofp %537 : vector<1x8xi32> to vector<1x8xf32>
    %539 = vector.broadcast %486 : vector<8x1xf32> to vector<8x8xf32>
    %540 = vector.broadcast %538 : vector<1x8xf32> to vector<8x8xf32>
    %541 = arith.mulf %539, %540 : vector<8x8xf32>
    %542 = arith.addf %534, %541 : vector<8x8xf32>
    %c0_100 = arith.constant 0 : index
    %c0_101 = arith.constant 0 : index
    %543 = vector.load %arg9[%c0_100, %c0_101] : memref<8x8xf32, #tpu.memory_space<vmem>>, vector<8x8xf32>
    tpu.vector_store %arg9[%c0_100, %c0_101], %542 {strides = array<i32>} : memref<8x8xf32, #tpu.memory_space<vmem>>, vector<8x8xf32>,
    return
  }
  func.func @transform_0(%arg0: i32) -> (i32, i32, i32) {
    %c0_i32 = arith.constant 0 : i32
    %c0_i32_0 = arith.constant 0 : i32
    %c0_i32_1 = arith.constant 0 : i32
    return %arg0, %c0_i32, %c0_i32_0 : i32, i32, i32
  }
  func.func @transform_1(%arg0: i32) -> (i32, i32, i32) {
    %c0_i32 = arith.constant 0 : i32
    %c0_i32_0 = arith.constant 0 : i32
    %c0_i32_1 = arith.constant 0 : i32
    return %arg0, %c0_i32, %c0_i32_0 : i32, i32, i32
  }
  func.func @transform_2(%arg0: i32) -> (i32, i32, i32) {
    %c0_i32 = arith.constant 0 : i32
    %c0_i32_0 = arith.constant 0 : i32
    %c0_i32_1 = arith.constant 0 : i32
    return %arg0, %c0_i32, %c0_i32_0 : i32, i32, i32
  }
  func.func @transform_3(%arg0: i32) -> (i32, i32) {
    %c0_i32 = arith.constant 0 : i32
    %c0_i32_0 = arith.constant 0 : i32
    return %arg0, %c0_i32 : i32, i32
  }
  func.func @transform_4(%arg0: i32) -> (i32, i32) {
    %c0_i32 = arith.constant 0 : i32
    %c0_i32_0 = arith.constant 0 : i32
    return %arg0, %c0_i32 : i32, i32
  }
  func.func @transform_5(%arg0: i32) -> (i32, i32) {
    %c0_i32 = arith.constant 0 : i32
    %c0_i32_0 = arith.constant 0 : i32
    return %arg0, %c0_i32 : i32, i32
  }
  func.func @transform_6(%arg0: i32) -> (i32, i32) {
    %c0_i32 = arith.constant 0 : i32
    %c0_i32_0 = arith.constant 0 : i32
    %c0_i32_1 = arith.constant 0 : i32
    return %c0_i32, %c0_i32_0 : i32, i32
  }
  func.func @transform_7(%arg0: i32) -> (i32, i32) {
    %c0_i32 = arith.constant 0 : i32
    %c0_i32_0 = arith.constant 0 : i32
    %c0_i32_1 = arith.constant 0 : i32
    return %c0_i32, %c0_i32_0 : i32, i32
  }
  func.func @transform_8(%arg0: i32) -> (i32, i32) {
    %c0_i32 = arith.constant 0 : i32
    %c0_i32_0 = arith.constant 0 : i32
    return %arg0, %c0_i32 : i32, i32
  }
}

</mosaic_0001>

<bundles_post_ra>
// kernel: tpu_custom_call.1
= control target key start
LH: loop header
LB: loop body
LE: loop exit
PB: predicated region body
PF: predicated region fallthrough
CT: control target
= control target key end

     0   :  { %s5089_s27 = smov 0   ;;  %s7926_s0 = inlined_call_operand.vmem [shape: f32[16,8,2], index: 0, kind: input, shape index: {}]   ;;  %s7927_s1 = inlined_call_operand.vmem [shape: f32[16,8,8], index: 1, kind: input, shape index: {}]   ;;  %s7928_s2 = inlined_call_operand.vmem [shape: f32[16,16,64], index: 2, kind: input, shape index: {}]   ;;  %s7929_s3 = inlined_call_operand.vmem [shape: s32[16,1], index: 3, kind: input, shape index: {}]   ;;  %s7930_s4 = inlined_call_operand.vmem [shape: f32[16,8], index: 4, kind: input, shape index: {}]   ;;  %s7931_s5 = inlined_call_operand.vmem [shape: s32[16,8], index: 5, kind: input, shape index: {}]   ;;  %s7932_s6 = inlined_call_operand.vmem [shape: f32[64,8], index: 6, kind: input, shape index: {}]   ;;  %s7933_s7 = inlined_call_operand.vmem [shape: s32[1,64], index: 7, kind: input, shape index: {}]   ;;  %s7934_s8 = inlined_call_operand.vmem [shape: f32[16,8], index: 8, kind: output, shape index: {}]  }
   0x1 LB: > { %s4595_s28 = sadd.s32 4294967295, %s5025_s27   ;;  %p4599_p0 = scmp.ge.s32.totalorder %s5025_s27, 1  ;;  %s5025_s27 = sphi %s5089_s27, %s18_s27  }
   0x2   : > { %p313_p1 = scmp.lt.s32.totalorder %s5025_s27, 3 }
   0x4   : > { %p314_p2 = pnand %p4599_p0, %p313_p1 }
   0x6   : > { %317 = sbr.rel (%p314_p2) target bundleno = 2463 (0x99f), region = 52 }
   0xb   : > { %s4600_s29 = sshll.u32 %s4595_s28, 3  ;;  %v7942_v0 = vmov 4   ;;  %v7944_v1 = vmov 0   ;;  %p388_p4 = scmp.lt.s32.totalorder %s4595_s28, 1  ;;  %v7946_v12 = vmov 2   ;;  %v7935_v14 = vmov 5  }
   0xc   : > { %p370_p3 = scmp.lt.s32.totalorder %s4600_s29, 15  ;;  %4833 = vset.pattern.permute.xlu0 %v7942_v0  ;;  %4831 = vset.pattern.permute.xlu1 %v7944_v1  ;;  %s5029_s12 = smov 1   ;;  %v7937_v16 = vmov 1   ;;  %v5033_v17 = vmov 3   ;;  %v7940_v43 = vmov 6   ;;  %v7939_v46 = vlaneseq }
   0xd   : > { %s8691_s28 = smov (!%p388_p4, %s4595_s28), 1  ;;  %v5035_v48 = vmov 7   ;;  %s5036_s26 = smov 127   ;;  %vm8083_vm1 = vcmask 523264   ;;  %vm8081_vm2 = vmmov 0  }
   0xe   : > { %s8689_s29 = smov (!%p370_p3, %s4600_s29), 15  ;;  %s5107_s13 = sshll.u32 %s8691_s28, 3  ;;  %v5163_v49 = vshrl.u32 %v7939_v46, 7 }
   0xf   : > { %s4601_s30 = sshll.u32 %s8689_s29, 3  ;;  %s5113_s16 = scalar_lea.vmem %s7930_s4, %s5107_s13 }
  0x10   : > { %s373_s11 = scalar_lea.vmem %s7926_s0, %s4601_s30  ;;  %s5119_s19 = scalar_lea.vmem %s7929_s3, %s5107_s13  ;;  %v5122_v10 = vld [vmem:[%s5113_s16] sm:$0xff]  ;;  %8174 = vst [vmem:[#allocation4_spill] sm:$0xff] %v5163_v49  ;;  %v5175_v51 = vsub.s32 0, %v5163_v49  ;;  %v5178_v52 = vsub.s32 1, %v5163_v49  ;;  %v5181_v53 = vsub.s32 3, %v5163_v49  ;;  %v5184_v55 = vsub.s32 2, %v5163_v49 }
  0x11   : > { %v408_v2 = vld [vmem:[%s373_s11 + $0x10] sm:$0xff]  ;;  %v406_v3 = vld [vmem:[%s373_s11] sm:$0xff]  ;;  %v409_v4 = vld [vmem:[%s373_s11 + $0x18] sm:$0xff]  ;;  %s399_s22 = scalar_lea.vmem %s7931_s5, %s5107_s13  ;;  %s5172_s25 = scalar_lea.vmem %s7927_s1, %s4601_s30  ;;  %v5205_v62 = vsub.s32 5, %v5163_v49  ;;  %v5208_v63 = vsub.s32 4, %v5163_v49 }
  0x12   : > { %426 = vrot.lane.b32.xlu1 %v408_v2, %s5029_s12  ;;  %422 = vrot.lane.b32.xlu0 %v406_v3, %s5029_s12  ;;  %v407_v5 = vld [vmem:[%s373_s11 + $0x8] sm:$0xff]  ;;  %v410_v7 = vld [vmem:[%s373_s11 + $0x20] sm:$0xff]  ;;  %8175 = vst [vmem:[#allocation5_spill] sm:$0xff] %v5175_v51  ;;  %8176 = vst [vmem:[#allocation6_spill] sm:$0xff] %v5178_v52  ;;  %s5037_s28 = smov 126   ;;  %s5038_s30 = smov 125  }
  0x13   : > { %v411_v6 = vld [vmem:[%s373_s11 + $0x28] sm:$0xff]  ;;  %v413_v8 = vld [vmem:[%s373_s11 + $0x38] sm:$0xff]  ;;  %v412_v9 = vld [vmem:[%s373_s11 + $0x30] sm:$0xff]  ;;  %8177 = vst [vmem:[#allocation7_spill] sm:$0xff] %v5181_v53  ;;  %s4637_s9 = sshll.u32 %s8689_s29, 4  ;;  %s5042_s18 = smov 2  }
  0x14   : > { %v404_v11 = vld [vmem:[%s5119_s19] sm:$0xff]  ;;  %8178 = vst [vmem:[#allocation8_spill] sm:$0xff] %v5184_v55  ;;  %v5199_v60 = vld [vmem:[%s5172_s25 + $0x8] sm:$0xff]  ;;  %8183 = vst [vmem:[#allocation13_spill] sm:$0xff] %v5205_v62 }
  0x15   : > { %vm454_vm0 = vcmp.eq.s32.totalorder %v404_v11, 1  ;;  %v5136_v15 = vld [vmem:[%s399_s22] sm:$0xff]  ;;  %8184 = vst [vmem:[#allocation14_spill] sm:$0xff] %v5208_v63 }
  0x16   : > { %428 = vrot.lane.b32.xlu1 %v409_v4, %s5029_s12  ;;  %424 = vrot.lane.b32.xlu0 %v407_v5, %s5029_s12  ;;  %v463_v13 = vsel %vm454_vm0, 1, %v7944_v1  ;;  %v5196_v59 = vld [vmem:[%s5172_s25] sm:$0xff] }
  0x1a   : > { %432 = vrot.lane.b32.xlu1 %v411_v6, %s5029_s12  ;;  %430 = vrot.lane.b32.xlu0 %v410_v7, %s5029_s12 }
  0x1e   : > { %436 = vrot.lane.b32.xlu1 %v413_v8, %s5029_s12  ;;  %434 = vrot.lane.b32.xlu0 %v412_v9, %s5029_s12  ;;  %s5411_s12 = scalar_lea.vmem %s7928_s2, %s4637_s9 }
  0x22   : > { %638 = vperm.xlu1 %4831, %v5122_v10   ;;  %994 = vperm.xlu0 %4833, %v5122_v10  }
  0x26   : > { %4832 = vset.pattern.permute.xlu1 %v7946_v12  ;;  %4834 = vset.pattern.permute.xlu0 %v7944_v1 }
  0x27   : > { %796 = vperm.xlu1 %4832, %v5122_v10   ;;  %465 = vperm.xlu0 %4834, %v463_v13  }
  0x2b   : > { %4835 = vset.pattern.permute.xlu1 %v7935_v14  ;;  %2368 = vperm.xlu0 %4834, %v5136_v15  }
  0x2c   : > { %1053 = vperm.xlu1 %4835, %v5122_v10  }
  0x2f   : > { %4836 = vset.pattern.permute.xlu0 %v5033_v17 }
  0x30   : > { %4837 = vset.pattern.permute.xlu1 %v7937_v16  ;;  %895 = vperm.xlu0 %4836, %v5122_v10  }
  0x31   : > { %2379 = vperm.xlu1 %4837, %v5136_v15  }
  0x34   : > { %2403 = vperm.xlu0 %4836, %v5136_v15  }
  0x35   : > { %4838 = vset.pattern.permute.xlu1 %v7946_v12 }
  0x36   : > { %2391 = vperm.xlu1 %4838, %v5136_v15  }
  0x38   : > { %4839 = vset.pattern.permute.xlu0 %v7937_v16 }
  0x39   : > { %697 = vperm.xlu0 %4839, %v5122_v10  }
  0x3a   : > { %4840 = vset.pattern.permute.xlu1 %v7942_v0  ;;  %v5450_v0 = vld [vmem:[%s5411_s12 + $0x28] sm:$0xff] }
  0x3b   : > { %2415 = vperm.xlu1 %4840, %v5136_v15  }
  0x3f   : > { %4841 = vset.pattern.permute.xlu1 %v7935_v14 }
  0x40   : > { %2427 = vperm.xlu1 %4841, %v5136_v15  }
  0x44   : > { %4842 = vset.pattern.permute.xlu1 %v7937_v16 }
  0x84   : > { %v427_v18 = vpop.permute.xlu1 %426  ;;  %v423_v20 = vpop.permute.xlu0 %422 }
  0x85   : > { %v448_v19 = vsub.f32 %v408_v2, %v427_v18  ;;  %v446_v21 = vsub.f32 %v406_v3, %v423_v20  ;;  %v5233_v18 = vsub.s32 7, %v5163_v49  ;;  %v5241_v20 = vld [vmem:[%s5172_s25 + $0x20] sm:$0xff] }
  0x87   : > { %483 = vperm.xlu0 %4839, %v448_v19   ;;  %477 = vperm.xlu1 %4842, %v446_v21   ;;  %v455_v37 = vsub.f32 0.0, %v446_v21  ;;  %v457_v39 = vsub.f32 0.0, %v448_v19  ;;  %8188 = vst [vmem:[#allocation18_spill] sm:$0xff] %v5233_v18  ;;  %v5236_v19 = vsub.s32 6, %v5163_v49  ;;  %v5244_v21 = vld [vmem:[%s5172_s25 + $0x28] sm:$0xff] }
  0x88   : > { %v429_v22 = vpop.permute.xlu1 %428  ;;  %v425_v23 = vpop.permute.xlu0 %424 }
  0x89   : > { %v447_v24 = vsub.f32 %v407_v5, %v425_v23  ;;  %v449_v27 = vsub.f32 %v409_v4, %v429_v22  ;;  %v5215_v4 = vld [vmem:[%s5172_s25 + $0x10] sm:$0xff]  ;;  %v5218_v5 = vld [vmem:[%s5172_s25 + $0x18] sm:$0xff]  ;;  %8189 = vst [vmem:[#allocation19_spill] sm:$0xff] %v5236_v19 }
  0x8b   : > { %480 = vperm.xlu1 %4842, %v447_v24   ;;  %v456_v32 = vsub.f32 0.0, %v447_v24  ;;  %v458_v34 = vsub.f32 0.0, %v449_v27 }
  0x8c   : > { %v433_v25 = vpop.permute.xlu1 %432  ;;  %v431_v28 = vpop.permute.xlu0 %430 }
  0x8d   : > { %v451_v26 = vsub.f32 %v411_v6, %v433_v25  ;;  %v450_v31 = vsub.f32 %v410_v7, %v431_v28 }
  0x8f   : > { %492 = vperm.xlu0 %4839, %v451_v26   ;;  %486 = vperm.xlu1 %4842, %v449_v27   ;;  %v460_v36 = vsub.f32 0.0, %v451_v26  ;;  %v459_v41 = vsub.f32 0.0, %v450_v31 }
  0x90   : > { %v437_v29 = vpop.permute.xlu1 %436  ;;  %v435_v33 = vpop.permute.xlu0 %434 }
  0x91   : > { %v453_v30 = vsub.f32 %v413_v8, %v437_v29  ;;  %v452_v35 = vsub.f32 %v412_v9, %v435_v33 }
  0x93   : > { %498 = vperm.xlu0 %4839, %v453_v30   ;;  %489 = vperm.xlu1 %4842, %v450_v31   ;;  %v462_v38 = vsub.f32 0.0, %v453_v30  ;;  %v461_v44 = vsub.f32 0.0, %v452_v35  ;;  %v5265_v31 = vld [vmem:[%s5172_s25 + $0x30] sm:$0xff] }
  0x97   : > { %561 = vperm.xlu0 %4839, %v456_v32   ;;  %495 = vperm.xlu1 %4842, %v452_v35   ;;  %v5268_v32 = vld [vmem:[%s5172_s25 + $0x38] sm:$0xff] }
  0x9b   : > { %567 = vperm.xlu0 %4839, %v458_v34   ;;  %558 = vperm.xlu1 %4842, %v455_v37  }
  0x9d   : > { %v5153_v40 = vpop.permute.xlu0 %994  ;;  %v5220_v6 = vpop.permute.xlu1 %638 }
  0x9e   : > { %8172 = vst [vmem:[#allocation2_spill] sm:$0xff] %v5153_v40  ;;  %8185 = vst [vmem:[#allocation15_spill] sm:$0xff] %v5220_v6 }
  0x9f   : > { %573 = vperm.xlu0 %4839, %v460_v36   ;;  %564 = vperm.xlu1 %4842, %v457_v39  }
  0xa2   : > { %v5155_v42 = vpop.permute.xlu0 %465  ;;  %v797_v28 = vpop.permute.xlu1 %796 }
  0xa3   : > { %579 = vperm.xlu0 %4839, %v462_v38   ;;  %8173 = vst [vmem:[#allocation3_spill] sm:$0xff] %v5155_v42  ;;  %570 = vperm.xlu1 %4842, %v459_v41   ;;  %v5259_v29 = vrot.slane %v797_v28, %v5175_v51  ;;  %v5262_v30 = vrot.slane %v797_v28, %v5178_v52  ;;  %v5457_v42 = vld [vmem:[%s5411_s12 + $0x30] sm:$0xff] }
  0xa5   : > { %8192 = vst [vmem:[#allocation22_spill] sm:$0xff] %v5259_v29  ;;  %8193 = vst [vmem:[#allocation23_spill] sm:$0xff] %v5262_v30  ;;  %v838_v37 = vsub.f32 %v5196_v59, %v5259_v29  ;;  %v839_v38 = vsub.f32 %v5199_v60, %v5262_v30  ;;  %v5480_v30 = vld [vmem:[%s5411_s12 + $0x50] sm:$0xff]  ;;  %v8216_v29 = vmov 2  }
  0xa6   : > { %v5158_v45 = vpop.permute.xlu0 %2368 }
  0xa7   : > { %4843 = vset.pattern.permute.xlu0 %v7940_v43  ;;  %576 = vperm.xlu1 %4842, %v461_v44   ;;  %v5281_v44 = vrot.slane %v797_v28, %v5184_v55 }
  0xa9   : > { %8194 = vst [vmem:[#allocation24_spill] sm:$0xff] %v5281_v44 }
  0xab   : > { %v5160_v47 = vpop.permute.xlu0 %895  ;;  %4844 = vset.pattern.permute.xlu1 %v5035_v48  ;;  %v5284_v48 = vrot.slane %v797_v28, %v5181_v53 }
  0xad   : > { %8195 = vst [vmem:[#allocation25_spill] sm:$0xff] %v5284_v48 }
  0xaf   : > { %v5165_v50 = vpop.permute.xlu0 %2403 }
  0xb4   : > { %v698_v54 = vpop.permute.xlu0 %697 }
  0xb5   : > { %v5187_v56 = vrot.slane %v698_v54, %v5178_v52  ;;  %v5190_v57 = vrot.slane %v698_v54, %v5175_v51  ;;  %v5193_v58 = vrot.slane %v698_v54, %v5181_v53  ;;  %v5202_v61 = vrot.slane %v698_v54, %v5184_v55 }
  0xb6   : > { %v5223_v7 = vrot.slane %v698_v54, %v5205_v62  ;;  %v5226_v8 = vrot.slane %v698_v54, %v5208_v63  ;;  %v5247_v22 = vrot.slane %v698_v54, %v5233_v18  ;;  %v5250_v23 = vrot.slane %v698_v54, %v5236_v19 }
  0xb7   : > { %8179 = vst [vmem:[#allocation9_spill] sm:$0xff] %v5187_v56  ;;  %8180 = vst [vmem:[#allocation10_spill] sm:$0xff] %v5190_v57  ;;  %v740_v2 = vsub.f32 %v5199_v60, %v5187_v56  ;;  %v739_v3 = vsub.f32 %v5196_v59, %v5190_v57  ;;  %v742_v13 = vsub.f32 %v5218_v5, %v5193_v58  ;;  %v846_v54 = vand.u32 2147483647, %v838_v37 }
  0xb8   : > { %8181 = vst [vmem:[#allocation11_spill] sm:$0xff] %v5193_v58  ;;  %8182 = vst [vmem:[#allocation12_spill] sm:$0xff] %v5202_v61  ;;  %v741_v17 = vsub.f32 %v5215_v4, %v5202_v61  ;;  %v744_v26 = vsub.f32 %v5244_v21, %v5223_v7  ;;  %v743_v27 = vsub.f32 %v5241_v20, %v5226_v8 }
  0xb9   : > { %8186 = vst [vmem:[#allocation16_spill] sm:$0xff] %v5223_v7  ;;  %8187 = vst [vmem:[#allocation17_spill] sm:$0xff] %v5226_v8  ;;  %v748_v9 = vand.u32 2147483647, %v740_v2  ;;  %v747_v11 = vand.u32 2147483647, %v739_v3  ;;  %v746_v35 = vsub.f32 %v5268_v32, %v5247_v22  ;;  %v745_v36 = vsub.f32 %v5265_v31, %v5250_v23 }
  0xba   : > { %8190 = vst [vmem:[#allocation20_spill] sm:$0xff] %v5247_v22  ;;  %8191 = vst [vmem:[#allocation21_spill] sm:$0xff] %v5250_v23  ;;  %v750_v24 = vand.u32 2147483647, %v742_v13  ;;  %v749_v25 = vand.u32 2147483647, %v741_v17  ;;  %v840_v3 = vsub.f32 %v5215_v4, %v5281_v44  ;;  %v5296_v13 = vrot.slane %v797_v28, %v5205_v62 }
  0xbb   : > { %765 = vrot.lane.b32.xlu0 %v748_v9, %s5036_s26  ;;  %763 = vrot.lane.b32.xlu1 %v747_v11, %s5036_s26  ;;  %v752_v33 = vand.u32 2147483647, %v744_v26  ;;  %v751_v34 = vand.u32 2147483647, %v743_v27  ;;  %v754_v39 = vand.u32 2147483647, %v746_v35  ;;  %v841_v9 = vsub.f32 %v5218_v5, %v5284_v48 }
  0xbc   : > { %v753_v41 = vand.u32 2147483647, %v745_v36  ;;  %v847_v2 = vand.u32 2147483647, %v839_v38  ;;  %v5293_v11 = vrot.slane %v797_v28, %v5208_v63  ;;  %8197 = vst [vmem:[#allocation27_spill] sm:$0xff] %v5296_v13  ;;  %v5301_v17 = vrot.slane %v797_v28, %v5236_v19 }
  0xbd   : > { %v849_v26 = vand.u32 2147483647, %v841_v9  ;;  %v5318_v37 = vrot.slane %v5160_v47, %v5184_v55  ;;  %v5322_v38 = vrot.slane %v5160_v47, %v5175_v51  ;;  %v5336_v9 = vrot.slane %v5160_v47, %v5178_v52 }
  0xbe   : > { %8196 = vst [vmem:[#allocation26_spill] sm:$0xff] %v5293_v11  ;;  %8198 = vst [vmem:[#allocation28_spill] sm:$0xff] %v5301_v17  ;;  %v842_v27 = vsub.f32 %v5241_v20, %v5293_v11  ;;  %v7962_v11 = vmov 0.0   ;;  %v2145_v48 = vsel %vm8083_vm1, %v5450_v0, -inf }
  0xbf   : > { %769 = vrot.lane.b32.xlu0 %v750_v24, %s5036_s26  ;;  %767 = vrot.lane.b32.xlu1 %v749_v25, %s5036_s26  ;;  %v5304_v24 = vrot.slane %v797_v28, %v5233_v18  ;;  %v848_v25 = vand.u32 2147483647, %v840_v3  ;;  %8200 = vst [vmem:[#allocation30_spill] sm:$0xff] %v5318_v37  ;;  %8201 = vst [vmem:[#allocation31_spill] sm:$0xff] %v5322_v38  ;;  %v5332_v3 = vrot.slane %v5160_v47, %v5208_v63 }
  0xc0   : > { %v850_v28 = vand.u32 2147483647, %v842_v27  ;;  %8203 = vst [vmem:[#allocation33_spill] sm:$0xff] %v5336_v9  ;;  %4711 = vmatprep.subr.mxu1 %v7962_v11  ;;  %4692 = vmatprep.subr.mxu0 %v7962_v11 }
  0xc1   : > { %8199 = vst [vmem:[#allocation29_spill] sm:$0xff] %v5304_v24  ;;  %v845_v35 = vsub.f32 %v5268_v32, %v5304_v24  ;;  %8202 = vst [vmem:[#allocation32_spill] sm:$0xff] %v5332_v3 }
  0xc3   : > { %773 = vrot.lane.b32.xlu0 %v752_v33, %s5036_s26  ;;  %771 = vrot.lane.b32.xlu1 %v751_v34, %s5036_s26  ;;  %v843_v33 = vsub.f32 %v5244_v21, %v5296_v13  ;;  %v844_v34 = vsub.f32 %v5265_v31, %v5301_v17  ;;  %v5469_v13 = vld [vmem:[%s5411_s12 + $0x40] sm:$0xff] }
  0xc5   : > { %v851_v36 = vand.u32 2147483647, %v843_v33 }
  0xc7   : > { %777 = vrot.lane.b32.xlu0 %v754_v39, %s5036_s26  ;;  %775 = vrot.lane.b32.xlu1 %v753_v41, %s5036_s26  ;;  %v852_v39 = vand.u32 2147483647, %v844_v34  ;;  %v853_v41 = vand.u32 2147483647, %v845_v35  ;;  %v941_v34 = vsub.f32 %v5241_v20, %v5332_v3  ;;  %v938_v35 = vsub.f32 %v5199_v60, %v5336_v9 }
  0xcb   : > { %862 = vrot.lane.b32.xlu0 %v846_v54, %s5037_s28  ;;  %864 = vrot.lane.b32.xlu1 %v847_v2, %s5037_s28  ;;  %v939_v54 = vsub.f32 %v5215_v4, %v5318_v37  ;;  %v937_v2 = vsub.f32 %v5196_v59, %v5322_v38 }
  0xcd   : > { %v947_v27 = vand.u32 2147483647, %v939_v54  ;;  %v945_v33 = vand.u32 2147483647, %v937_v2  ;;  %v946_v54 = vand.u32 2147483647, %v938_v35 }
  0xcf   : > { %866 = vrot.lane.b32.xlu0 %v848_v25, %s5037_s28  ;;  %868 = vrot.lane.b32.xlu1 %v849_v26, %s5037_s28  ;;  %v5342_v25 = vrot.slane %v5160_v47, %v5236_v19  ;;  %v5346_v26 = vrot.slane %v5160_v47, %v5181_v53 }
  0xd1   : > { %8204 = vst [vmem:[#allocation34_spill] sm:$0xff] %v5342_v25  ;;  %8205 = vst [vmem:[#allocation35_spill] sm:$0xff] %v5346_v26  ;;  %v943_v2 = vsub.f32 %v5265_v31, %v5342_v25  ;;  %v940_v14 = vsub.f32 %v5218_v5, %v5346_v26 }
  0xd3   : > { %870 = vrot.lane.b32.xlu0 %v850_v28, %s5037_s28  ;;  %872 = vrot.lane.b32.xlu1 %v851_v36, %s5037_s28  ;;  %v1054_v28 = vpop.permute.xlu1 %1053  ;;  %v948_v16 = vand.u32 2147483647, %v940_v14 }
  0xd4   : > { %v5355_v36 = vrot.slane %v1054_v28, %v5178_v52  ;;  %v5383_v14 = vrot.slane %v1054_v28, %v5175_v51  ;;  %v5444_v43 = vrot.slane %v1054_v28, %v5233_v18 }
  0xd6   : > { %8206 = vst [vmem:[#allocation36_spill] sm:$0xff] %v5355_v36  ;;  %8210 = vst [vmem:[#allocation40_spill] sm:$0xff] %v5383_v14 }
  0xd7   : > { %874 = vrot.lane.b32.xlu0 %v852_v39, %s5037_s28  ;;  %876 = vrot.lane.b32.xlu1 %v853_v41, %s5037_s28  ;;  %v5359_v39 = vrot.slane %v5160_v47, %v5205_v62  ;;  %v949_v41 = vand.u32 2147483647, %v941_v34  ;;  %v5373_v34 = vrot.slane %v5160_v47, %v5233_v18  ;;  %v5388_v47 = vrot.slane %v1054_v28, %v5236_v19 }
  0xd8   : > { %8215 = vst [vmem:[#allocation45_spill] sm:$0xff] %v5444_v43 }
  0xd9   : > { %8207 = vst [vmem:[#allocation37_spill] sm:$0xff] %v5359_v39  ;;  %v942_v46 = vsub.f32 %v5244_v21, %v5359_v39  ;;  %8208 = vst [vmem:[#allocation38_spill] sm:$0xff] %v5373_v34 }
  0xda   : > { %8211 = vst [vmem:[#allocation41_spill] sm:$0xff] %v5388_v47 }
  0xdb   : > { %965 = vrot.lane.b32.xlu0 %v947_v27, %s5038_s30  ;;  %961 = vrot.lane.b32.xlu1 %v945_v33, %s5038_s30  ;;  %v1096_v27 = vsub.f32 %v5199_v60, %v5355_v36  ;;  %v951_v33 = vand.u32 2147483647, %v943_v2  ;;  %v5380_v60 = vrot.slane %v1054_v28, %v5208_v63  ;;  %v1095_v2 = vsub.f32 %v5196_v59, %v5383_v14 }
  0xdd   : > { %v1104_v35 = vand.u32 2147483647, %v1096_v27  ;;  %8209 = vst [vmem:[#allocation39_spill] sm:$0xff] %v5380_v60  ;;  %v5395_v27 = vrot.slane %v1054_v28, %v5184_v55 }
  0xdf   : > { %969 = vrot.lane.b32.xlu0 %v949_v41, %s5038_s30  ;;  %963 = vrot.lane.b32.xlu1 %v946_v54, %s5038_s30  ;;  %v950_v41 = vand.u32 2147483647, %v942_v46  ;;  %v944_v54 = vsub.f32 %v5268_v32, %v5373_v34  ;;  %v1099_v46 = vsub.f32 %v5241_v20, %v5380_v60  ;;  %8212 = vst [vmem:[#allocation42_spill] sm:$0xff] %v5395_v27 }
  0xe0   : > { %v1097_v20 = vsub.f32 %v5215_v4, %v5395_v27 }
  0xe3   : > { %973 = vrot.lane.b32.xlu0 %v951_v33, %s5038_s30  ;;  %967 = vrot.lane.b32.xlu1 %v948_v16, %s5038_s30  ;;  %v952_v16 = vand.u32 2147483647, %v944_v54  ;;  %v5399_v33 = vpop.permute.xlu1 %2379  ;;  %v1101_v54 = vsub.f32 %v5265_v31, %v5388_v47  ;;  %v5414_v31 = vrot.slane %v1054_v28, %v5181_v53 }
  0xe5   : > { %v1109_v59 = vand.u32 2147483647, %v1101_v54  ;;  %8213 = vst [vmem:[#allocation43_spill] sm:$0xff] %v5414_v31  ;;  %v5432_v54 = vld [vmem:[%s5411_s12 + $0x10] sm:$0xff] }
  0xe7   : > { %1121 = vrot.lane.b32.xlu0 %v1104_v35, %s5036_s26  ;;  %971 = vrot.lane.b32.xlu1 %v950_v41, %s5038_s30  ;;  %v1107_v35 = vand.u32 2147483647, %v1099_v46  ;;  %v1103_v41 = vand.u32 2147483647, %v1095_v2  ;;  %v5416_v4 = vpop.permute.xlu1 %2391  ;;  %v5421_v46 = vld [vmem:[%s5411_s12] sm:$0xff]  ;;  %v5424_v2 = vld [vmem:[%s5411_s12 + $0x8] sm:$0xff] }
  0xeb   : > { %2439 = vperm.xlu0 %4843, %v5136_v15   ;;  %975 = vrot.lane.b32.xlu1 %v952_v16, %s5038_s30  ;;  %v1105_v16 = vand.u32 2147483647, %v1097_v20  ;;  %v5435_v20 = vld [vmem:[%s5411_s12 + $0x18] sm:$0xff]  ;;  %v5452_v1 = vpop.permute.xlu1 %2415 }
  0xef   : > { %1127 = vrot.lane.b32.xlu0 %v1107_v35, %s5036_s26  ;;  %1119 = vrot.lane.b32.xlu1 %v1103_v41, %s5036_s26  ;;  %v5427_v35 = vrot.slane %v1054_v28, %v5205_v62  ;;  %v1098_v41 = vsub.f32 %v5218_v5, %v5414_v31  ;;  %v5447_v5 = vld [vmem:[%s5411_s12 + $0x20] sm:$0xff]  ;;  %v2136_v28 = vsel %vm8083_vm1, %v5435_v20, -inf  ;;  %v5496_v40 = vpop.permute.xlu1 %2427  ;;  %v5513_v31 = vld [vmem:[%s5411_s12 + $0x78] sm:$0xff] }
  0xf0   : > { %v2144_v44 = vsel %vm8083_vm1, %v5447_v5, -inf  ;;  %8219 = vst [vmem:[#allocation48_spill] sm:$0xff] %v5513_v31 }
  0xf1   : > { %8214 = vst [vmem:[#allocation44_spill] sm:$0xff] %v5427_v35  ;;  %v1100_v12 = vsub.f32 %v5244_v21, %v5427_v35  ;;  %v1106_v17 = vand.u32 2147483647, %v1098_v41  ;;  %v5472_v21 = vld [vmem:[%s5411_s12 + $0x48] sm:$0xff]  ;;  %v5483_v41 = vld [vmem:[%s5411_s12 + $0x58] sm:$0xff]  ;;  %v2146_v27 = vmax.f32 %v2144_v44, %v2145_v48  ;;  %v5510_v35 = vld [vmem:[%s5411_s12 + $0x70] sm:$0xff] }
  0xf2   : > { %v5507_v44 = vld [vmem:[%s5411_s12 + $0x68] sm:$0xff]  ;;  %8218 = vst [vmem:[#allocation47_spill] sm:$0xff] %v5510_v35 }
  0xf3   : > { %1131 = vrot.lane.b32.xlu0 %v1109_v59, %s5036_s26  ;;  %1123 = vrot.lane.b32.xlu1 %v1105_v16, %s5036_s26  ;;  %v2126_v59 = vsel %vm8083_vm1, %v5421_v46, -inf  ;;  %v2127_v16 = vsel %vm8083_vm1, %v5424_v2, -inf  ;;  %v1108_v47 = vand.u32 2147483647, %v1100_v12  ;;  %v2172_v12 = vsel %vm8083_vm1, %v5483_v41, -inf  ;;  %8217 = vst [vmem:[#allocation46_spill] sm:$0xff] %v5507_v44 }
  0xf4   : > { %v2128_v24 = vmax.f32 %v2126_v59, %v2127_v16  ;;  %v2153_v16 = vsel %vm8083_vm1, %v5457_v42, -inf  ;;  %v2181_v34 = vsel %vm8083_vm1, %v5507_v44, -inf }
  0xf6   : > { %v2129_v60 = vrot.slane %v2128_v24, 4 }
  0xf7   : > { %1152 = vperm.xlu0 %4843, %v5122_v10   ;;  %2451 = vperm.xlu1 %4844, %v5136_v15   ;;  %v5460_v10 = vld [vmem:[%s5411_s12 + $0x38] sm:$0xff]  ;;  %v2135_v15 = vsel %vm8083_vm1, %v5432_v54, -inf }
  0xf8   : > { %v2137_v59 = vmax.f32 %v2135_v15, %v2136_v28  ;;  %v2154_v11 = vsel %vm8083_vm1, %v5460_v10, -inf  ;;  %v2162_v15 = vsel %vm8083_vm1, %v5469_v13, -inf  ;;  %v2163_v28 = vsel %vm8083_vm1, %v5472_v21, -inf }
  0xf9   : > { %v2155_v6 = vmax.f32 %v2153_v16, %v2154_v11  ;;  %v2164_v14 = vmax.f32 %v2162_v15, %v2163_v28  ;;  %v2130_v11 = vmax.f32 %v2128_v24, %v2129_v60  ;;  %v2147_v16 = vrot.slane %v2146_v27, 4 }
  0xfa   : > { %v2138_v48 = vrot.slane %v2137_v59, 4  ;;  %v2189_v28 = vsel %vm8083_vm1, %v5510_v35, -inf  ;;  %v2190_v24 = vsel %vm8083_vm1, %v5513_v31, -inf }
  0xfb   : > { %1125 = vrot.lane.b32.xlu1 %v1106_v17, %s5036_s26  ;;  %4845 = vset.pattern.permute.xlu0 %v8216_v29  ;;  %v1102_v17 = vsub.f32 %v5268_v32, %v5444_v43  ;;  %v2171_v29 = vsel %vm8083_vm1, %v5480_v30, -inf  ;;  %v5504_v32 = vld [vmem:[%s5411_s12 + $0x60] sm:$0xff]  ;;  %v2156_v23 = vrot.slane %v2155_v6, 4  ;;  %v2148_v60 = vmax.f32 %v2146_v27, %v2147_v16 }
  0xfc   : > { %v2173_v36 = vmax.f32 %v2171_v29, %v2172_v12  ;;  %v2139_v15 = vmax.f32 %v2137_v59, %v2138_v48  ;;  %v2131_v29 = vrot.slane %v2130_v11, 2  ;;  %v2191_v7 = vmax.f32 %v2189_v28, %v2190_v24 }
  0xfd   : > { %v1110_v43 = vand.u32 2147483647, %v1102_v17  ;;  %v2165_v17 = vrot.slane %v2164_v14, 4  ;;  %v2157_v3 = vmax.f32 %v2155_v6, %v2156_v23  ;;  %v2149_v48 = vrot.slane %v2148_v60, 2 }
  0xfe   : > { %v2174_v12 = vrot.slane %v2173_v36, 4  ;;  %v2140_v39 = vrot.slane %v2139_v15, 2  ;;  %v2132_v59 = vmax.f32 %v2130_v11, %v2131_v29  ;;  %v2192_v16 = vrot.slane %v2191_v7, 4 }
  0xff   : > { %1129 = vrot.lane.b32.xlu1 %v1108_v47, %s5036_s26  ;;  %v2180_v47 = vsel %vm8083_vm1, %v5504_v32, -inf  ;;  %v2158_v58 = vrot.slane %v2157_v3, 2 }
 0x100   : > { %v2175_v37 = vmax.f32 %v2173_v36, %v2174_v12  ;;  %v2141_v27 = vmax.f32 %v2139_v15, %v2140_v39  ;;  %v2193_v11 = vmax.f32 %v2191_v7, %v2192_v16 }
 0x101   : > { %v2159_v28 = vmax.f32 %v2157_v3, %v2158_v58 }
 0x102   : > { %v5515_v25 = vpop.permute.xlu1 %477  ;;  %v5528_v8 = vpop.permute.xlu0 %483  ;;  %v2176_v6 = vrot.slane %v2175_v37, 2 }
 0x103   : > { %8220 = vst [vmem:[#allocation49_spill] sm:$0xff] %v5515_v25  ;;  %1133 = vrot.lane.b32.xlu1 %v1110_v43, %s5036_s26  ;;  %v2182_v25 = vmax.f32 %v2180_v47, %v2181_v34  ;;  %8222 = vst [vmem:[#allocation51_spill] sm:$0xff] %v5528_v8  ;;  %v2166_v43 = vmax.f32 %v2164_v14, %v2165_v17  ;;  %v2133_v47 = vrot.slane %v2132_v59, 1  ;;  %v2142_v14 = vrot.slane %v2141_v27, 1 }
 0x104   : > { %v2177_v12 = vmax.f32 %v2175_v37, %v2176_v6  ;;  %v2160_v15 = vrot.slane %v2159_v28, 1 }
 0x105   : > { %v2183_v61 = vrot.slane %v2182_v25, 4  ;;  %v2167_v34 = vrot.slane %v2166_v43, 2  ;;  %v5538_v24 = vmax.f32 %v2132_v59, %v2133_v47 }
 0x106   : > { %v5526_v22 = vpop.permute.xlu1 %480  ;;  %v2178_v58 = vrot.slane %v2177_v12, 1 }
 0x107   : > { %8221 = vst [vmem:[#allocation50_spill] sm:$0xff] %v5526_v22  ;;  %v2150_v22 = vmax.f32 %v2148_v60, %v2149_v48  ;;  %v2184_v23 = vmax.f32 %v2182_v25, %v2183_v61  ;;  %v2168_v17 = vmax.f32 %v2166_v43, %v2167_v34  ;;  %v2194_v60 = vrot.slane %v2193_v11, 2 }
 0x108   : > { %v2198_v7 = vsub.f32 %v5421_v46, %v5538_v24  ;;  %v5548_v43 = vmax.f32 %v2159_v28, %v2160_v15  ;;  %v2199_v37 = vsub.f32 %v5424_v2, %v5538_v24  ;;  %v5562_v34 = vmax.f32 %v2177_v12, %v2178_v58 }
 0x109   : > { %v2151_v29 = vrot.slane %v2150_v22, 1  ;;  %v2169_v61 = vrot.slane %v2168_v17, 1 }
 0x10a   : > { %v5530_v26 = vpop.permute.xlu1 %486  ;;  %v5532_v38 = vpop.permute.xlu0 %492 }
 0x10b   : > { %8223 = vst [vmem:[#allocation52_spill] sm:$0xff] %v5530_v26  ;;  %8224 = vst [vmem:[#allocation53_spill] sm:$0xff] %v5532_v38  ;;  %v2185_v38 = vrot.slane %v2184_v23, 2  ;;  %v5542_v26 = vmax.f32 %v2141_v27, %v2142_v14  ;;  %v5544_v25 = vmax.f32 %v2150_v22, %v2151_v29  ;;  %v2195_v27 = vmax.f32 %v2193_v11, %v2194_v60 }
 0x10c   : > { %v5558_v22 = vmax.f32 %v2168_v17, %v2169_v61  ;;  %v2204_v14 = vsub.f32 %v5457_v42, %v5548_v43  ;;  %v2216_v11 = vmul.f32 1.442695, %v2199_v37  ;;  %v2205_v17 = vsub.f32 %v5460_v10, %v5548_v43 }
 0x10d   : > { %v2186_v3 = vmax.f32 %v2184_v23, %v2185_v38  ;;  %v2200_v16 = vsub.f32 %v5432_v54, %v5542_v26  ;;  %v2201_v38 = vsub.f32 %v5435_v20, %v5542_v26  ;;  %v2202_v6 = vsub.f32 %v5447_v5, %v5544_v25 }
 0x10e   : > { %v5534_v8 = vpop.permute.xlu1 %489  ;;  %v5536_v36 = vpop.permute.xlu0 %498  ;;  %v2214_v23 = vmul.f32 1.442695, %v2198_v7  ;;  %v2203_v28 = vsub.f32 %v5450_v0, %v5544_v25  ;;  %v2196_v29 = vrot.slane %v2195_v27, 1  ;;  %v2206_v12 = vsub.f32 %v5469_v13, %v5558_v22 }
 0x10f   : > { %8225 = vst [vmem:[#allocation54_spill] sm:$0xff] %v5534_v8  ;;  %8226 = vst [vmem:[#allocation55_spill] sm:$0xff] %v5536_v36  ;;  %v2187_v47 = vrot.slane %v2186_v3, 1  ;;  %v2218_v15 = vmul.f32 1.442695, %v2200_v16  ;;  %v2207_v60 = vsub.f32 %v5472_v21, %v5558_v22  ;;  %v2208_v37 = vsub.f32 %v5480_v30, %v5562_v34 }
 0x110   : > { %v2220_v61 = vmul.f32 1.442695, %v2201_v38  ;;  %4873 = vpow2.f32 %v2214_v23  ;;  %v2209_v16 = vsub.f32 %v5483_v41, %v5562_v34  ;;  %v2224_v8 = vmul.f32 1.442695, %v2203_v28 }
 0x111   : > { %v5580_v36 = vmax.f32 %v2186_v3, %v2187_v47  ;;  %4875 = vpow2.f32 %v2216_v11  ;;  %v2228_v38 = vmul.f32 1.442695, %v2205_v17  ;;  %v2690_v3 = vld [vmem:[%s7932_s6 + $0x38] sm:$0xff]  ;;  %v2689_v47 = vld [vmem:[%s7932_s6 + $0x30] sm:$0xff]  ;;  %v2230_v17 = vmul.f32 1.442695, %v2206_v12 }
 0x112   : > { %v5540_v39 = vpop.permute.xlu1 %495  ;;  %v5552_v59 = vpop.permute.xlu0 %561  ;;  %4877 = vpow2.f32 %v2218_v15  ;;  %v5597_v23 = vand.u32 4294901760, %v2690_v3  ;;  %v5599_v28 = vand.u32 4294901760, %v2689_v47  ;;  %v2232_v15 = vmul.f32 1.442695, %v2207_v60 }
 0x113   : > { %8227 = vst [vmem:[#allocation56_spill] sm:$0xff] %v5540_v39  ;;  %8228 = vst [vmem:[#allocation57_spill] sm:$0xff] %v5552_v59  ;;  %v2222_v39 = vmul.f32 1.442695, %v2202_v6  ;;  %v2226_v59 = vmul.f32 1.442695, %v2204_v14  ;;  %4879 = vpow2.f32 %v2220_v61  ;;  %v2210_v11 = vsub.f32 %v5504_v32, %v5580_v36 }
 0x114   : > { %v2688_v6 = vld [vmem:[%s7932_s6 + $0x28] sm:$0xff]  ;;  %8232 = vst [vmem:[#allocation61_spill] sm:$0xff] %v5597_v23  ;;  %8233 = vst [vmem:[#allocation62_spill] sm:$0xff] %v5599_v28  ;;  %v8235_v14 = vmov 0.0   ;;  %v5612_v61 = vsub.f32 %v2690_v3, %v5597_v23  ;;  %4693 = vmatpush3.msra.mxu0 %v5597_v23  ;;  %v2234_v9 = vmul.f32 1.442695, %v2208_v37 }
 0x115   : > { %4727 = vmatprep.mubr.msk.f32.mxu1 %vm8081_vm2, %v8235_v14  ;;  %4708 = vmatprep.mubr.msk.f32.mxu0 %vm8081_vm2, %v8235_v14  ;;  %4881 = vpow2.f32 %v2222_v39  ;;  %v2236_v12 = vmul.f32 1.442695, %v2209_v16  ;;  %v2238_v60 = vmul.f32 1.442695, %v2210_v11 }
 0x116   : > { %v5554_v48 = vpop.permute.xlu1 %558  ;;  %v5576_v58 = vpop.permute.xlu0 %567  ;;  %4883 = vpow2.f32 %v2224_v8  ;;  %8236 = vst [vmem:[#allocation64_spill] sm:$0xff] %v5612_v61  ;;  %v2687_v8 = vld [vmem:[%s7932_s6 + $0x20] sm:$0xff]  ;;  %4694 = vmatprep.subr.mxu0 %v8235_v14 }
 0x117   : > { %8229 = vst [vmem:[#allocation58_spill] sm:$0xff] %v5554_v48  ;;  %8230 = vst [vmem:[#allocation59_spill] sm:$0xff] %v5576_v58  ;;  %v5586_v48 = vmax.f32 %v2195_v27, %v2196_v29  ;;  %v5601_v27 = vand.u32 4294901760, %v2688_v6  ;;  %v2211_v29 = vsub.f32 %v5507_v44, %v5580_v36  ;;  %v5615_v58 = vsub.f32 %v2689_v47, %v5599_v28 }
 0x118   : > { %4885 = vpow2.f32 %v2226_v59  ;;  %4695 = vmatpush3.msra.mxu0 %v5599_v28  ;;  %v8016_v59 = vand.u32 4294901760, %v5612_v61 }
 0x119   : > { %8234 = vst [vmem:[#allocation63_spill] sm:$0xff] %v5601_v27  ;;  %8237 = vst [vmem:[#allocation65_spill] sm:$0xff] %v5615_v58  ;;  %v5623_v56 = vsub.f32 %v2688_v6, %v5601_v27  ;;  %v2212_v39 = vsub.f32 %v5510_v35, %v5586_v48  ;;  %4887 = vpow2.f32 %v2228_v38  ;;  %v8017_v37 = vand.u32 4294901760, %v5615_v58  ;;  %4696 = vmatprep.subr.mxu0 %v8235_v14 }
 0x11a   : > { %v5578_v7 = vpop.permute.xlu1 %564  ;;  %4889 = vpow2.f32 %v2230_v17  ;;  %v2213_v3 = vsub.f32 %v5513_v31, %v5586_v48  ;;  %v2240_v47 = vmul.f32 1.442695, %v2211_v29  ;;  %v5637_v6 = vand.u32 4294901760, %v2687_v8  ;;  %4697 = vmatpush3.msra.mxu0 %v5601_v27  ;;  %v2686_v17 = vld [vmem:[%s7932_s6 + $0x18] sm:$0xff] }
 0x11b   : > { %8231 = vst [vmem:[#allocation60_spill] sm:$0xff] %v5578_v7  ;;  %v5618_v7 = vpop.permute.xlu0 %573  ;;  %8240 = vst [vmem:[#allocation68_spill] sm:$0xff] %v5623_v56  ;;  %4891 = vpow2.f32 %v2232_v15  ;;  %4698 = vmatprep.subr.mxu0 %v8235_v14  ;;  %v2811_v29 = vsub.f32 %v5612_v61, %v8016_v59  ;;  %v2685_v15 = vld [vmem:[%s7932_s6 + $0x10] sm:$0xff]  ;;  %v2684_v59 = vld [vmem:[%s7932_s6 + $0x8] sm:$0xff]  ;;  %v5669_v27 = vand.u32 4294901760, %v2686_v17 }
 0x11c   : > { %8238 = vst [vmem:[#allocation66_spill] sm:$0xff] %v5618_v7  ;;  %8241 = vst [vmem:[#allocation69_spill] sm:$0xff] %v5637_v6  ;;  %4893 = vpow2.f32 %v2234_v9  ;;  %4699 = vmatpush3.msra.mxu0 %v5637_v6  ;;  %v2818_v9 = vsub.f32 %v5615_v58, %v8017_v37  ;;  %v2244_v16 = vmul.f32 1.442695, %v2213_v3  ;;  %v5667_v58 = vsub.f32 %v2687_v8, %v5637_v6  ;;  %v2683_v8 = vld [vmem:[%s7932_s6] sm:$0xff] }
 0x11d   : > { %4895 = vpow2.f32 %v2236_v12  ;;  %4700 = vmatprep.subr.mxu0 %v8235_v14  ;;  %v4874_v12 = vpop.eup %4873  ;;  %v2812_v37 = vand.u32 4294901760, %v2811_v29  ;;  %8246 = vst [vmem:[#allocation73_spill] sm:$0xff] %v5669_v27  ;;  %v5678_v23 = vand.u32 4294901760, %v2684_v59  ;;  %v5697_v6 = vand.u32 4294901760, %v2683_v8 }
 0x11e   : > { %v5620_v57 = vpop.permute.xlu1 %570  ;;  %4897 = vpow2.f32 %v2238_v60  ;;  %v2242_v60 = vmul.f32 1.442695, %v2212_v39  ;;  %v2819_v7 = vand.u32 4294901760, %v2818_v9  ;;  %8245 = vst [vmem:[#allocation72_spill] sm:$0xff] %v5667_v58  ;;  %v8032_v9 = vand.u32 4294901760, %v5667_v58  ;;  %4701 = vmatpush3.msra.mxu0 %v5669_v27 }
 0x11f   : > { %8239 = vst [vmem:[#allocation67_spill] sm:$0xff] %v5620_v57  ;;  %v5643_v38 = vpop.permute.xlu0 %579  ;;  %4899 = vpow2.f32 %v2240_v47  ;;  %v5671_v47 = vand.u32 4294901760, %v2685_v15  ;;  %4712 = vmatpush3.msra.mxu1 %v2812_v37  ;;  %8250 = vst [vmem:[#allocation77_spill] sm:$0xff] %v5678_v23  ;;  %4702 = vmatprep.subr.mxu0 %v8235_v14 }
 0x120   : > { %8242 = vst [vmem:[#allocation70_spill] sm:$0xff] %v5643_v38  ;;  %v4876_v38 = vpop.eup %4875  ;;  %4901 = vpow2.f32 %v2242_v60  ;;  %4713 = vmatprep.subr.mxu1 %v8235_v14  ;;  %v2832_v37 = vsub.f32 %v5667_v58, %v8032_v9  ;;  %v5695_v60 = vsub.f32 %v2684_v59, %v5678_v23  ;;  %8254 = vst [vmem:[#allocation81_spill] sm:$0xff] %v5697_v6 }
 0x121   : > { %v4878_v61 = vpop.eup %4877  ;;  %8247 = vst [vmem:[#allocation74_spill] sm:$0xff] %v5671_v47  ;;  %4903 = vpow2.f32 %v2244_v16  ;;  %4714 = vmatpush3.msra.mxu1 %v2819_v7  ;;  %4703 = vmatpush3.msra.mxu0 %v5671_v47  ;;  %v2247_v31 = vsel %vm8083_vm1, %v4876_v38, 0.0 }
 0x122   : > { %v5645_v11 = vpop.permute.xlu1 %576  ;;  %v4880_v39 = vpop.eup %4879  ;;  %4715 = vmatprep.subr.mxu1 %v8235_v14  ;;  %8253 = vst [vmem:[#allocation80_spill] sm:$0xff] %v5695_v60  ;;  %4704 = vmatprep.subr.mxu0 %v8235_v14  ;;  %v8260_v35 = vand.u32 4294901760, %v5695_v60 }
 0x123   : > { %8243 = vst [vmem:[#allocation71_spill] sm:$0xff] %v5645_v11  ;;  %v8244_v11 = vand.u32 4294901760, %v5623_v56  ;;  %4705 = vmatpush3.msra.mxu0 %v5678_v23 }
 0x124   : > { %v2853_v44 = vsub.f32 %v5695_v60, %v8260_v35  ;;  %4706 = vmatprep.subr.mxu0 %v8235_v14 }
 0x125   : > { %v2825_v57 = vsub.f32 %v5623_v56, %v8244_v11  ;;  %v4882_v11 = vpop.eup %4881  ;;  %4707 = vmatpush3.msra.mxu0 %v5697_v6 }
 0x126   : > { %v4884_v56 = vpop.eup %4883  ;;  %v2264_v38 = vsel %vm8083_vm1, %v4882_v11, 0.0  ;;  %4730 = vmatprep.subr.mxu0 %v8235_v14 }
 0x127   : > { %v2826_v29 = vand.u32 4294901760, %v2825_v57  ;;  %v5688_v57 = vsub.f32 %v2686_v17, %v5669_v27  ;;  %v2833_v17 = vand.u32 4294901760, %v2832_v37 }
 0x129   : > { %8251 = vst [vmem:[#allocation78_spill] sm:$0xff] %v5688_v57  ;;  %4716 = vmatpush3.msra.mxu1 %v2826_v29  ;;  %v8047_v58 = vand.u32 4294901760, %v5688_v57 }
 0x12a   : > { %4717 = vmatprep.subr.mxu1 %v8235_v14 }
 0x12b   : > { %4718 = vmatpush3.msra.mxu1 %v2833_v17  ;;  %v2839_v37 = vsub.f32 %v5688_v57, %v8047_v58  ;;  %v2256_v57 = vsel %vm8083_vm1, %v4880_v39, 0.0 }
 0x12c   : > { %4719 = vmatprep.subr.mxu1 %v8235_v14 }
 0x12d   : > { %v5673_v3 = vpop.permute.xlu1 %763  ;;  %v5675_v28 = vpop.permute.xlu0 %765 }
 0x12e   : > { %8248 = vst [vmem:[#allocation75_spill] sm:$0xff] %v5673_v3  ;;  %8249 = vst [vmem:[#allocation76_spill] sm:$0xff] %v5675_v28  ;;  %v5691_v3 = vsub.f32 %v2685_v15, %v5671_v47  ;;  %v4886_v28 = vpop.eup %4885  ;;  %v2246_v47 = vsel %vm8083_vm1, %v4874_v12, 0.0 }
 0x12f   : > { %v4888_v7 = vpop.eup %4887  ;;  %v2248_v60 = vadd.f32 %v2247_v31, %v2246_v47 }
 0x130   : > { %8252 = vst [vmem:[#allocation79_spill] sm:$0xff] %v5691_v3  ;;  %v4890_v15 = vpop.eup %4889  ;;  %v8048_v59 = vand.u32 4294901760, %v5691_v3  ;;  %v2274_v39 = vsel %vm8083_vm1, %v4888_v7, 0.0 }
 0x131   : > { %v5700_v16 = vpop.permute.xlu1 %767  ;;  %v5702_v9 = vpop.permute.xlu0 %769 }
 0x132   : > { %8255 = vst [vmem:[#allocation82_spill] sm:$0xff] %v5700_v16  ;;  %8256 = vst [vmem:[#allocation83_spill] sm:$0xff] %v5702_v9  ;;  %v4892_v19 = vpop.eup %4891  ;;  %v5711_v16 = vsub.f32 %v2683_v8, %v5697_v6  ;;  %v2846_v9 = vsub.f32 %v5691_v3, %v8048_v59  ;;  %v2255_v3 = vsel %vm8083_vm1, %v4878_v61, 0.0  ;;  %v2273_v61 = vsel %vm8083_vm1, %v4886_v28, 0.0 }
 0x133   : > { %v4894_v29 = vpop.eup %4893  ;;  %v2257_v11 = vadd.f32 %v2256_v57, %v2255_v3  ;;  %v2283_v18 = vsel %vm8083_vm1, %v4892_v19, 0.0  ;;  %v2249_v57 = vrot.slane %v2248_v60, 4 }
 0x134   : > { %8257 = vst [vmem:[#allocation84_spill] sm:$0xff] %v5711_v16  ;;  %v4896_v17 = vpop.eup %4895  ;;  %v8061_v58 = vand.u32 4294901760, %v5711_v16  ;;  %v2847_v23 = vand.u32 4294901760, %v2846_v9  ;;  %v2854_v9 = vand.u32 4294901760, %v2853_v44  ;;  %v2291_v31 = vsel %vm8083_vm1, %v4894_v29, 0.0 }
 0x135   : > { %v5722_v27 = vpop.permute.xlu1 %771  ;;  %v5724_v8 = vpop.permute.xlu0 %773  ;;  %v2292_v28 = vsel %vm8083_vm1, %v4896_v17, 0.0  ;;  %v2275_v44 = vadd.f32 %v2274_v39, %v2273_v61  ;;  %v2258_v29 = vrot.slane %v2257_v11, 4 }
 0x136   : > { %8258 = vst [vmem:[#allocation85_spill] sm:$0xff] %v5722_v27  ;;  %8259 = vst [vmem:[#allocation86_spill] sm:$0xff] %v5724_v8  ;;  %v4898_v59 = vpop.eup %4897  ;;  %v2840_v27 = vand.u32 4294901760, %v2839_v37  ;;  %v2265_v8 = vsel %vm8083_vm1, %v4884_v56, 0.0  ;;  %v2860_v35 = vsub.f32 %v5711_v16, %v8061_v58  ;;  %v2282_v56 = vsel %vm8083_vm1, %v4890_v15, 0.0 }
 0x137   : > { %v4900_v12 = vpop.eup %4899  ;;  %v2266_v58 = vadd.f32 %v2265_v8, %v2264_v38  ;;  %v2300_v7 = vsel %vm8083_vm1, %v4898_v59, 0.0  ;;  %v2284_v19 = vadd.f32 %v2283_v18, %v2282_v56  ;;  %v2293_v17 = vadd.f32 %v2292_v28, %v2291_v31 }
 0x138   : > { %4720 = vmatpush3.msra.mxu1 %v2840_v27  ;;  %v2861_v47 = vand.u32 4294901760, %v2860_v35  ;;  %v4902_v27 = vpop.eup %4901  ;;  %v2276_v59 = vrot.slane %v2275_v44, 4  ;;  %v2250_v18 = vadd.f32 %v2249_v57, %v2248_v60  ;;  %v2259_v56 = vadd.f32 %v2258_v29, %v2257_v11 }
 0x139   : > { %v5744_v37 = vpop.permute.xlu1 %775  ;;  %v5746_v6 = vpop.permute.xlu0 %777  ;;  %4721 = vmatprep.subr.mxu1 %v8235_v14  ;;  %v2285_v61 = vrot.slane %v2284_v19, 4  ;;  %v2294_v31 = vrot.slane %v2293_v17, 4 }
 0x13a   : > { %8261 = vst [vmem:[#allocation87_spill] sm:$0xff] %v5744_v37  ;;  %8262 = vst [vmem:[#allocation88_spill] sm:$0xff] %v5746_v6  ;;  %4722 = vmatpush3.msra.mxu1 %v2847_v23  ;;  %v2301_v6 = vsel %vm8083_vm1, %v4900_v12, 0.0  ;;  %v4904_v3 = vpop.eup %4903  ;;  %v2267_v23 = vrot.slane %v2266_v58, 4  ;;  %v2309_v12 = vsel %vm8083_vm1, %v4902_v27, 0.0 }
 0x13b   : > { %4723 = vmatprep.subr.mxu1 %v8235_v14  ;;  %v2302_v38 = vadd.f32 %v2301_v6, %v2300_v7  ;;  %v2310_v35 = vsel %vm8083_vm1, %v4904_v3, 0.0  ;;  %v2277_v6 = vadd.f32 %v2276_v59, %v2275_v44  ;;  %v2286_v7 = vadd.f32 %v2285_v61, %v2284_v19 }
 0x13c   : > { %4724 = vmatpush3.msra.mxu1 %v2854_v9  ;;  %v2268_v28 = vadd.f32 %v2267_v23, %v2266_v58  ;;  %v2311_v37 = vadd.f32 %v2310_v35, %v2309_v12  ;;  %v2260_v3 = vrot.slane %v2259_v56, 2  ;;  %v2295_v16 = vadd.f32 %v2294_v31, %v2293_v17 }
 0x13d   : > { %v5756_v15 = vpop.permute.xlu1 %864  ;;  %v5758_v8 = vpop.permute.xlu0 %862  ;;  %4725 = vmatprep.subr.mxu1 %v8235_v14 }
 0x13e   : > { %8263 = vst [vmem:[#allocation89_spill] sm:$0xff] %v5756_v15  ;;  %8264 = vst [vmem:[#allocation90_spill] sm:$0xff] %v5758_v8  ;;  %4726 = vmatpush3.msra.mxu1 %v2861_v47  ;;  %v2303_v8 = vrot.slane %v2302_v38, 4  ;;  %v2251_v47 = vrot.slane %v2250_v18, 2  ;;  %v2269_v60 = vrot.slane %v2268_v28, 2  ;;  %v2261_v58 = vadd.f32 %v2260_v3, %v2259_v56 }
 0x13f   : > { %4749 = vmatprep.subr.mxu1 %v8235_v14  ;;  %v2312_v14 = vrot.slane %v2311_v37, 4  ;;  %v2296_v29 = vrot.slane %v2295_v16, 2  ;;  %v5781_v56 = vld [vmem:[%s7933_s7] sm:$0x1] }
 0x140   : > { %v2304_v57 = vadd.f32 %v2303_v8, %v2302_v38  ;;  %v2252_v63 = vadd.f32 %v2251_v47, %v2250_v18  ;;  %v2270_v44 = vadd.f32 %v2269_v60, %v2268_v28  ;;  %v2262_v17 = vrot.slane %v2261_v58, 1 }
 0x141   : > { %v5764_v39 = vpop.permute.xlu1 %868  ;;  %v5766_v9 = vpop.permute.xlu0 %866  ;;  %v2313_v59 = vadd.f32 %v2312_v14, %v2311_v37  ;;  %v2297_v8 = vadd.f32 %v2296_v29, %v2295_v16  ;;  %vm2371_vm3 = vcmp.eq.s32.totalorder %v5781_v56, 1  ;;  %vm2360_vm4 = vcmp.eq.s32.totalorder %v5781_v56, 0 }
 0x142   : > { %8265 = vst [vmem:[#allocation91_spill] sm:$0xff] %v5764_v39  ;;  %8266 = vst [vmem:[#allocation92_spill] sm:$0xff] %v5766_v9  ;;  %v2278_v39 = vrot.slane %v2277_v6, 2  ;;  %v2287_v9 = vrot.slane %v2286_v7, 2  ;;  %v2305_v19 = vrot.slane %v2304_v57, 2  ;;  %v2253_v35 = vrot.slane %v2252_v63, 1 }
 0x143   : > { %v2271_v38 = vrot.slane %v2270_v44, 1  ;;  %v2314_v18 = vrot.slane %v2313_v59, 2  ;;  %vm2383_vm5 = vcmp.eq.s32.totalorder %v5781_v56, 2  ;;  %vm2395_vm6 = vcmp.eq.s32.totalorder %v5781_v56, 3 }
 0x144   : > { %v2279_v12 = vadd.f32 %v2278_v39, %v2277_v6  ;;  %v2288_v61 = vadd.f32 %v2287_v9, %v2286_v7  ;;  %v2306_v31 = vadd.f32 %v2305_v19, %v2304_v57  ;;  %v2254_v28 = vadd.f32 %v2253_v35, %v2252_v63 }
 0x145   : > { %v5768_v15 = vpop.permute.xlu1 %872  ;;  %v5770_v27 = vpop.permute.xlu0 %870  ;;  %v2263_v39 = vadd.f32 %v2262_v17, %v2261_v58  ;;  %v2298_v9 = vrot.slane %v2297_v8, 1  ;;  %v2272_v16 = vadd.f32 %v2271_v38, %v2270_v44  ;;  %v2315_v7 = vadd.f32 %v2314_v18, %v2313_v59 }
 0x146   : > { %8267 = vst [vmem:[#allocation93_spill] sm:$0xff] %v5768_v15  ;;  %8268 = vst [vmem:[#allocation94_spill] sm:$0xff] %v5770_v27  ;;  %v2280_v47 = vrot.slane %v2279_v12, 1  ;;  %v2289_v14 = vrot.slane %v2288_v61, 1  ;;  %v2307_v6 = vrot.slane %v2306_v31, 1  ;;  %v8274_v57 = vmov 0  }
 0x147   : > { %v2372_v29 = vsel %vm2371_vm3, 1, %v8274_v57  ;;  %4905 = vlog2.f32 %v2254_v28  ;;  %v2361_v63 = vsel %vm2360_vm4, 1, %v8274_v57  ;;  %v2299_v35 = vadd.f32 %v2298_v9, %v2297_v8 }
 0x148   : > { %v2281_v60 = vadd.f32 %v2280_v47, %v2279_v12  ;;  %v2290_v19 = vadd.f32 %v2289_v14, %v2288_v61  ;;  %4907 = vlog2.f32 %v2263_v39  ;;  %v2308_v44 = vadd.f32 %v2307_v6, %v2306_v31 }
 0x149   : > { %v5772_v11 = vpop.permute.xlu1 %876  ;;  %v5774_v23 = vpop.permute.xlu0 %874  ;;  %v2316_v38 = vrot.slane %v2315_v7, 1  ;;  %4909 = vlog2.f32 %v2272_v16  ;;  %v2376_v59 = vrot.slane %v2372_v29, %v5175_v51  ;;  %v2365_v12 = vrot.slane %v2361_v63, %v5175_v51 }
 0x14a   : > { %8269 = vst [vmem:[#allocation95_spill] sm:$0xff] %v5772_v11  ;;  %8270 = vst [vmem:[#allocation96_spill] sm:$0xff] %v5774_v23  ;;  %v2384_v11 = vsel %vm2383_vm5, 1, %v8274_v57  ;;  %4911 = vlog2.f32 %v2281_v60  ;;  %vm2407_vm8 = vcmp.eq.s32.totalorder %v5781_v56, 4  ;;  %v2396_v31 = vsel %vm2395_vm6, 1, %v8274_v57 }
 0x14b   : > { %4913 = vlog2.f32 %v2290_v19  ;;  %v2388_v61 = vrot.slane %v2384_v11, %v5175_v51  ;;  %v2317_v8 = vadd.f32 %v2316_v38, %v2315_v7  ;;  %vm5801_vm7 = vcmp.eq.s32.totalorder %v2376_v59, 1 }
 0x14c   : > { %4915 = vlog2.f32 %v2299_v35  ;;  %vm2419_vm9 = vcmp.eq.s32.totalorder %v5781_v56, 5  ;;  %vm2366_vm10 = vcmp.eq.s32.totalorder %v2365_v12, 1  ;;  %v2381_v14 = vsel %vm5801_vm7, %v5399_v33, 0 }
 0x14d   : > { %v5776_v15 = vpop.permute.xlu1 %961  ;;  %v5783_v3 = vpop.permute.xlu0 %965  ;;  %4917 = vlog2.f32 %v2308_v44  ;;  %vm5812_vm11 = vcmp.eq.s32.totalorder %v2388_v61, 1  ;;  %v2408_v39 = vsel %vm2407_vm8, 1, %v8274_v57  ;;  %v2400_v9 = vrot.slane %v2396_v31, %v5175_v51 }
 0x14e   : > { %8271 = vst [vmem:[#allocation97_spill] sm:$0xff] %v5776_v15  ;;  %8272 = vst [vmem:[#allocation98_spill] sm:$0xff] %v5783_v3  ;;  %4919 = vlog2.f32 %v2317_v8  ;;  %v2420_v16 = vsel %vm2419_vm9, 1, %v8274_v57  ;;  %v2370_v6 = vsel %vm2366_vm10, %v5158_v45, 0  ;;  %v2393_v7 = vsel %vm5812_vm11, %v5416_v4, 0 }
 0x14f   : > { %v2382_v29 = vadd.s32 %v2381_v14, %v2370_v6  ;;  %v2412_v19 = vrot.slane %v2408_v39, %v5175_v51  ;;  %v2424_v33 = vrot.slane %v2420_v16, %v5175_v51  ;;  %vm2431_vm12 = vcmp.eq.s32.totalorder %v5781_v56, 6 }
 0x150   : > { %vm2401_vm13 = vcmp.eq.s32.totalorder %v2400_v9, 1  ;;  %vm2443_vm14 = vcmp.eq.s32.totalorder %v5781_v56, 7  ;;  %v2432_v61 = vsel %vm2431_vm12, 1, %v8274_v57  ;;  %v5041_v14 = vmov 1966171168  }
 0x151   : > { %v5786_v37 = vpop.permute.xlu1 %963  ;;  %v5793_v58 = vpop.permute.xlu0 %969  ;;  %v2394_v45 = vadd.s32 %v2393_v7, %v2382_v29  ;;  %vm5834_vm15 = vcmp.eq.s32.totalorder %v2412_v19, 1  ;;  %v2405_v18 = vsel %vm2401_vm13, %v5165_v50, 0  ;;  %vm5840_vm0 = vcmp.eq.s32.totalorder %v2424_v33, 1 }
 0x152   : > { %8273 = vst [vmem:[#allocation99_spill] sm:$0xff] %v5786_v37  ;;  %8275 = vst [vmem:[#allocation100_spill] sm:$0xff] %v5793_v58  ;;  %v2460_v39 = vunpack.c.l.s4 %v5041_v14  ;;  %v2444_v7 = vsel %vm2443_vm14, 1, %v8274_v57  ;;  %v2417_v29 = vsel %vm5834_vm15, %v5452_v1, 0  ;;  %v2436_v50 = vrot.slane %v2432_v61, %v5175_v51  ;;  %v8312_v58 = vld [vmem:[#allocation19_spill] sm:$0xff] }
 0x153   : > { %v2406_v16 = vadd.s32 %v2405_v18, %v2394_v45  ;;  %v2429_v45 = vsel %vm5840_vm0, %v5496_v40, 0  ;;  %v2448_v18 = vrot.slane %v2444_v7, %v5175_v51 }
 0x154   : > { %v4906_v60 = vpop.eup %4905  ;;  %v2461_v14 = vunpack.c.0.s8 %v2460_v39  ;;  %vm5863_vm3 = vcmp.eq.s32.totalorder %v2436_v50, 1 }
 0x155   : > { %v5795_v17 = vpop.permute.xlu1 %967  ;;  %v5808_v47 = vpop.permute.xlu0 %973  ;;  %v2319_v56 = vmul.f32 0.6931472, %v4906_v60  ;;  %v2418_v1 = vadd.s32 %v2417_v29, %v2406_v16  ;;  %vm5889_vm4 = vcmp.eq.s32.totalorder %v2448_v18, 1  ;;  %v5953_v29 = vld [vmem:[%s5172_s25] sm:$0xff] }
 0x156   : > { %8276 = vst [vmem:[#allocation101_spill] sm:$0xff] %v5795_v17  ;;  %8279 = vst [vmem:[#allocation102_spill] sm:$0xff] %v5808_v47  ;;  %v4908_v63 = vpop.eup %4907 }
 0x157   : > { %v4910_v38 = vpop.eup %4909  ;;  %v2321_v6 = vmul.f32 0.6931472, %v4908_v63  ;;  %v5858_v15 = vadd.f32 %v2319_v56, %v5538_v24  ;;  %v2430_v61 = vadd.s32 %v2429_v45, %v2418_v1  ;;  %v8307_v56 = vld [vmem:[#allocation46_spill] sm:$0xff] }
 0x158   : > { %v4912_v59 = vpop.eup %4911  ;;  %v2323_v33 = vmul.f32 0.6931472, %v4910_v38 }
 0x159   : > { %v5810_v28 = vpop.permute.xlu1 %971  ;;  %v5828_v35 = vpop.permute.xlu0 %1121  ;;  %v5861_v38 = vadd.f32 %v2321_v6, %v5542_v26  ;;  %v5880_v26 = vadd.s32 8, %v5163_v49  ;;  %v8305_v6 = vld [vmem:[#allocation18_spill] sm:$0xff] }
 0x15a   : > { %8280 = vst [vmem:[#allocation103_spill] sm:$0xff] %v5810_v28  ;;  %8283 = vst [vmem:[#allocation104_spill] sm:$0xff] %v5828_v35  ;;  %v4914_v4 = vpop.eup %4913  ;;  %v5868_v40 = vadd.f32 %v2323_v33, %v5544_v25  ;;  %v8310_v35 = vld [vmem:[#allocation48_spill] sm:$0xff] }
 0x15b   : > { %v4916_v8 = vpop.eup %4915  ;;  %v2327_v28 = vmul.f32 0.6931472, %v4914_v4 }
 0x15c   : > { %v4918_v9 = vpop.eup %4917  ;;  %v2329_v17 = vmul.f32 0.6931472, %v4916_v8 }
 0x15d   : > { %v5830_v44 = vpop.permute.xlu1 %975  ;;  %v2331_v63 = vmul.f32 0.6931472, %v4918_v9  ;;  %v4920_v12 = vpop.eup %4919  ;;  %v5874_v8 = vadd.f32 %v2327_v28, %v5558_v22  ;;  %v5894_v22 = vsub.s32 %v2461_v14, %v5163_v49  ;;  %v5969_v28 = vld [vmem:[%s5172_s25 + $0x10] sm:$0xff] }
 0x15e   : > { %8284 = vst [vmem:[#allocation105_spill] sm:$0xff] %v5830_v44  ;;  %v2325_v44 = vmul.f32 0.6931472, %v4912_v59  ;;  %v5877_v24 = vadd.f32 %v2329_v17, %v5562_v34  ;;  %v2333_v9 = vmul.f32 0.6931472, %v4920_v12 }
 0x15f   : > { %v5887_v25 = vadd.f32 %v2331_v63, %v5580_v36  ;;  %v8302_v63 = vld [vmem:[#allocation14_spill] sm:$0xff] }
 0x160   : > { %v5871_v4 = vadd.f32 %v2325_v44, %v5548_v43  ;;  %v5921_v45 = vadd.f32 %v2333_v9, %v5586_v48 }
 0x161   : > { %v5848_v19 = vpop.permute.xlu1 %1119 }
 0x162   : > { %8289 = vst [vmem:[#allocation106_spill] sm:$0xff] %v5848_v19 }
 0x165   : > { %v5882_v31 = vpop.permute.xlu1 %1123 }
 0x166   : > { %v2440_v11 = vpop.permute.xlu0 %2439  ;;  %8293 = vst [vmem:[#allocation108_spill] sm:$0xff] %v5882_v31 }
 0x167   : > { %v2441_v34 = vsel %vm5863_vm3, %v2440_v11, 0 }
 0x168   : > { %v2442_v33 = vadd.s32 %v2441_v34, %v2430_v61 }
 0x16a   : > { %v5854_v60 = vpop.permute.xlu0 %1127 }
 0x16b   : > { %8290 = vst [vmem:[#allocation107_spill] sm:$0xff] %v5854_v60  ;;  %v5976_v60 = vld [vmem:[%s5172_s25 + $0x28] sm:$0xff] }
 0x16c   : > { %8309 = vst [vmem:[#allocation46_spill] sm:$0xff] %v5976_v60 }
 0x16e   : > { %v5884_v39 = vpop.permute.xlu0 %1131 }
 0x16f   : > { %8294 = vst [vmem:[#allocation109_spill] sm:$0xff] %v5884_v39 }
 0x172   : > { %v2452_v14 = vpop.permute.xlu1 %2451  ;;  %v1153_v12 = vpop.permute.xlu0 %1152 }
 0x173   : > { %v2453_v1 = vsel %vm5889_vm4, %v2452_v14, 0  ;;  %v5930_v59 = vrot.slane %v1153_v12, %v5178_v52  ;;  %v5933_v61 = vrot.slane %v1153_v12, %v5175_v51  ;;  %v5936_v48 = vrot.slane %v1153_v12, %v5181_v53  ;;  %v5948_v14 = vld [vmem:[%s5172_s25 + $0x8] sm:$0xff] }
 0x174   : > { %v2454_v9 = vadd.s32 %v2453_v1, %v2442_v33  ;;  %v5939_v34 = vrot.slane %v1153_v12, %v5184_v55  ;;  %v5942_v18 = vrot.slane %v1153_v12, %v5205_v62  ;;  %v5945_v43 = vrot.slane %v1153_v12, %v8302_v63  ;;  %v5958_v1 = vld [vmem:[%s5172_s25 + $0x18] sm:$0xff] }
 0x175   : > { %8297 = vst [vmem:[#allocation110_spill] sm:$0xff] %v5930_v59  ;;  %8298 = vst [vmem:[#allocation111_spill] sm:$0xff] %v5933_v61  ;;  %v1195_v50 = vsub.f32 %v5948_v14, %v5930_v59  ;;  %v1194_v33 = vsub.f32 %v5953_v29, %v5933_v61  ;;  %v1197_v7 = vsub.f32 %v5958_v1, %v5936_v48  ;;  %v8308_v61 = vld [vmem:[#allocation47_spill] sm:$0xff] }
 0x176   : > { %8299 = vst [vmem:[#allocation112_spill] sm:$0xff] %v5936_v48  ;;  %8300 = vst [vmem:[#allocation113_spill] sm:$0xff] %v5939_v34  ;;  %v5963_v11 = vrot.slane %v1153_v12, %v8305_v6  ;;  %v2458_v44 = vcombine.high %v2454_v9, %v2454_v9  ;;  %v2465_v36 = vrot.slane %v2454_v9, %v5894_v22 }
 0x177   : > { %8301 = vst [vmem:[#allocation114_spill] sm:$0xff] %v5942_v18  ;;  %8303 = vst [vmem:[#allocation115_spill] sm:$0xff] %v5945_v43  ;;  %v1196_v17 = vsub.f32 %v5969_v28, %v5939_v34  ;;  %v1203_v48 = vand.u32 2147483647, %v1195_v50  ;;  %v1202_v39 = vand.u32 2147483647, %v1194_v33  ;;  %v1199_v16 = vsub.f32 %v5976_v60, %v5942_v18 }
 0x178   : > { %8304 = vst [vmem:[#allocation116_spill] sm:$0xff] %v5958_v1  ;;  %8306 = vst [vmem:[#allocation117_spill] sm:$0xff] %v5963_v11  ;;  %v2472_v31 = vrot.slane %v2458_v44, %v5894_v22  ;;  %v2473_v19 = vcombine.high %v2465_v36, %v2465_v36  ;;  %v2481_v47 = vrot.slane %v2465_v36, %v5894_v22  ;;  %v1205_v59 = vand.u32 2147483647, %v1197_v7  ;;  %v5987_v33 = vld [vmem:[%s5172_s25 + $0x20] sm:$0xff]  ;;  %v5992_v18 = vld [vmem:[%s5172_s25 + $0x38] sm:$0xff] }
 0x179   : > { %1220 = vrot.lane.b32.xlu0 %v1203_v48, %s5037_s28  ;;  %1218 = vrot.lane.b32.xlu1 %v1202_v39, %s5037_s28  ;;  %v1204_v50 = vand.u32 2147483647, %v1196_v17  ;;  %v1198_v34 = vsub.f32 %v5987_v33, %v5945_v43  ;;  %8311 = vst [vmem:[#allocation47_spill] sm:$0xff] %v5992_v18  ;;  %v1201_v9 = vsub.f32 %v5992_v18, %v5963_v11  ;;  %v1207_v7 = vand.u32 2147483647, %v1199_v16 }
 0x17a   : > { %v2474_v44 = vcombine.high %v2472_v31, %v2472_v31  ;;  %v2488_v23 = vrot.slane %v2472_v31, %v5894_v22  ;;  %v2495_v36 = vrot.slane %v2473_v19, %v5894_v22  ;;  %v2503_v48 = vcombine.high %v2481_v47, %v2481_v47 }
 0x17b   : > { %v2510_v39 = vrot.slane %v2481_v47, %v5175_v51  ;;  %v1206_v17 = vand.u32 2147483647, %v1198_v34  ;;  %v6000_v27 = vrot.slane %v1153_v12, %v8312_v58  ;;  %v1209_v47 = vand.u32 2147483647, %v1201_v9 }
 0x17c   : > { %v2502_v43 = vrot.slane %v2474_v44, %v5894_v22  ;;  %v2504_v3 = vcombine.high %v2488_v23, %v2488_v23  ;;  %v2505_v37 = vcombine.high %v2495_v36, %v2495_v36  ;;  %v2514_v6 = vrot.slane %v2495_v36, %v5175_v51 }
 0x17d   : > { %8313 = vst [vmem:[#allocation48_spill] sm:$0xff] %v6000_v27  ;;  %v2518_v11 = vrot.slane %v2503_v48, %v5175_v51  ;;  %v2526_v31 = vrot.slane %v2488_v23, %v5175_v51  ;;  %vm2539_vm5 = vcmp.eq.s32.totalorder %v5163_v49, %v2510_v39  ;;  %1224 = vrot.lane.b32.xlu0 %v1205_v59, %s5037_s28 }
 0x17e   : > { %v2506_v19 = vcombine.high %v2502_v43, %v2502_v43  ;;  %v2522_v16 = vrot.slane %v2505_v37, %v5175_v51  ;;  %v2530_v12 = vrot.slane %v2502_v43, %v5175_v51  ;;  %v2534_v22 = vrot.slane %v2504_v3, %v5175_v51  ;;  %1222 = vrot.lane.b32.xlu1 %v1204_v50, %s5037_s28 }
 0x17f   : > { %vm2540_vm6 = vcmp.eq.s32.totalorder %v5880_v26, %v2510_v39  ;;  %vm2541_vm7 = vcmp.eq.s32.totalorder %v5163_v49, %v2514_v6  ;;  %vm2542_vm8 = vcmp.eq.s32.totalorder %v5880_v26, %v2514_v6  ;;  %vm2543_vm9 = vcmp.eq.s32.totalorder %v5163_v49, %v2518_v11 }
 0x180   : > { %v2538_v23 = vrot.slane %v2506_v19, %v5175_v51  ;;  %vm2544_vm10 = vcmp.eq.s32.totalorder %v5880_v26, %v2518_v11  ;;  %vm2545_vm11 = vcmp.eq.s32.totalorder %v5163_v49, %v2522_v16  ;;  %vm2546_vm12 = vcmp.eq.s32.totalorder %v5880_v26, %v2522_v16 }
 0x181   : > { %vm2547_vm13 = vcmp.eq.s32.totalorder %v5163_v49, %v2526_v31  ;;  %vm2548_vm14 = vcmp.eq.s32.totalorder %v5880_v26, %v2526_v31  ;;  %vm2549_vm15 = vcmp.eq.s32.totalorder %v5163_v49, %v2530_v12  ;;  %vm2550_vm0 = vcmp.eq.s32.totalorder %v5880_v26, %v2530_v12  ;;  %1228 = vrot.lane.b32.xlu0 %v1207_v7, %s5037_s28 }
 0x182   : > { %vm2551_vm3 = vcmp.eq.s32.totalorder %v5163_v49, %v2534_v22  ;;  %vm2552_vm4 = vcmp.eq.s32.totalorder %v5880_v26, %v2534_v22  ;;  %vm2553_vm2 = vcmp.eq.s32.totalorder %v5163_v49, %v2538_v23  ;;  %vm2554_vm1 = vcmp.eq.s32.totalorder %v5880_v26, %v2538_v23  ;;  %1226 = vrot.lane.b32.xlu1 %v1206_v17, %s5037_s28 }
 0x183   : > { %v8314_v3 = vmov 0.0   ;;  %v8315_v19 = vsub.f32 %v5421_v46, %v5858_v15  ;;  %v8316_v12 = vsub.f32 %v5424_v2, %v5858_v15  ;;  %v8317_v18 = vsub.f32 %v5432_v54, %v5861_v38 }
 0x184   : > { %v4611_v37 = vsel %vm2539_vm5, 1.0, %v8314_v3  ;;  %v4612_v59 = vsel %vm2540_vm6, 1.0, %v8314_v3  ;;  %v4613_v34 = vsel %vm2541_vm7, 1.0, %v8314_v3  ;;  %v4614_v43 = vsel %vm2542_vm8, 1.0, %v8314_v3 }
 0x185   : > { %v4615_v9 = vsel %vm2543_vm9, 1.0, %v8314_v3  ;;  %v4616_v50 = vsel %vm2544_vm10, 1.0, %v8314_v3  ;;  %v4617_v44 = vsel %vm2545_vm11, 1.0, %v8314_v3  ;;  %v4618_v36 = vsel %vm2546_vm12, 1.0, %v8314_v3  ;;  %1232 = vrot.lane.b32.xlu0 %v1209_v47, %s5037_s28 }
 0x186   : > { %v4619_v6 = vsel %vm2547_vm13, 1.0, %v8314_v3  ;;  %v4620_v48 = vsel %vm2548_vm14, 1.0, %v8314_v3  ;;  %v4621_v11 = vsel %vm2549_vm15, 1.0, %v8314_v3  ;;  %v4622_v39 = vsel %vm2550_vm0, 1.0, %v8314_v3 }
 0x187   : > { %v4623_v7 = vsel %vm2551_vm3, 1.0, %v8314_v3  ;;  %v4624_v17 = vsel %vm2552_vm4, 1.0, %v8314_v3  ;;  %v4625_v31 = vsel %vm2553_vm2, 1.0, %v8314_v3  ;;  %v2587_v16 = vmul.f32 %v4611_v37, %v8315_v19 }
 0x188   : > { %v2588_v47 = vmul.f32 %v4612_v59, %v8316_v12  ;;  %v2589_v60 = vmul.f32 %v4613_v34, %v8317_v18  ;;  %v8318_v22 = vsub.f32 %v5435_v20, %v5861_v38  ;;  %v8319_v49 = vsub.f32 %v5447_v5, %v5868_v40 }
 0x189   : > { %v4626_v46 = vsel %vm2554_vm1, 1.0, %v8314_v3  ;;  %v8320_v2 = vsub.f32 %v5450_v0, %v5868_v40  ;;  %v8321_v54 = vsub.f32 %v5457_v42, %v5871_v4  ;;  %v8322_v20 = vsub.f32 %v5460_v10, %v5871_v4 }
 0x18a   : > { %v2590_v1 = vmul.f32 %v4614_v43, %v8318_v22  ;;  %v2591_v62 = vmul.f32 %v4615_v9, %v8319_v49  ;;  %v8323_v5 = vsub.f32 %v5469_v13, %v5874_v8  ;;  %v8324_v26 = vsub.f32 %v5472_v21, %v5874_v8 }
 0x18b   : > { %v2592_v15 = vmul.f32 %v4616_v50, %v8320_v2  ;;  %v2593_v18 = vmul.f32 %v4617_v44, %v8321_v54  ;;  %v2594_v38 = vmul.f32 %v4618_v36, %v8322_v20  ;;  %v8325_v0 = vsub.f32 %v5480_v30, %v5877_v24 }
 0x18c   : > { %v2595_v49 = vmul.f32 %v4619_v6, %v8323_v5  ;;  %v2596_v23 = vmul.f32 %v4620_v48, %v8324_v26  ;;  %v8326_v42 = vsub.f32 %v5483_v41, %v5877_v24  ;;  %v8327_v10 = vsub.f32 %v5504_v32, %v5887_v25 }
 0x18d   : > { %v2597_v40 = vmul.f32 %v4621_v11, %v8325_v0  ;;  %v8328_v13 = vsub.f32 %v8307_v56, %v5887_v25  ;;  %v8329_v21 = vsub.f32 %v8308_v61, %v5921_v45  ;;  %vm8330_vm1 = vcmask 523264  }
 0x18e   : > { %v2598_v37 = vmul.f32 %v4622_v39, %v8326_v42  ;;  %v2599_v4 = vmul.f32 %v4623_v7, %v8327_v10  ;;  %v2603_v34 = vsel %vm8330_vm1, %v2587_v16, 0.0  ;;  %vm8331_vm2 = vmmov %vm8330_vm1  ;;  %v8343_v12 = vsub.f32 %v8310_v35, %v5921_v45 }
 0x18f   : > { %v2600_v59 = vmul.f32 %v4624_v17, %v8328_v13  ;;  %v2601_v8 = vmul.f32 %v4625_v31, %v8329_v21  ;;  %v2604_v30 = vsel %vm8331_vm2, %v2588_v47, 0.0  ;;  %vm8332_vm5 = vmmov %vm8330_vm1  ;;  %vm536_vm2 = vcmask 1042434  }
 0x190   : > { %v2612_v43 = vsel %vm8332_vm5, %v2589_v60, 0.0  ;;  %vm8333_vm6 = vmmov %vm8330_vm1  ;;  %v2605_v32 = vadd.f32 %v2604_v30, %v2603_v34  ;;  %v2602_v47 = vmul.f32 %v4626_v46, %v8343_v12  ;;  %v6144_v30 = vld [vmem:[%s5172_s25 + $0x30] sm:$0xff]  ;;  %vm538_vm5 = vcmask 1043459   ;;  %v6152_v12 = vld [vmem:[%s5113_s16] sm:$0xff] }
 0x191   : > { %v2613_v41 = vsel %vm8333_vm6, %v2590_v1, 0.0  ;;  %vm8334_vm7 = vmmov %vm8330_vm1  ;;  %vm540_vm6 = vcmask 1044484  }
 0x192   : > { %v2621_v24 = vsel %vm8334_vm7, %v2591_v62, 0.0  ;;  %v2614_v9 = vadd.f32 %v2613_v41, %v2612_v43  ;;  %vm8335_vm8 = vmmov %vm8330_vm1  ;;  %v2606_v6 = vrot.slane %v2605_v32, 4  ;;  %v1200_v43 = vsub.f32 %v6144_v30, %v6000_v27 }
 0x193   : > { %v2622_v50 = vsel %vm8335_vm8, %v2592_v15, 0.0  ;;  %vm8336_vm9 = vmmov %vm8330_vm1  ;;  %vm542_vm7 = vcmask 1045509   ;;  %vm544_vm8 = vcmask 1046534  }
 0x194   : > { %v2630_v25 = vsel %vm8336_vm9, %v2593_v18, 0.0  ;;  %v2623_v56 = vadd.f32 %v2622_v50, %v2621_v24  ;;  %vm8337_vm10 = vmmov %vm8330_vm1  ;;  %v2615_v48 = vrot.slane %v2614_v9, 4  ;;  %v2607_v17 = vadd.f32 %v2606_v6, %v2605_v32 }
 0x195   : > { %v2631_v61 = vsel %vm8337_vm10, %v2594_v38, 0.0  ;;  %vm8338_vm11 = vmmov %vm8330_vm1  ;;  %vm546_vm9 = vcmask 1047559  }
 0x196   : > { %v2639_v44 = vsel %vm8338_vm11, %v2595_v49, 0.0  ;;  %vm8339_vm12 = vmmov %vm8330_vm1  ;;  %v2632_v60 = vadd.f32 %v2631_v61, %v2630_v25  ;;  %v2624_v1 = vrot.slane %v2623_v56, 4  ;;  %v2616_v31 = vadd.f32 %v2615_v48, %v2614_v9 }
 0x197   : > { %v2640_v36 = vsel %vm8339_vm12, %v2596_v23, 0.0  ;;  %vm8340_vm13 = vmmov %vm8330_vm1  ;;  %v2608_v54 = vrot.slane %v2607_v17, 2  ;;  %vm8349_vm11 = vmmov 0  }
 0x198   : > { %v2641_v11 = vadd.f32 %v2640_v36, %v2639_v44  ;;  %v2648_v62 = vsel %vm8340_vm13, %v2597_v40, 0.0  ;;  %vm8341_vm14 = vmmov %vm8330_vm1  ;;  %v2633_v19 = vrot.slane %v2632_v60, 4  ;;  %v2625_v22 = vadd.f32 %v2624_v1, %v2623_v56 }
 0x199   : > { %v2649_v39 = vsel %vm8341_vm14, %v2598_v37, 0.0  ;;  %vm8342_vm15 = vmmov %vm8330_vm1  ;;  %v2617_v18 = vrot.slane %v2616_v31, 2  ;;  %v2609_v0 = vadd.f32 %v2608_v54, %v2607_v17  ;;  %v1208_v56 = vand.u32 2147483647, %v1200_v43  ;;  %v8352_v43 = vld [vmem:[#allocation69_spill] sm:$0xff] }
 0x19a   : > { %v2657_v7 = vsel %vm8342_vm15, %v2599_v4, 0.0  ;;  %v2642_v16 = vrot.slane %v2641_v11, 4  ;;  %v2650_v2 = vadd.f32 %v2649_v39, %v2648_v62  ;;  %vm8344_vm0 = vmmov %vm8330_vm1  ;;  %v2634_v20 = vadd.f32 %v2633_v19, %v2632_v60 }
 0x19b   : > { %v2658_v15 = vsel %vm8344_vm0, %v2600_v59, 0.0  ;;  %v2626_v5 = vrot.slane %v2625_v22, 2  ;;  %vm8345_vm3 = vmmov %vm8344_vm0  ;;  %v2618_v40 = vadd.f32 %v2617_v18, %v2616_v31  ;;  %v2610_v4 = vrot.slane %v2609_v0, 1  ;;  %1230 = vrot.lane.b32.xlu1 %v1208_v56, %s5037_s28  ;;  %v8360_v56 = vld [vmem:[#allocation81_spill] sm:$0xff] }
 0x19c   : > { %v2643_v38 = vadd.f32 %v2642_v16, %v2641_v11  ;;  %v2651_v49 = vrot.slane %v2650_v2, 4  ;;  %v2659_v26 = vadd.f32 %v2658_v15, %v2657_v7  ;;  %v2666_v23 = vsel %vm8345_vm3, %v2601_v8, 0.0  ;;  %vm8346_vm4 = vmmov %vm8344_vm0 }
 0x19d   : > { %v2635_v42 = vrot.slane %v2634_v20, 2  ;;  %v2627_v35 = vadd.f32 %v2626_v5, %v2625_v22  ;;  %v2667_v10 = vsel %vm8346_vm4, %v2602_v47, 0.0  ;;  %v2619_v13 = vrot.slane %v2618_v40, 1  ;;  %vm8347_vm10 = vmmov %vm8344_vm0 }
 0x19e   : > { %v2644_v37 = vrot.slane %v2643_v38, 2  ;;  %v2652_v45 = vadd.f32 %v2651_v49, %v2650_v2  ;;  %v2660_v46 = vrot.slane %v2659_v26, 4  ;;  %v2611_v24 = vadd.f32 %v2610_v4, %v2609_v0 }
 0x19f   : > { %v2636_v59 = vadd.f32 %v2635_v42, %v2634_v20  ;;  %v2628_v34 = vrot.slane %v2627_v35, 1  ;;  %v2620_v32 = vadd.f32 %v2619_v13, %v2618_v40  ;;  %vm534_vm1 = vcmask 1041409   ;;  %1251 = vperm.xlu1 %4844, %v6152_v12   ;;  %v8350_v13 = vld [vmem:[#allocation62_spill] sm:$0xff] }
 0x1a0   : > { %v2645_v21 = vadd.f32 %v2644_v37, %v2643_v38  ;;  %v2653_v8 = vrot.slane %v2652_v45, 2  ;;  %v2661_v41 = vadd.f32 %v2660_v46, %v2659_v26  ;;  %v2675_v36 = vsub.f32 0.0, %v2611_v24  ;;  %v8355_v24 = vld [vmem:[#allocation65_spill] sm:$0xff] }
 0x1a1   : > { %v2637_v9 = vrot.slane %v2636_v59, 1  ;;  %v2629_v25 = vadd.f32 %v2628_v34, %v2627_v35  ;;  %v2676_v6 = vsub.f32 0.0, %v2620_v32  ;;  %v2668_v62 = vadd.f32 %v2667_v10, %v2666_v23  ;;  %v8348_v10 = vld [vmem:[#allocation61_spill] sm:$0xff]  ;;  %v8356_v32 = vld [vmem:[#allocation74_spill] sm:$0xff] }
 0x1a2   : > { %v2646_v50 = vrot.slane %v2645_v21, 1  ;;  %v2654_v61 = vadd.f32 %v2653_v8, %v2652_v45  ;;  %v2662_v44 = vrot.slane %v2661_v41, 2  ;;  %v8353_v8 = vld [vmem:[#allocation64_spill] sm:$0xff]  ;;  %vm3574_vm13 = vcmask 64512  }
 0x1a3   : > { %v2638_v48 = vadd.f32 %v2637_v9, %v2636_v59  ;;  %v2677_v60 = vsub.f32 0.0, %v2629_v25  ;;  %v2699_v17 = vsel %vm534_vm1, %v2676_v6, %v2675_v36  ;;  %v2669_v31 = vrot.slane %v2668_v62, 4  ;;  %1453 = vrot.lane.b32.xlu1 %v6152_v12, %s5042_s18  ;;  %v8357_v9 = vld [vmem:[#allocation68_spill] sm:$0xff] }
 0x1a4   : > { %v2655_v11 = vrot.slane %v2654_v61, 1  ;;  %v2663_v1 = vadd.f32 %v2662_v44, %v2661_v41  ;;  %v2647_v39 = vadd.f32 %v2646_v50, %v2645_v21  ;;  %4847 = vset.pattern.permute.xlu1 %v8274_v57  ;;  %v8351_v21 = vld [vmem:[#allocation63_spill] sm:$0xff]  ;;  %v8354_v41 = vld [vmem:[#allocation73_spill] sm:$0xff]  ;;  %v8359_v25 = vld [vmem:[#allocation72_spill] sm:$0xff] }
 0x1a5   : > { %v2678_v7 = vsub.f32 0.0, %v2638_v48  ;;  %v2700_v19 = vsel %vm536_vm2, %v2677_v60, %v2699_v17  ;;  %v2670_v22 = vadd.f32 %v2669_v31, %v2668_v62  ;;  %v8358_v50 = vld [vmem:[#allocation77_spill] sm:$0xff]  ;;  %v8362_v44 = vld [vmem:[#allocation79_spill] sm:$0xff]  ;;  %v8363_v36 = vld [vmem:[#allocation80_spill] sm:$0xff]  ;;  %v8365_v48 = vand.u32 4294901760, %v8353_v8  ;;  %v6248_v31 = vpop.permute.xlu1 %1125 }
 0x1a6   : > { %v2664_v16 = vrot.slane %v2663_v1, 1  ;;  %v2656_v47 = vadd.f32 %v2655_v11, %v2654_v61  ;;  %v2679_v15 = vsub.f32 0.0, %v2647_v39  ;;  %v8361_v61 = vld [vmem:[#allocation78_spill] sm:$0xff]  ;;  %v8364_v6 = vld [vmem:[#allocation84_spill] sm:$0xff]  ;;  %v8366_v60 = vand.u32 4294901760, %v8355_v24 }
 0x1a7   : > { %v2701_v2 = vsel %vm538_vm5, %v2678_v7, %v2700_v19  ;;  %v2671_v54 = vrot.slane %v2670_v22, 2  ;;  %v8367_v11 = vand.u32 4294901760, %v8357_v9  ;;  %v8369_v62 = vand.u32 4294901760, %v8361_v61 }
 0x1a8   : > { %v2665_v18 = vadd.f32 %v2664_v16, %v2663_v1  ;;  %v2702_v20 = vsel %vm540_vm6, %v2679_v15, %v2701_v2  ;;  %v2680_v5 = vsub.f32 0.0, %v2656_v47  ;;  %v8368_v1 = vand.u32 4294901760, %v8359_v25 }
 0x1a9   : > { %v2672_v38 = vadd.f32 %v2671_v54, %v2670_v22  ;;  %v8370_v39 = vand.u32 4294901760, %v8362_v44  ;;  %v8371_v7 = vand.u32 4294901760, %v8363_v36  ;;  %v8372_v17 = vand.u32 4294901760, %v8364_v6  ;;  %v6250_v19 = vpop.permute.xlu1 %1129 }
 0x1aa   : > { %v2703_v26 = vsel %vm542_vm7, %v2680_v5, %v2702_v20  ;;  %v2681_v23 = vsub.f32 0.0, %v2665_v18  ;;  %8373 = vst [vmem:[#allocation61_spill] sm:$0xff] %v6250_v19  ;;  %v8429_v19 = vld [vmem:[#allocation38_spill] sm:$0xff] }
 0x1ab   : > { %v2673_v49 = vrot.slane %v2672_v38, 1 }
 0x1ac   : > { %v2704_v40 = vsel %vm544_vm8, %v2681_v23, %v2703_v26 }
 0x1ad   : > { %v2674_v0 = vadd.f32 %v2673_v49, %v2672_v38  ;;  %v6252_v16 = vpop.permute.xlu1 %1133 }
 0x1ae   : > { %8374 = vst [vmem:[#allocation62_spill] sm:$0xff] %v6252_v16 }
 0x1af   : > { %v2682_v42 = vsub.f32 0.0, %v2674_v0 }
 0x1b1   : > { %v2705_v37 = vsel %vm546_vm9, %v2682_v42, %v2704_v40 }
 0x1b2   : > { %v2706_v35 = vsel %vm8347_vm10, %v2705_v37, 0 }
 0x1b3   : > { %v6164_v45 = vand.u32 4294901760, %v2706_v35 }
 0x1b5   : > { %4728 = vmatmul.mubr.f32.vlgmr.msra.gmra.mxu1 %v6164_v45  ;;  %v2782_v46 = vsub.f32 %v2706_v35, %v6164_v45 }
 0x1b6   : > { %4750 = vmatpush3.msra.mxu1 %v8348_v10  ;;  %4765 = vmatprep.mubr.msk.f32.mxu1 %vm8349_vm11, %v8314_v3 }
 0x1b7   : > { %4751 = vmatprep.subr.mxu1 %v8314_v3  ;;  %v2783_v4 = vand.u32 4294901760, %v2782_v46 }
 0x1b8   : > { %4752 = vmatpush3.msra.mxu1 %v8350_v13 }
 0x1b9   : > { %4753 = vmatprep.subr.mxu1 %v8314_v3  ;;  %v2784_v59 = vsub.f32 %v2782_v46, %v2783_v4 }
 0x1ba   : > { %4754 = vmatpush3.msra.mxu1 %v8351_v21 }
 0x1bb   : > { %4755 = vmatprep.subr.mxu1 %v8314_v3  ;;  %v2785_v34 = vand.u32 4294901760, %v2784_v59  ;;  %v8381_v59 = vld [vmem:[#allocation116_spill] sm:$0xff] }
 0x1bc   : > { %4756 = vmatpush3.msra.mxu1 %v8352_v43 }
 0x1bd   : > { %4757 = vmatprep.subr.mxu1 %v8314_v3  ;;  %4709 = vmatmul.mubr.f32.vlgmr.msra.gmra.mxu0 %v2785_v34 }
 0x1be   : > { %4731 = vmatpush3.msra.mxu0 %v8353_v8  ;;  %4758 = vmatpush3.msra.mxu1 %v8354_v41  ;;  %v8382_v8 = vld [vmem:[#allocation46_spill] sm:$0xff] }
 0x1bf   : > { %4732 = vmatprep.subr.mxu0 %v8314_v3  ;;  %4759 = vmatprep.subr.mxu1 %v8314_v3 }
 0x1c0   : > { %4733 = vmatpush3.msra.mxu0 %v8355_v24  ;;  %4760 = vmatpush3.msra.mxu1 %v8356_v32  ;;  %v8383_v24 = vld [vmem:[#allocation18_spill] sm:$0xff] }
 0x1c1   : > { %4734 = vmatprep.subr.mxu0 %v8314_v3  ;;  %4761 = vmatprep.subr.mxu1 %v8314_v3 }
 0x1c2   : > { %4735 = vmatpush3.msra.mxu0 %v8357_v9  ;;  %4762 = vmatpush3.msra.mxu1 %v8358_v50  ;;  %v1349_v9 = vmul.f32 0.5, %v5953_v29 }
 0x1c3   : > { %4736 = vmatprep.subr.mxu0 %v8314_v3  ;;  %4763 = vmatprep.subr.mxu1 %v8314_v3 }
 0x1c4   : > { %4737 = vmatpush3.msra.mxu0 %v8359_v25  ;;  %4764 = vmatpush3.msra.mxu1 %v8360_v56  ;;  %v8384_v25 = vld [vmem:[#allocation47_spill] sm:$0xff] }
 0x1c5   : > { %4738 = vmatprep.subr.mxu0 %v8314_v3  ;;  %4766 = vmatmul.mubr.f32.vlgmr.msra.gmra.mxu1 %v2783_v4 }
 0x1c6   : > { %4787 = vmatprep.subr.mxu1 %v8314_v3  ;;  %4739 = vmatpush3.msra.mxu0 %v8361_v61  ;;  %v1351_v61 = vmul.f32 0.5, %v5969_v28 }
 0x1c7   : > { %4788 = vmatpush3.msra.mxu1 %v8348_v10  ;;  %4740 = vmatprep.subr.mxu0 %v8314_v3 }
 0x1c8   : > { %4789 = vmatprep.subr.mxu1 %v8314_v3  ;;  %4741 = vmatpush3.msra.mxu0 %v8362_v44 }
 0x1c9   : > { %4790 = vmatpush3.msra.mxu1 %v8350_v13  ;;  %4742 = vmatprep.subr.mxu0 %v8314_v3 }
 0x1ca   : > { %4791 = vmatprep.subr.mxu1 %v8314_v3  ;;  %4743 = vmatpush3.msra.mxu0 %v8363_v36  ;;  %v1353_v36 = vmul.f32 0.5, %v5987_v33 }
 0x1cb   : > { %4792 = vmatpush3.msra.mxu1 %v8351_v21  ;;  %4744 = vmatprep.subr.mxu0 %v8314_v3 }
 0x1cc   : > { %4793 = vmatprep.subr.mxu1 %v8314_v3  ;;  %4745 = vmatpush3.msra.mxu0 %v8364_v6  ;;  %v1350_v6 = vmul.f32 0.5, %v5948_v14 }
 0x1cd   : > { %4746 = vmatprep.mubr.msk.f32.mxu0 %vm8349_vm11, %v8314_v3  ;;  %4794 = vmatpush3.msra.mxu1 %v8352_v43 }
 0x1ce   : > { %4747 = vmatmul.mubr.f32.vlgmr.msra.gmra.mxu0 %v2782_v46  ;;  %4768 = vmatprep.subr.mxu0 %v8314_v3 }
 0x1cf   : > { %4795 = vmatprep.subr.mxu1 %v8314_v3  ;;  %4769 = vmatpush3.msra.mxu0 %v8365_v48  ;;  %v1355_v48 = vmul.f32 0.5, %v6144_v30 }
 0x1d0   : > { %4796 = vmatpush3.msra.mxu1 %v8354_v41  ;;  %4770 = vmatprep.subr.mxu0 %v8314_v3 }
 0x1d1   : > { %4797 = vmatprep.subr.mxu1 %v8314_v3  ;;  %4771 = vmatpush3.msra.mxu0 %v8366_v60  ;;  %v1352_v60 = vmul.f32 0.5, %v8381_v59 }
 0x1d2   : > { %4798 = vmatpush3.msra.mxu1 %v8356_v32  ;;  %4772 = vmatprep.subr.mxu0 %v8314_v3 }
 0x1d3   : > { %4799 = vmatprep.subr.mxu1 %v8314_v3  ;;  %4773 = vmatpush3.msra.mxu0 %v8367_v11  ;;  %v1354_v11 = vmul.f32 0.5, %v8382_v8 }
 0x1d4   : > { %4800 = vmatpush3.msra.mxu1 %v8358_v50  ;;  %4774 = vmatprep.subr.mxu0 %v8314_v3 }
 0x1d5   : > { %4801 = vmatprep.subr.mxu1 %v8314_v3  ;;  %4775 = vmatpush3.msra.mxu0 %v8368_v1  ;;  %v1356_v1 = vmul.f32 0.5, %v8384_v25 }
 0x1d6   : > { %4802 = vmatpush3.msra.mxu1 %v8360_v56  ;;  %4803 = vmatprep.mubr.msk.f32.mxu1 %vm8349_vm11, %v8314_v3 }
 0x1d7   : > { %4776 = vmatprep.subr.mxu0 %v8314_v3  ;;  %4804 = vmatmul.mubr.f32.vlgmr.msra.gmra.mxu1 %v6164_v45 }
 0x1d8   : > { %4777 = vmatpush3.msra.mxu0 %v8369_v62  ;;  %4784 = vmatprep.mubr.msk.f32.mxu0 %vm8349_vm11, %v8314_v3 }
 0x1d9   : > { %4778 = vmatprep.subr.mxu0 %v8314_v3 }
 0x1da   : > { %4779 = vmatpush3.msra.mxu0 %v8370_v39 }
 0x1db   : > { %4780 = vmatprep.subr.mxu0 %v8314_v3 }
 0x1dc   : > { %4781 = vmatpush3.msra.mxu0 %v8371_v7 }
 0x1dd   : > { %4782 = vmatprep.subr.mxu0 %v8314_v3 }
 0x1de   : > { %4783 = vmatpush3.msra.mxu0 %v8372_v17 }
 0x1df   : > { %4785 = vmatmul.mubr.f32.vlgmr.msra.gmra.mxu0 %v6164_v45  ;;  %v8380_v45 = vld [vmem:[#allocation13_spill] sm:$0xff] }
 0x1eb   : > { %v6254_v47 = vpop.permute.xlu1 %1218 }
 0x1f0   : > { %v6256_v22 = vpop.permute.xlu1 %1222 }
 0x1f4   : > { %v6258_v2 = vpop.permute.xlu1 %1226 }
 0x1f5   : > { %8375 = vst [vmem:[#allocation63_spill] sm:$0xff] %v6258_v2 }
 0x20d   : > { %v6260_v15 = vpop.permute.xlu1 %1230 }
 0x20e   : > { %8376 = vst [vmem:[#allocation69_spill] sm:$0xff] %v6260_v15 }
 0x21a   : > { %v1252_v54 = vpop.permute.xlu1 %1251 }
 0x21b   : > { %v6263_v18 = vrot.slane %v1252_v54, %v5184_v55  ;;  %v6266_v20 = vrot.slane %v1252_v54, %v5175_v51  ;;  %v6269_v38 = vrot.slane %v1252_v54, %v8302_v63  ;;  %v6272_v5 = vrot.slane %v1252_v54, %v5178_v52 }
 0x21c   : > { %v6279_v23 = vrot.slane %v1252_v54, %v8312_v58  ;;  %v6282_v0 = vrot.slane %v1252_v54, %v5181_v53  ;;  %v6291_v46 = vrot.slane %v1252_v54, %v8380_v45  ;;  %v6302_v32 = vrot.slane %v1252_v54, %v8383_v24 }
 0x21d   : > { %8377 = vst [vmem:[#allocation64_spill] sm:$0xff] %v6263_v18  ;;  %8378 = vst [vmem:[#allocation73_spill] sm:$0xff] %v6269_v38  ;;  %v1295_v49 = vsub.f32 %v5969_v28, %v6263_v18  ;;  %v1293_v26 = vsub.f32 %v5953_v29, %v6266_v20  ;;  %v1297_v37 = vsub.f32 %v5987_v33, %v6269_v38  ;;  %v8417_v38 = vld [vmem:[#allocation11_spill] sm:$0xff] }
 0x21e   : > { %8379 = vst [vmem:[#allocation65_spill] sm:$0xff] %v6279_v23  ;;  %v1294_v35 = vsub.f32 %v5948_v14, %v6272_v5  ;;  %v1299_v13 = vsub.f32 %v6144_v30, %v6279_v23  ;;  %v1296_v21 = vsub.f32 %v8381_v59, %v6282_v0  ;;  %v1298_v41 = vsub.f32 %v8382_v8, %v6291_v46  ;;  %v8418_v18 = vld [vmem:[#allocation35_spill] sm:$0xff] }
 0x21f   : > { %v1303_v40 = vand.u32 2147483647, %v1295_v49  ;;  %v1301_v42 = vand.u32 2147483647, %v1293_v26  ;;  %v1305_v10 = vand.u32 2147483647, %v1297_v37  ;;  %v1300_v56 = vsub.f32 %v8384_v25, %v6302_v32  ;;  %v6326_v49 = vpop.permute.xlu0 %1220 }
 0x220   : > { %v1302_v4 = vand.u32 2147483647, %v1294_v35  ;;  %v1307_v34 = vand.u32 2147483647, %v1299_v13  ;;  %v1304_v43 = vand.u32 2147483647, %v1296_v21  ;;  %v1454_v21 = vpop.permute.xlu1 %1453 }
 0x221   : > { %1321 = vrot.lane.b32.xlu1 %v1303_v40, %s5038_s30  ;;  %1317 = vrot.lane.b32.xlu0 %v1301_v42, %s5038_s30  ;;  %v1306_v50 = vand.u32 2147483647, %v1298_v41  ;;  %v1308_v44 = vand.u32 2147483647, %v1300_v56  ;;  %8385 = vst [vmem:[#allocation74_spill] sm:$0xff] %v6326_v49  ;;  %v6443_v23 = vsub.f32 %v6152_v12, %v1454_v21 }
 0x223   : > { %v6328_v42 = vpop.permute.xlu0 %1224 }
 0x224   : > { %8386 = vst [vmem:[#allocation68_spill] sm:$0xff] %v6328_v42 }
 0x225   : > { %1325 = vrot.lane.b32.xlu1 %v1305_v10, %s5038_s30  ;;  %1319 = vrot.lane.b32.xlu0 %v1302_v4, %s5038_s30 }
 0x227   : > { %v6330_v35 = vpop.permute.xlu0 %1228 }
 0x228   : > { %8387 = vst [vmem:[#allocation77_spill] sm:$0xff] %v6330_v35 }
 0x229   : > { %1329 = vrot.lane.b32.xlu1 %v1307_v34, %s5038_s30  ;;  %1323 = vrot.lane.b32.xlu0 %v1304_v43, %s5038_s30 }
 0x22b   : > { %v6332_v34 = vpop.permute.xlu0 %1232 }
 0x22c   : > { %8388 = vst [vmem:[#allocation72_spill] sm:$0xff] %v6332_v34  ;;  %v8423_v34 = vld [vmem:[#allocation30_spill] sm:$0xff] }
 0x22d   : > { %1365 = vrot.lane.b32.xlu1 %v1349_v9, %s5037_s28  ;;  %1327 = vrot.lane.b32.xlu0 %v1306_v50, %s5038_s30 }
 0x231   : > { %1369 = vrot.lane.b32.xlu1 %v1351_v61, %s5037_s28  ;;  %1331 = vrot.lane.b32.xlu0 %v1308_v44, %s5038_s30 }
 0x235   : > { %1373 = vrot.lane.b32.xlu1 %v1353_v36, %s5037_s28  ;;  %1367 = vrot.lane.b32.xlu0 %v1350_v6, %s5037_s28 }
 0x239   : > { %1377 = vrot.lane.b32.xlu1 %v1355_v48, %s5037_s28  ;;  %1371 = vrot.lane.b32.xlu0 %v1352_v60, %s5037_s28 }
 0x23d   : > { %1375 = vrot.lane.b32.xlu0 %v1354_v11, %s5037_s28 }
 0x241   : > { %1379 = vrot.lane.b32.xlu0 %v1356_v1, %s5037_s28 }
 0x275   : > { %v2898_v62 = vpop.f32.mrf.mxu1 }
 0x277   : > { %v4729_v39 = vpop.f32.mrf.mxu1 }
 0x27d   : > { %v2787_v7 = vpop.f32.mrf.mxu0 }
 0x27e   : > { %v2899_v17 = vadd.f32 %v2898_v62, %v2787_v7 }
 0x27f   : > { %v4710_v54 = vpop.f32.mrf.mxu0 }
 0x285   : > { %v3067_v26 = vpop.f32.mrf.mxu1 }
 0x287   : > { %v4767_v40 = vpop.f32.mrf.mxu1 }
 0x28e   : > { %v2986_v37 = vpop.f32.mrf.mxu0 }
 0x28f   : > { %v2987_v10 = vadd.f32 %v2986_v37, %v2899_v17 }
 0x290   : > { %v4748_v4 = vpop.f32.mrf.mxu0 }
 0x291   : > { %v3068_v13 = vadd.f32 %v3067_v26, %v2987_v10 }
 0x293   : > { %v6334_v41 = vpop.permute.xlu0 %1317  ;;  %v6336_v9 = vpop.permute.xlu1 %1321 }
 0x297   : > { %v3241_v43 = vpop.f32.mrf.mxu1  ;;  %v6338_v56 = vpop.permute.xlu0 %1319 }
 0x298   : > { %8389 = vst [vmem:[#allocation81_spill] sm:$0xff] %v6338_v56  ;;  %v6340_v61 = vpop.permute.xlu1 %1325  ;;  %v8415_v56 = vld [vmem:[#allocation31_spill] sm:$0xff] }
 0x299   : > { %v4805_v50 = vpop.f32.mrf.mxu1  ;;  %8390 = vst [vmem:[#allocation78_spill] sm:$0xff] %v6340_v61  ;;  %v8414_v61 = vld [vmem:[#allocation10_spill] sm:$0xff] }
 0x29a   : > { %8416 = vst [vmem:[#allocation10_spill] sm:$0xff] %v6443_v23 }
 0x29b   : > { %v6342_v6 = vpop.permute.xlu0 %1323 }
 0x29c   : > { %8391 = vst [vmem:[#allocation79_spill] sm:$0xff] %v6342_v6  ;;  %v6344_v48 = vpop.permute.xlu1 %1329 }
 0x29d   : > { %8392 = vst [vmem:[#allocation80_spill] sm:$0xff] %v6344_v48 }
 0x29f   : > { %v3162_v44 = vpop.f32.mrf.mxu0  ;;  %v6348_v1 = vpop.permute.xlu0 %1327 }
 0x2a0   : > { %v3163_v36 = vadd.f32 %v3162_v44, %v3068_v13  ;;  %8394 = vst [vmem:[#allocation116_spill] sm:$0xff] %v6348_v1  ;;  %v1366_v62 = vpop.permute.xlu1 %1365 }
 0x2a1   : > { %v4786_v11 = vpop.f32.mrf.mxu0  ;;  %v6351_v39 = vsub.f32 %v5953_v29, %v1366_v62  ;;  %v6354_v7 = vadd.f32 %v5953_v29, %v1366_v62 }
 0x2a2   : > { %v6346_v60 = vadd.f32 %v3241_v43, %v3163_v36 }
 0x2a3   : > { %8395 = vst [vmem:[#allocation46_spill] sm:$0xff] %v6354_v7  ;;  %v6358_v17 = vsub.f32 %v6354_v7, %v6351_v39  ;;  %v6360_v54 = vpop.permute.xlu0 %1331  ;;  %v1470_v2 = vmax.f32 %v6351_v39, %v8414_v61  ;;  %v1486_v49 = vmin.f32 %v6354_v7, %v8415_v56 }
 0x2a4   : > { %8393 = vst [vmem:[#allocation84_spill] sm:$0xff] %v6346_v60  ;;  %8397 = vst [vmem:[#allocation118_spill] sm:$0xff] %v6360_v54  ;;  %v1370_v26 = vpop.permute.xlu1 %1369 }
 0x2a5   : > { %8396 = vst [vmem:[#allocation47_spill] sm:$0xff] %v6358_v17  ;;  %v6363_v40 = vsub.f32 %v5969_v28, %v1370_v26  ;;  %v6366_v37 = vadd.f32 %v5969_v28, %v1370_v26  ;;  %1421 = vrot.lane.b32.xlu1 %v6358_v17, %s5036_s26  ;;  %v1510_v21 = vsub.f32 %v1486_v49, %v1470_v2 }
 0x2a7   : > { %8398 = vst [vmem:[#allocation119_spill] sm:$0xff] %v6363_v40  ;;  %8399 = vst [vmem:[#allocation120_spill] sm:$0xff] %v6366_v37  ;;  %v6372_v29 = vsub.f32 %v6366_v37, %v6363_v40  ;;  %v1368_v10 = vpop.permute.xlu0 %1367  ;;  %v1488_v1 = vmin.f32 %v6366_v37, %v8423_v34  ;;  %v1518_v2 = vmax.f32 %v1510_v21, 0.0  ;;  %v8428_v37 = vld [vmem:[#allocation20_spill] sm:$0xff]  ;;  %v8430_v21 = vld [vmem:[#allocation21_spill] sm:$0xff] }
 0x2a8   : > { %v1374_v4 = vpop.permute.xlu1 %1373  ;;  %v6375_v13 = vsub.f32 %v5948_v14, %v1368_v10  ;;  %v6378_v43 = vadd.f32 %v5948_v14, %v1368_v10 }
 0x2a9   : > { %8400 = vst [vmem:[#allocation121_spill] sm:$0xff] %v6372_v29  ;;  %v6381_v50 = vsub.f32 %v5987_v33, %v1374_v4  ;;  %v6384_v44 = vadd.f32 %v5987_v33, %v1374_v4  ;;  %1425 = vrot.lane.b32.xlu1 %v6372_v29, %s5036_s26  ;;  %v8410_v29 = vld [vmem:[#allocation9_spill] sm:$0xff] }
 0x2aa   : > { %8401 = vst [vmem:[#allocation122_spill] sm:$0xff] %v6375_v13  ;;  %8402 = vst [vmem:[#allocation123_spill] sm:$0xff] %v6378_v43  ;;  %v6390_v36 = vsub.f32 %v6378_v43, %v6375_v13  ;;  %v1471_v17 = vmax.f32 %v6375_v13, %v8410_v29 }
 0x2ab   : > { %8403 = vst [vmem:[#allocation124_spill] sm:$0xff] %v6384_v44  ;;  %v6394_v11 = vsub.f32 %v6384_v44, %v6381_v50  ;;  %v1372_v62 = vpop.permute.xlu0 %1371 }
 0x2ac   : > { %8404 = vst [vmem:[#allocation125_spill] sm:$0xff] %v6390_v36  ;;  %v1378_v26 = vpop.permute.xlu1 %1377  ;;  %v6397_v10 = vsub.f32 %v8381_v59, %v1372_v62  ;;  %v6400_v3 = vadd.f32 %v8381_v59, %v1372_v62  ;;  %1423 = vrot.lane.b32.xlu0 %v6390_v36, %s5036_s26 }
 0x2ad   : > { %8405 = vst [vmem:[#allocation126_spill] sm:$0xff] %v6394_v11  ;;  %v6403_v4 = vsub.f32 %v6144_v30, %v1378_v26  ;;  %v6406_v60 = vadd.f32 %v6144_v30, %v1378_v26  ;;  %1429 = vrot.lane.b32.xlu1 %v6394_v11, %s5036_s26  ;;  %v8411_v26 = vld [vmem:[#allocation33_spill] sm:$0xff] }
 0x2ae   : > { %8406 = vst [vmem:[#allocation127_spill] sm:$0xff] %v6400_v3  ;;  %v6414_v27 = vsub.f32 %v6400_v3, %v6397_v10  ;;  %v1487_v48 = vmin.f32 %v6378_v43, %v8411_v26 }
 0x2af   : > { %8407 = vst [vmem:[#allocation128_spill] sm:$0xff] %v6406_v60  ;;  %v6418_v59 = vsub.f32 %v6406_v60, %v6403_v4  ;;  %v1376_v62 = vpop.permute.xlu0 %1375 }
 0x2b0   : > { %8408 = vst [vmem:[#allocation129_spill] sm:$0xff] %v6414_v27  ;;  %v6425_v36 = vsub.f32 %v8382_v8, %v1376_v62  ;;  %v6428_v11 = vadd.f32 %v8382_v8, %v1376_v62  ;;  %1427 = vrot.lane.b32.xlu0 %v6414_v27, %s5036_s26  ;;  %v1511_v62 = vsub.f32 %v1487_v48, %v1471_v17  ;;  %v8422_v48 = vld [vmem:[#allocation12_spill] sm:$0xff] }
 0x2b1   : > { %8409 = vst [vmem:[#allocation130_spill] sm:$0xff] %v6418_v59  ;;  %1433 = vrot.lane.b32.xlu1 %v6418_v59, %s5036_s26  ;;  %v1473_v27 = vmax.f32 %v6397_v10, %v8417_v38  ;;  %v1489_v59 = vmin.f32 %v6400_v3, %v8418_v18  ;;  %v1472_v17 = vmax.f32 %v6363_v40, %v8422_v48  ;;  %v8427_v48 = vld [vmem:[#allocation32_spill] sm:$0xff] }
 0x2b2   : > { %8412 = vst [vmem:[#allocation9_spill] sm:$0xff] %v6428_v11  ;;  %v6436_v15 = vsub.f32 %v6428_v11, %v6425_v36  ;;  %v1519_v16 = vmax.f32 %v1511_v62, 0.0  ;;  %v1490_v62 = vmin.f32 %v6384_v44, %v8427_v48  ;;  %v1666_v48 = vmax.f32 %v6354_v7, %v8415_v56 }
 0x2b3   : > { %v1380_v8 = vpop.permute.xlu0 %1379  ;;  %v1512_v49 = vsub.f32 %v1488_v1, %v1472_v17  ;;  %v1476_v17 = vmax.f32 %v6403_v4, %v8430_v21 }
 0x2b4   : > { %8413 = vst [vmem:[#allocation33_spill] sm:$0xff] %v6436_v15  ;;  %v6450_v57 = vsub.f32 %v8384_v25, %v1380_v8  ;;  %v6453_v54 = vadd.f32 %v8384_v25, %v1380_v8  ;;  %1431 = vrot.lane.b32.xlu0 %v6436_v15, %s5036_s26  ;;  %v1513_v25 = vsub.f32 %v1489_v59, %v1473_v27  ;;  %v8424_v8 = vld [vmem:[#allocation16_spill] sm:$0xff]  ;;  %v8425_v15 = vld [vmem:[#allocation37_spill] sm:$0xff] }
 0x2b5   : > { %1458 = vrot.lane.b32.xlu1 %v6443_v23, %s5036_s26  ;;  %v1475_v35 = vmax.f32 %v6425_v36, %v8424_v8  ;;  %v1491_v6 = vmin.f32 %v6428_v11, %v8425_v15  ;;  %v8426_v23 = vld [vmem:[#allocation17_spill] sm:$0xff] }
 0x2b6   : > { %8419 = vst [vmem:[#allocation31_spill] sm:$0xff] %v6450_v57  ;;  %8420 = vst [vmem:[#allocation11_spill] sm:$0xff] %v6453_v54  ;;  %v6461_v12 = vsub.f32 %v6453_v54, %v6450_v57  ;;  %v1474_v40 = vmax.f32 %v6381_v50, %v8426_v23  ;;  %v1521_v27 = vmax.f32 %v1513_v25, 0.0  ;;  %v1477_v34 = vmax.f32 %v6450_v57, %v8428_v37 }
 0x2b7   : > { %v1515_v59 = vsub.f32 %v1491_v6, %v1475_v35  ;;  %v1493_v42 = vmin.f32 %v6453_v54, %v8429_v19  ;;  %v1650_v6 = vmin.f32 %v6351_v39, %v8414_v61 }
 0x2b8   : > { %8421 = vst [vmem:[#allocation35_spill] sm:$0xff] %v6461_v12  ;;  %1435 = vrot.lane.b32.xlu0 %v6461_v12, %s5036_s26  ;;  %v1514_v1 = vsub.f32 %v1490_v62, %v1474_v40  ;;  %v8431_v12 = vld [vmem:[#allocation34_spill] sm:$0xff] }
 0x2b9   : > { %1536 = vrot.lane.b32.xlu1 %v1519_v16, %s5036_s26  ;;  %v1520_v16 = vmax.f32 %v1512_v49, 0.0  ;;  %v1492_v44 = vmin.f32 %v6406_v60, %v8431_v12  ;;  %v1523_v25 = vmax.f32 %v1515_v59, 0.0  ;;  %v1517_v35 = vsub.f32 %v1493_v42, %v1477_v34 }
 0x2ba   : > { %v1690_v62 = vsub.f32 %v1666_v48, %v1650_v6  ;;  %v1667_v42 = vmax.f32 %v6378_v43, %v8411_v26  ;;  %v1653_v59 = vmin.f32 %v6397_v10, %v8417_v38  ;;  %v1655_v26 = vmin.f32 %v6425_v36, %v8424_v8  ;;  %v8432_v6 = vld [vmem:[#allocation36_spill] sm:$0xff] }
 0x2bb   : > { %v1516_v40 = vsub.f32 %v1492_v44, %v1476_v17  ;;  %v1525_v49 = vmax.f32 %v1517_v35, 0.0  ;;  %v1669_v44 = vmax.f32 %v6400_v3, %v8418_v18  ;;  %v1657_v38 = vmin.f32 %v6450_v57, %v8428_v37 }
 0x2bc   : > { %1534 = vrot.lane.b32.xlu0 %v1518_v2, %s5036_s26  ;;  %v1522_v2 = vmax.f32 %v1514_v1, 0.0  ;;  %v1698_v56 = vmax.f32 %v1690_v62, 0.0  ;;  %v1673_v18 = vmax.f32 %v6453_v54, %v8429_v19  ;;  %v1795_v8 = vmax.f32 %v6375_v13, %v8432_v6 }
 0x2bd   : > { %1540 = vrot.lane.b32.xlu1 %v1521_v27, %s5036_s26  ;;  %v1651_v27 = vmin.f32 %v6375_v13, %v8410_v29  ;;  %v1524_v34 = vmax.f32 %v1516_v40, 0.0  ;;  %v1693_v48 = vsub.f32 %v1669_v44, %v1653_v59  ;;  %v1813_v19 = vmin.f32 %v6400_v3, %v6282_v0  ;;  %v8435_v44 = vld [vmem:[#allocation45_spill] sm:$0xff] }
 0x2be   : > { %v1697_v35 = vsub.f32 %v1673_v18, %v1657_v38  ;;  %v1989_v38 = vmax.f32 %v6354_v7, %v6266_v20 }
 0x2bf   : > { %v1691_v61 = vsub.f32 %v1667_v42, %v1651_v27  ;;  %v1701_v1 = vmax.f32 %v1693_v48, 0.0  ;;  %v8434_v42 = vld [vmem:[#allocation44_spill] sm:$0xff]  ;;  %v1817_v48 = vmin.f32 %v6453_v54, %v6302_v32 }
 0x2c0   : > { %1538 = vrot.lane.b32.xlu0 %v1520_v16, %s5036_s26  ;;  %v1671_v16 = vmax.f32 %v6428_v11, %v8425_v15  ;;  %v1811_v15 = vmin.f32 %v6378_v43, %v6272_v5 }
 0x2c1   : > { %1544 = vrot.lane.b32.xlu1 %v1523_v25, %s5036_s26  ;;  %v1699_v29 = vmax.f32 %v1691_v61, 0.0 }
 0x2c2   : > { %v1695_v17 = vsub.f32 %v1671_v16, %v1655_v26  ;;  %v1835_v40 = vsub.f32 %v1811_v15, %v1795_v8  ;;  %v1990_v8 = vmax.f32 %v6378_v43, %v6272_v5  ;;  %v1978_v5 = vmin.f32 %v6425_v36, %v8434_v42 }
 0x2c4   : > { %1542 = vrot.lane.b32.xlu0 %v1522_v2, %s5036_s26  ;;  %v1703_v25 = vmax.f32 %v1695_v17, 0.0  ;;  %v1705_v2 = vmax.f32 %v1697_v35, 0.0  ;;  %v1843_v62 = vmax.f32 %v1835_v40, 0.0  ;;  %v1974_v35 = vmin.f32 %v6375_v13, %v8432_v6 }
 0x2c5   : > { %1548 = vrot.lane.b32.xlu1 %v1525_v49, %s5036_s26  ;;  %v8433_v49 = vld [vmem:[#allocation43_spill] sm:$0xff] }
 0x2c6   : > { %v1797_v37 = vmax.f32 %v6397_v10, %v8433_v49  ;;  %v1976_v40 = vmin.f32 %v6397_v10, %v8433_v49 }
 0x2c8   : > { %1546 = vrot.lane.b32.xlu0 %v1524_v34, %s5036_s26  ;;  %v1837_v27 = vsub.f32 %v1813_v19, %v1797_v37  ;;  %v1799_v34 = vmax.f32 %v6425_v36, %v8434_v42  ;;  %v1992_v37 = vmax.f32 %v6400_v3, %v6282_v0  ;;  %v8437_v19 = vld [vmem:[#allocation15_spill] sm:$0xff]  ;;  %v1996_v42 = vmax.f32 %v6453_v54, %v6302_v32 }
 0x2c9   : > { %1714 = vrot.lane.b32.xlu1 %v1698_v56, %s5036_s26  ;;  %v1815_v56 = vmin.f32 %v6428_v11, %v6291_v46  ;;  %v6563_v0 = vrot.slane %v8437_v19, %v5184_v55  ;;  %v6582_v32 = vrot.slane %v8437_v19, %v8312_v58 }
 0x2ca   : > { %v1845_v61 = vmax.f32 %v1837_v27, 0.0  ;;  %v2016_v27 = vsub.f32 %v1992_v37, %v1976_v40 }
 0x2cb   : > { %v1839_v59 = vsub.f32 %v1815_v56, %v1799_v34  ;;  %v1994_v34 = vmax.f32 %v6428_v11, %v6291_v46  ;;  %v682_v46 = vsub.f32 %v5969_v28, %v6563_v0  ;;  %v686_v37 = vsub.f32 %v6144_v30, %v6582_v32 }
 0x2cc   : > { %v2024_v56 = vmax.f32 %v2016_v27, 0.0  ;;  %v8443_v27 = vld [vmem:[#allocation2_spill] sm:$0xff] }
 0x2cd   : > { %1716 = vrot.lane.b32.xlu1 %v1699_v29, %s5036_s26  ;;  %v1801_v29 = vmax.f32 %v6450_v57, %v8435_v44  ;;  %v1847_v26 = vmax.f32 %v1839_v59, 0.0  ;;  %v1980_v59 = vmin.f32 %v6450_v57, %v8435_v44 }
 0x2cf   : > { %v1841_v16 = vsub.f32 %v1817_v48, %v1801_v29  ;;  %v8438_v48 = vld [vmem:[#allocation76_spill] sm:$0xff] }
 0x2d1   : > { %1720 = vrot.lane.b32.xlu1 %v1701_v1, %s5036_s26  ;;  %v8436_v1 = vld [vmem:[#allocation40_spill] sm:$0xff]  ;;  %v1849_v18 = vmax.f32 %v1841_v16, 0.0 }
 0x2d2   : > { %v1973_v17 = vmin.f32 %v6351_v39, %v8436_v1 }
 0x2d5   : > { %1724 = vrot.lane.b32.xlu1 %v1703_v25, %s5036_s26  ;;  %v2013_v25 = vsub.f32 %v1989_v38, %v1973_v17  ;;  %v2020_v17 = vsub.f32 %v1996_v42, %v1980_v59  ;;  %v690_v38 = vand.u32 2147483647, %v682_v46  ;;  %v694_v42 = vand.u32 2147483647, %v686_v37 }
 0x2d7   : > { %v2021_v15 = vmax.f32 %v2013_v25, 0.0  ;;  %v8440_v25 = vld [vmem:[#allocation82_spill] sm:$0xff] }
 0x2d9   : > { %1728 = vrot.lane.b32.xlu1 %v1705_v2, %s5036_s26  ;;  %v2014_v2 = vsub.f32 %v1990_v8, %v1974_v35  ;;  %v789_v35 = vadd.f32 %v8440_v25, %v690_v38  ;;  %v8441_v8 = vld [vmem:[#allocation99_spill] sm:$0xff]  ;;  %v8450_v25 = vld [vmem:[#allocation96_spill] sm:$0xff] }
 0x2db   : > { %v2022_v6 = vmax.f32 %v2014_v2, 0.0  ;;  %v2028_v2 = vmax.f32 %v2020_v17, 0.0  ;;  %v8448_v17 = vld [vmem:[#allocation87_spill] sm:$0xff] }
 0x2dc   : > { %v793_v38 = vadd.f32 %v8448_v17, %v694_v42  ;;  %v6626_v42 = vrot.slane %v8443_v27, %v8380_v45 }
 0x2dd   : > { %1860 = vrot.lane.b32.xlu1 %v1843_v62, %s5036_s26  ;;  %v6552_v62 = vrot.slane %v8437_v19, %v5178_v52 }
 0x2df   : > { %v681_v49 = vsub.f32 %v5948_v14, %v6552_v62  ;;  %v6574_v14 = vrot.slane %v8437_v19, %v8302_v63 }
 0x2e1   : > { %1864 = vrot.lane.b32.xlu1 %v1845_v61, %s5036_s26  ;;  %v2018_v61 = vsub.f32 %v1994_v34, %v1978_v5  ;;  %v689_v29 = vand.u32 2147483647, %v681_v49  ;;  %v684_v44 = vsub.f32 %v5987_v33, %v6574_v14  ;;  %v6594_v5 = vrot.slane %v8443_v27, %v5175_v51  ;;  %v8444_v34 = vld [vmem:[#allocation85_spill] sm:$0xff] }
 0x2e3   : > { %v2026_v16 = vmax.f32 %v2018_v61, 0.0  ;;  %v692_v40 = vand.u32 2147483647, %v684_v44 }
 0x2e5   : > { %1868 = vrot.lane.b32.xlu1 %v1847_v26, %s5036_s26  ;;  %v788_v26 = vadd.f32 %v8438_v48, %v689_v29  ;;  %v791_v49 = vadd.f32 %v8444_v34, %v692_v40  ;;  %v8446_v29 = vld [vmem:[#allocation94_spill] sm:$0xff]  ;;  %v6615_v40 = vrot.slane %v8443_v27, %v5181_v53 }
 0x2e6   : > { %v6600_v48 = vld [vmem:[%s5172_s25] sm:$0xff] }
 0x2e7   : > { %v890_v46 = vadd.f32 %v8446_v29, %v791_v49  ;;  %v8452_v34 = vld [vmem:[#allocation106_spill] sm:$0xff] }
 0x2e9   : > { %1872 = vrot.lane.b32.xlu1 %v1849_v18, %s5036_s26  ;;  %v8439_v18 = vld [vmem:[#allocation89_spill] sm:$0xff] }
 0x2ea   : > { %v887_v28 = vadd.f32 %v8439_v18, %v788_v26  ;;  %v1036_v26 = vsub.f32 %v6600_v48, %v6594_v5  ;;  %v8449_v18 = vld [vmem:[#allocation100_spill] sm:$0xff] }
 0x2ed   : > { %2037 = vrot.lane.b32.xlu1 %v2021_v15, %s5036_s26  ;;  %v986_v15 = vadd.f32 %v8441_v8, %v887_v28  ;;  %v989_v28 = vadd.f32 %v8449_v18, %v890_v46  ;;  %v1044_v8 = vand.u32 2147483647, %v1036_v26  ;;  %v8453_v26 = vld [vmem:[#allocation108_spill] sm:$0xff]  ;;  %v6632_v18 = vld [vmem:[%s5172_s25 + $0x28] sm:$0xff] }
 0x2ef   : > { %v3247_v59 = vmul.f32 5.0, %v986_v15  ;;  %v5011_v15 = vld [vmem:[%s5172_s25 + $0x10] sm:$0xff]  ;;  %v3250_v37 = vmul.f32 5.0, %v989_v28  ;;  %v1143_v49 = vadd.f32 %v8452_v34, %v1044_v8  ;;  %v1041_v28 = vsub.f32 %v6632_v18, %v6626_v42 }
 0x2f1   : > { %2039 = vrot.lane.b32.xlu1 %v2022_v6, %s5036_s26  ;;  %v8442_v6 = vld [vmem:[#allocation92_spill] sm:$0xff]  ;;  %v1242_v29 = vadd.f32 %v6254_v47, %v1143_v49  ;;  %v8456_v49 = vld [vmem:[#allocation61_spill] sm:$0xff] }
 0x2f2   : > { %v888_v33 = vadd.f32 %v8442_v6, %v789_v35  ;;  %v892_v35 = vadd.f32 %v8450_v25, %v793_v38  ;;  %v8451_v6 = vld [vmem:[#allocation102_spill] sm:$0xff]  ;;  %v6638_v25 = vrot.slane %v8443_v27, %v8383_v24 }
 0x2f3   : > { %v1341_v38 = vadd.f32 %v6334_v41, %v1242_v29  ;;  %v1049_v41 = vand.u32 2147483647, %v1041_v28  ;;  %v8460_v28 = vld [vmem:[#allocation116_spill] sm:$0xff] }
 0x2f5   : > { %2043 = vrot.lane.b32.xlu1 %v2024_v56, %s5036_s26  ;;  %v8445_v56 = vld [vmem:[#allocation98_spill] sm:$0xff]  ;;  %v3408_v8 = vmul.f32 5.0, %v1341_v38 }
 0x2f6   : > { %v987_v61 = vadd.f32 %v8445_v56, %v888_v33  ;;  %v991_v33 = vadd.f32 %v8451_v6, %v892_v35 }
 0x2f8   : > { %v3248_v44 = vmul.f32 5.0, %v987_v61  ;;  %v6620_v61 = vld [vmem:[%s5172_s25 + $0x18] sm:$0xff]  ;;  %v3252_v46 = vmul.f32 5.0, %v991_v33  ;;  %v8455_v33 = vld [vmem:[#allocation68_spill] sm:$0xff] }
 0x2f9   : > { %2047 = vrot.lane.b32.xlu1 %v2026_v16, %s5036_s26  ;;  %v6606_v16 = vrot.slane %v8443_v27, %v5184_v55  ;;  %v8461_v55 = vld [vmem:[#allocation72_spill] sm:$0xff] }
 0x2fb   : > { %8447 = vst [vmem:[#allocation16_spill] sm:$0xff] %v6606_v16 }
 0x2fd   : > { %2051 = vrot.lane.b32.xlu1 %v2028_v2, %s5036_s26  ;;  %v1038_v2 = vsub.f32 %v5011_v15, %v6606_v16 }
 0x2ff   : > { %v1046_v56 = vand.u32 2147483647, %v1038_v2  ;;  %v8454_v2 = vmov 4  }
 0x301   : > { %3266 = vperm.xlu1 %4847, %v3247_v59   ;;  %v1039_v59 = vsub.f32 %v6620_v61, %v6615_v40  ;;  %v1145_v17 = vadd.f32 %v8453_v26, %v1046_v56  ;;  %v1148_v56 = vadd.f32 %v8456_v49, %v1049_v41  ;;  %v8464_v49 = vld [vmem:[#allocation12_spill] sm:$0xff] }
 0x303   : > { %v1244_v35 = vadd.f32 %v6256_v22, %v1145_v17  ;;  %v8457_v22 = vld [vmem:[#allocation79_spill] sm:$0xff]  ;;  %v8459_v17 = vld [vmem:[#allocation62_spill] sm:$0xff] }
 0x305   : > { %3269 = vperm.xlu1 %4847, %v3248_v44   ;;  %v1047_v44 = vand.u32 2147483647, %v1039_v59  ;;  %v1343_v15 = vadd.f32 %v6336_v9, %v1244_v35 }
 0x307   : > { %v1146_v47 = vadd.f32 %v6248_v31, %v1047_v44  ;;  %v3410_v59 = vmul.f32 5.0, %v1343_v15  ;;  %v8462_v15 = vld [vmem:[#allocation118_spill] sm:$0xff] }
 0x309   : > { %3275 = vperm.xlu1 %4847, %v3250_v37   ;;  %v6645_v37 = vld [vmem:[%s5172_s25 + $0x38] sm:$0xff]  ;;  %v1245_v34 = vadd.f32 %v8455_v33, %v1146_v47 }
 0x30a   : > { %v1043_v6 = vsub.f32 %v6645_v37, %v6638_v25 }
 0x30b   : > { %v1344_v29 = vadd.f32 %v8457_v22, %v1245_v34  ;;  %v8466_v22 = vld [vmem:[#allocation30_spill] sm:$0xff] }
 0x30c   : > { %v1051_v31 = vand.u32 2147483647, %v1043_v6 }
 0x30d   : > { %3281 = vperm.xlu1 %4847, %v3252_v46   ;;  %v8458_v46 = vld [vmem:[#allocation77_spill] sm:$0xff]  ;;  %v3411_v44 = vmul.f32 5.0, %v1344_v29  ;;  %v8467_v29 = vld [vmem:[#allocation120_spill] sm:$0xff] }
 0x30e   : > { %v1247_v26 = vadd.f32 %v8458_v46, %v1148_v56  ;;  %v1150_v38 = vadd.f32 %v8459_v17, %v1051_v31  ;;  %v8465_v56 = vld [vmem:[#allocation119_spill] sm:$0xff]  ;;  %v1668_v31 = vmax.f32 %v8467_v29, %v8466_v22 }
 0x310   : > { %v1346_v35 = vadd.f32 %v8460_v28, %v1247_v26  ;;  %v1249_v16 = vadd.f32 %v8461_v55, %v1150_v38  ;;  %v8468_v55 = vmov 0   ;;  %v8469_v26 = vld [vmem:[#allocation10_spill] sm:$0xff]  ;;  %v1654_v38 = vmin.f32 %v6381_v50, %v8426_v23  ;;  %v8472_v28 = vld [vmem:[#allocation124_spill] sm:$0xff] }
 0x311   : > { %4848 = vset.pattern.permute.xlu1 %v8454_v2  ;;  %v1794_v23 = vmax.f32 %v6351_v39, %v8436_v1 }
 0x312   : > { %3425 = vperm.xlu1 %4848, %v3408_v8   ;;  %v3413_v8 = vmul.f32 5.0, %v1346_v35  ;;  %v1348_v41 = vadd.f32 %v8462_v15, %v1249_v16 }
 0x314   : > { %v3415_v33 = vmul.f32 5.0, %v1348_v41  ;;  %v1656_v41 = vmin.f32 %v6403_v4, %v8430_v21  ;;  %v8474_v21 = vld [vmem:[#allocation42_spill] sm:$0xff] }
 0x316   : > { %3431 = vperm.xlu1 %4848, %v3410_v59   ;;  %v1652_v59 = vmin.f32 %v8465_v56, %v8464_v49  ;;  %v8473_v49 = vmov 6  }
 0x317   : > { %v6653_v9 = vpop.permute.xlu1 %1421 }
 0x318   : > { %v1692_v16 = vsub.f32 %v1668_v31, %v1652_v59  ;;  %v1810_v31 = vmin.f32 %v6354_v7, %v6266_v20 }
 0x31a   : > { %3434 = vperm.xlu1 %4848, %v3411_v44   ;;  %v8471_v44 = vld [vmem:[#allocation32_spill] sm:$0xff] }
 0x31b   : > { %v6658_v47 = vpop.permute.xlu1 %1425  ;;  %v1670_v35 = vmax.f32 %v8472_v28, %v8471_v44 }
 0x31d   : > { %v1694_v15 = vsub.f32 %v1670_v35, %v1654_v38 }
 0x31e   : > { %3440 = vperm.xlu1 %4848, %v3413_v8   ;;  %v1700_v8 = vmax.f32 %v1692_v16, 0.0  ;;  %v1796_v16 = vmax.f32 %v8465_v56, %v8474_v21 }
 0x31f   : > { %v6661_v6 = vpop.permute.xlu1 %1429  ;;  %v1702_v59 = vmax.f32 %v1694_v15, 0.0  ;;  %v8477_v15 = vld [vmem:[#allocation73_spill] sm:$0xff] }
 0x320   : > { %v1814_v20 = vmin.f32 %v8472_v28, %v8477_v15 }
 0x322   : > { %3446 = vperm.xlu1 %4848, %v3415_v33   ;;  %v1672_v33 = vmax.f32 %v6406_v60, %v8431_v12  ;;  %v8475_v12 = vld [vmem:[#allocation64_spill] sm:$0xff] }
 0x323   : > { %v6663_v34 = vpop.permute.xlu1 %1433  ;;  %v1812_v38 = vmin.f32 %v8467_v29, %v8475_v12 }
 0x324   : > { %8463 = vst [vmem:[#allocation37_spill] sm:$0xff] %v6663_v34  ;;  %v1696_v22 = vsub.f32 %v1672_v33, %v1656_v41 }
 0x325   : > { %v1836_v35 = vsub.f32 %v1812_v38, %v1796_v16  ;;  %v1975_v38 = vmin.f32 %v8465_v56, %v8474_v21 }
 0x326   : > { %4851 = vset.pattern.permute.xlu1 %v8468_v55 }
 0x327   : > { %v1459_v46 = vpop.permute.xlu1 %1458  ;;  %v1844_v41 = vmax.f32 %v1836_v35, 0.0  ;;  %v6711_v35 = vrot.slane %v8443_v27, %v5178_v52  ;;  %v8520_v52 = vld [vmem:[#allocation27_spill] sm:$0xff] }
 0x328   : > { %v6671_v17 = vmul.f32 %v1459_v46, %v8469_v26  ;;  %v1704_v46 = vmax.f32 %v1696_v22, 0.0  ;;  %v1834_v26 = vsub.f32 %v1810_v31, %v1794_v23  ;;  %v8479_v23 = vld [vmem:[#allocation65_spill] sm:$0xff] }
 0x329   : > { %v1816_v31 = vmin.f32 %v6406_v60, %v8479_v23 }
 0x32a   : > { %8470 = vst [vmem:[#allocation17_spill] sm:$0xff] %v6671_v17  ;;  %1568 = vperm.xlu0 %4845, %v6671_v17   ;;  %v1842_v44 = vmax.f32 %v1834_v26, 0.0 }
 0x32e   : > { %1718 = vrot.lane.b32.xlu0 %v1700_v8, %s5036_s26  ;;  %v8476_v8 = vld [vmem:[#allocation39_spill] sm:$0xff] }
 0x32f   : > { %4846 = vset.pattern.permute.xlu0 %v8473_v49  ;;  %v1798_v1 = vmax.f32 %v6381_v50, %v8476_v8 }
 0x331   : > { %v1838_v33 = vsub.f32 %v1814_v20, %v1798_v1  ;;  %v1977_v20 = vmin.f32 %v6381_v50, %v8476_v8  ;;  %v1995_v8 = vmax.f32 %v6406_v60, %v8479_v23 }
 0x332   : > { %1722 = vrot.lane.b32.xlu0 %v1702_v59, %s5036_s26  ;;  %v8478_v59 = vld [vmem:[#allocation41_spill] sm:$0xff] }
 0x333   : > { %v1800_v22 = vmax.f32 %v6403_v4, %v8478_v59 }
 0x335   : > { %v1840_v26 = vsub.f32 %v1816_v31, %v1800_v22  ;;  %v6722_v22 = vrot.slane %v8443_v27, %v8302_v63 }
 0x336   : > { %1726 = vrot.lane.b32.xlu0 %v1704_v46, %s5036_s26  ;;  %v1846_v46 = vmax.f32 %v1838_v33, 0.0  ;;  %v5015_v33 = vld [vmem:[%s5172_s25 + $0x8] sm:$0xff] }
 0x337   : > { %v1848_v16 = vmax.f32 %v1840_v26, 0.0  ;;  %v1037_v21 = vsub.f32 %v5015_v33, %v6711_v35  ;;  %v8482_v33 = vld [vmem:[#allocation74_spill] sm:$0xff] }
 0x339   : > { %v1045_v26 = vand.u32 2147483647, %v1037_v21 }
 0x33a   : > { %1858 = vrot.lane.b32.xlu0 %v1842_v44, %s5036_s26  ;;  %v1991_v44 = vmax.f32 %v8467_v29, %v8475_v12 }
 0x33c   : > { %v2015_v1 = vsub.f32 %v1991_v44, %v1975_v38  ;;  %v6733_v38 = vrot.slane %v8443_v27, %v8312_v58  ;;  %v8481_v44 = vld [vmem:[#allocation104_spill] sm:$0xff]  ;;  %v6744_v27 = vrot.slane %v8437_v19, %v5175_v51  ;;  %v1483_v51 = vmin.f32 %v6428_v11, %v8520_v52 }
 0x33e   : > { %1862 = vrot.lane.b32.xlu0 %v1844_v41, %s5036_s26  ;;  %v1993_v41 = vmax.f32 %v8472_v28, %v8477_v15  ;;  %v2023_v12 = vmax.f32 %v2015_v1, 0.0  ;;  %8480 = vst [vmem:[#allocation20_spill] sm:$0xff] %v6733_v38  ;;  %v1144_v1 = vadd.f32 %v8481_v44, %v1045_v26  ;;  %v1042_v23 = vsub.f32 %v6144_v30, %v6733_v38 }
 0x33f   : > { %v680_v30 = vsub.f32 %v6600_v48, %v6744_v27  ;;  %v6765_v48 = vpop.permute.xlu1 %1536 }
 0x340   : > { %v2017_v31 = vsub.f32 %v1993_v41, %v1977_v20  ;;  %v1243_v21 = vadd.f32 %v8482_v33, %v1144_v1  ;;  %v1050_v26 = vand.u32 2147483647, %v1042_v23  ;;  %v8488_v33 = vld [vmem:[#allocation69_spill] sm:$0xff]  ;;  %8489 = vst [vmem:[#allocation38_spill] sm:$0xff] %v6765_v48 }
 0x342   : > { %1866 = vrot.lane.b32.xlu0 %v1846_v46, %s5036_s26  ;;  %v1979_v46 = vmin.f32 %v6403_v4, %v8478_v59  ;;  %v2025_v20 = vmax.f32 %v2017_v31, 0.0  ;;  %v8485_v31 = vld [vmem:[#allocation63_spill] sm:$0xff] }
 0x343   : > { %v6778_v38 = vpop.permute.xlu1 %1540 }
 0x344   : > { %v2019_v41 = vsub.f32 %v1995_v8, %v1979_v46  ;;  %v6754_v8 = vrot.slane %v8437_v19, %v5181_v53  ;;  %8495 = vst [vmem:[#allocation21_spill] sm:$0xff] %v6778_v38 }
 0x346   : > { %1870 = vrot.lane.b32.xlu0 %v1848_v16, %s5036_s26  ;;  %v5016_v16 = vld [vmem:[%s5172_s25 + $0x20] sm:$0xff]  ;;  %v683_v23 = vsub.f32 %v6620_v61, %v6754_v8  ;;  %s403_s25 = scalar_lea.vmem %s7934_s8, %s5107_s13 }
 0x347   : > { %v1040_v15 = vsub.f32 %v5016_v16, %v6722_v22  ;;  %v8483_v16 = vld [vmem:[#allocation107_spill] sm:$0xff]  ;;  %v8492_v61 = vld [vmem:[#allocation90_spill] sm:$0xff] }
 0x349   : > { %v1048_v59 = vand.u32 2147483647, %v1040_v15  ;;  %v8486_v15 = vld [vmem:[#allocation109_spill] sm:$0xff] }
 0x34a   : > { %1891 = vperm.xlu0 %4846, %v6671_v17   ;;  %v8484_v17 = vld [vmem:[#allocation81_spill] sm:$0xff]  ;;  %v1149_v44 = vadd.f32 %v8486_v15, %v1050_v26  ;;  %v8491_v26 = vld [vmem:[#allocation75_spill] sm:$0xff] }
 0x34b   : > { %v1342_v49 = vadd.f32 %v8484_v17, %v1243_v21 }
 0x34c   : > { %v1248_v17 = vadd.f32 %v8488_v33, %v1149_v44  ;;  %v8494_v33 = vld [vmem:[#allocation97_spill] sm:$0xff] }
 0x34d   : > { %v3409_v1 = vmul.f32 5.0, %v1342_v49 }
 0x34e   : > { %2041 = vrot.lane.b32.xlu0 %v2023_v12, %s5036_s26  ;;  %v1147_v12 = vadd.f32 %v8483_v16, %v1048_v59  ;;  %v8490_v16 = vld [vmem:[#allocation80_spill] sm:$0xff] }
 0x34f   : > { %4849 = vset.pattern.permute.xlu0 %v8454_v2  ;;  %v2027_v2 = vmax.f32 %v2019_v41, 0.0  ;;  %v688_v41 = vand.u32 2147483647, %v680_v30  ;;  %v6773_v30 = vrot.slane %v8437_v19, %v8383_v24 }
 0x350   : > { %v1246_v46 = vadd.f32 %v8485_v31, %v1147_v12  ;;  %v1347_v12 = vadd.f32 %v8490_v16, %v1248_v17  ;;  %v691_v31 = vand.u32 2147483647, %v683_v23  ;;  %v8496_v23 = vld [vmem:[#allocation91_spill] sm:$0xff] }
 0x351   : > { %v787_v49 = vadd.f32 %v8491_v26, %v688_v41  ;;  %v687_v41 = vsub.f32 %v6645_v37, %v6773_v30  ;;  %v8498_v26 = vld [vmem:[#allocation101_spill] sm:$0xff] }
 0x352   : > { %2045 = vrot.lane.b32.xlu0 %v2025_v20, %s5036_s26  ;;  %v8487_v20 = vld [vmem:[#allocation78_spill] sm:$0xff]  ;;  %v3414_v44 = vmul.f32 5.0, %v1347_v12 }
 0x353   : > { %v1345_v59 = vadd.f32 %v8487_v20, %v1246_v46  ;;  %v886_v15 = vadd.f32 %v8492_v61, %v787_v49  ;;  %v695_v12 = vand.u32 2147483647, %v687_v41  ;;  %v8499_v49 = vld [vmem:[#allocation93_spill] sm:$0xff]  ;;  %v6787_v61 = vpop.permute.xlu1 %1544 }
 0x354   : > { %8500 = vst [vmem:[#allocation34_spill] sm:$0xff] %v6787_v61 }
 0x355   : > { %v3412_v21 = vmul.f32 5.0, %v1345_v59  ;;  %v985_v59 = vadd.f32 %v8494_v33, %v886_v15  ;;  %v8501_v15 = vld [vmem:[#allocation88_spill] sm:$0xff]  ;;  %v8503_v33 = vld [vmem:[#allocation95_spill] sm:$0xff] }
 0x356   : > { %2049 = vrot.lane.b32.xlu0 %v2027_v2, %s5036_s26  ;;  %v6763_v2 = vrot.slane %v8437_v19, %v8380_v45 }
 0x357   : > { %v3246_v19 = vmul.f32 5.0, %v985_v59  ;;  %v8504_v59 = vld [vmem:[#allocation105_spill] sm:$0xff] }
 0x358   : > { %v685_v46 = vsub.f32 %v6632_v18, %v6763_v2  ;;  %v1467_v53 = vmax.f32 %v6425_v36, %v6763_v2 }
 0x35a   : > { %3428 = vperm.xlu0 %4849, %v3409_v1   ;;  %v8493_v1 = vld [vmem:[#allocation83_spill] sm:$0xff]  ;;  %v693_v17 = vand.u32 2147483647, %v685_v46  ;;  %v794_v46 = vadd.f32 %v8501_v15, %v695_v12 }
 0x35b   : > { %v790_v20 = vadd.f32 %v8493_v1, %v691_v31  ;;  %v8502_v1 = vld [vmem:[#allocation103_spill] sm:$0xff] }
 0x35d   : > { %v889_v18 = vadd.f32 %v8496_v23, %v790_v20  ;;  %v893_v20 = vadd.f32 %v8503_v33, %v794_v46  ;;  %v1462_v46 = vmax.f32 %v6351_v39, %v6744_v27  ;;  %v1465_v33 = vmax.f32 %v6397_v10, %v6754_v8 }
 0x35e   : > { %3437 = vperm.xlu0 %4849, %v3412_v21   ;;  %v8497_v21 = vld [vmem:[#allocation86_spill] sm:$0xff] }
 0x35f   : > { %v792_v16 = vadd.f32 %v8497_v21, %v693_v17  ;;  %v988_v48 = vadd.f32 %v8498_v26, %v889_v18  ;;  %v992_v23 = vadd.f32 %v8504_v59, %v893_v20  ;;  %v6793_v18 = vpop.permute.xlu1 %1548  ;;  %v8512_v20 = vld [vmem:[#allocation25_spill] sm:$0xff]  ;;  %v8513_v59 = vld [vmem:[#allocation24_spill] sm:$0xff] }
 0x360   : > { %8505 = vst [vmem:[#allocation36_spill] sm:$0xff] %v6793_v18 }
 0x361   : > { %v891_v31 = vadd.f32 %v8499_v49, %v792_v16  ;;  %v3253_v41 = vmul.f32 5.0, %v992_v23  ;;  %v6797_v16 = vpop.permute.xlu0 %1423  ;;  %v1480_v23 = vmin.f32 %v8467_v29, %v8513_v59 }
 0x362   : > { %3443 = vperm.xlu0 %4849, %v3414_v44   ;;  %v3249_v44 = vmul.f32 5.0, %v988_v48 }
 0x363   : > { %v990_v37 = vadd.f32 %v8502_v1, %v891_v31  ;;  %v6795_v21 = vpop.permute.xlu1 %1714  ;;  %v8510_v31 = vld [vmem:[#allocation22_spill] sm:$0xff]  ;;  %v8511_v1 = vld [vmem:[#allocation23_spill] sm:$0xff] }
 0x364   : > { %v1478_v15 = vmin.f32 %v6354_v7, %v8510_v31 }
 0x365   : > { %v3251_v17 = vmul.f32 5.0, %v990_v37  ;;  %v6801_v48 = vpop.permute.xlu0 %1427  ;;  %v1479_v37 = vmin.f32 %v6378_v43, %v8511_v1 }
 0x366   : > { %4850 = vset.pattern.permute.xlu0 %v8468_v55  ;;  %v6827_v18 = vsub.f32 %v1478_v15, %v1462_v46  ;;  %v8522_v15 = vld [vmem:[#allocation26_spill] sm:$0xff] }
 0x367   : > { %3263 = vperm.xlu0 %4850, %v3246_v19   ;;  %v6799_v19 = vpop.permute.xlu1 %1716  ;;  %v1482_v46 = vmin.f32 %v8472_v28, %v8522_v15 }
 0x368   : > { %8506 = vst [vmem:[#allocation43_spill] sm:$0xff] %v6799_v19  ;;  %8515 = vst [vmem:[#allocation76_spill] sm:$0xff] %v6827_v18 }
 0x369   : > { %v6805_v12 = vpop.permute.xlu0 %1431 }
 0x36a   : > { %8508 = vst [vmem:[#allocation45_spill] sm:$0xff] %v6805_v12 }
 0x36b   : > { %3272 = vperm.xlu0 %4850, %v3249_v44   ;;  %v6803_v26 = vpop.permute.xlu1 %1720  ;;  %v1463_v44 = vmax.f32 %v6375_v13, %v6552_v62 }
 0x36c   : > { %8507 = vst [vmem:[#allocation44_spill] sm:$0xff] %v6803_v26  ;;  %v1658_v26 = vmax.f32 %v6354_v7, %v8510_v31  ;;  %v1647_v31 = vmin.f32 %v6425_v36, %v6763_v2 }
 0x36d   : > { %v6825_v55 = vpop.permute.xlu0 %1435  ;;  %v6829_v61 = vsub.f32 %v1479_v37, %v1463_v44  ;;  %v1466_v44 = vmax.f32 %v6381_v50, %v6574_v14  ;;  %v1469_v37 = vmax.f32 %v6450_v57, %v6773_v30 }
 0x36e   : > { %8514 = vst [vmem:[#allocation15_spill] sm:$0xff] %v6825_v55  ;;  %v6855_v55 = vsub.f32 %v1483_v51, %v1467_v53  ;;  %v1659_v51 = vmax.f32 %v6378_v43, %v8511_v1  ;;  %v1645_v53 = vmin.f32 %v6397_v10, %v6754_v8  ;;  %v1787_v8 = vmax.f32 %v6375_v13, %v6711_v35 }
 0x36f   : > { %3278 = vperm.xlu0 %4850, %v3251_v17   ;;  %v6807_v49 = vpop.permute.xlu1 %1724  ;;  %v1481_v17 = vmin.f32 %v6400_v3, %v8512_v20  ;;  %8516 = vst [vmem:[#allocation89_spill] sm:$0xff] %v6829_v61  ;;  %v6875_v58 = vsub.f32 %v1482_v46, %v1466_v44 }
 0x370   : > { %8509 = vst [vmem:[#allocation40_spill] sm:$0xff] %v6807_v49  ;;  %v1642_v49 = vmin.f32 %v6351_v39, %v6744_v27 }
 0x371   : > { %v6833_v24 = vsub.f32 %v1481_v17, %v1465_v33  ;;  %v6842_v63 = vpop.permute.xlu0 %1534  ;;  %v8523_v33 = vld [vmem:[#allocation29_spill] sm:$0xff] }
 0x372   : > { %8521 = vst [vmem:[#allocation2_spill] sm:$0xff] %v6842_v63  ;;  %v1485_v17 = vmin.f32 %v6453_v54, %v8523_v33  ;;  %v8524_v63 = vld [vmem:[#allocation28_spill] sm:$0xff]  ;;  %v1665_v1 = vmax.f32 %v6453_v54, %v8523_v33  ;;  %v1674_v2 = vsub.f32 %v1658_v26, %v1642_v49  ;;  %v1791_v33 = vmax.f32 %v6425_v36, %v6626_v42  ;;  %v8531_v49 = vld [vmem:[#allocation117_spill] sm:$0xff] }
 0x373   : > { %3284 = vperm.xlu0 %4850, %v3253_v41   ;;  %v1464_v41 = vmax.f32 %v8465_v56, %v6563_v0  ;;  %v6831_v38 = vpop.permute.xlu1 %1728  ;;  %8518 = vst [vmem:[#allocation99_spill] sm:$0xff] %v6833_v24  ;;  %v1484_v18 = vmin.f32 %v6406_v60, %v8524_v63  ;;  %v1793_v26 = vmax.f32 %v6450_v57, %v6638_v25 }
 0x374   : > { %8517 = vst [vmem:[#allocation82_spill] sm:$0xff] %v6831_v38  ;;  %v1468_v38 = vmax.f32 %v6403_v4, %v6582_v32  ;;  %v6877_v27 = vsub.f32 %v1485_v17, %v1469_v37  ;;  %v8528_v17 = vld [vmem:[#allocation112_spill] sm:$0xff] }
 0x375   : > { %v6835_v45 = vsub.f32 %v1480_v23, %v1464_v41  ;;  %v1643_v41 = vmin.f32 %v6375_v13, %v6552_v62  ;;  %v1661_v23 = vmax.f32 %v6400_v3, %v8512_v20  ;;  %v1649_v62 = vmin.f32 %v6450_v57, %v6773_v30  ;;  %v8526_v20 = vld [vmem:[#allocation110_spill] sm:$0xff]  ;;  %v6891_v44 = vpop.permute.xlu0 %1538 }
 0x376   : > { %v1803_v46 = vmin.f32 %v6378_v43, %v8526_v20  ;;  %8527 = vst [vmem:[#allocation98_spill] sm:$0xff] %v6891_v44  ;;  %v6893_v37 = vsub.f32 %v1484_v18, %v1468_v38  ;;  %v1805_v30 = vmin.f32 %v6400_v3, %v8528_v17  ;;  %v1682_v57 = vmax.f32 %v1674_v2, 0.0 }
 0x377   : > { %8519 = vst [vmem:[#allocation92_spill] sm:$0xff] %v6835_v45  ;;  %v6865_v12 = vpop.permute.xlu1 %1860  ;;  %v1675_v24 = vsub.f32 %v1659_v51, %v1643_v41  ;;  %v6899_v61 = vsub.f32 %v1661_v23, %v1645_v53  ;;  %v8529_v45 = vld [vmem:[#allocation114_spill] sm:$0xff]  ;;  %v1809_v41 = vmin.f32 %v6453_v54, %v8531_v49  ;;  %v1506_v23 = vmax.f32 %v6875_v58, 0.0  ;;  %v8556_v51 = vld [vmem:[#allocation33_spill] sm:$0xff] }
 0x378   : > { %8525 = vst [vmem:[#allocation85_spill] sm:$0xff] %v6865_v12  ;;  %v1663_v12 = vmax.f32 %v6428_v11, %v8520_v52  ;;  %v1789_v52 = vmax.f32 %v6397_v10, %v6615_v40  ;;  %v1807_v34 = vmin.f32 %v6428_v11, %v8529_v45  ;;  %v6916_v53 = vsub.f32 %v1665_v1, %v1649_v62 }
 0x379   : > { %v6918_v19 = vsub.f32 %v1803_v46, %v1787_v8  ;;  %v1508_v44 = vmax.f32 %v6893_v37, 0.0  ;;  %v1683_v54 = vmax.f32 %v1675_v24, 0.0  ;;  %v1685_v58 = vmax.f32 %v6899_v61, 0.0  ;;  %v1543_v62 = vpop.permute.xlu0 %1542  ;;  %v8536_v37 = vld [vmem:[#allocation111_spill] sm:$0xff] }
 0x37a   : > { %v6906_v38 = vsub.f32 %v1663_v12, %v1647_v31  ;;  %v6921_v12 = vsub.f32 %v1805_v30, %v1789_v52  ;;  %v1644_v31 = vmin.f32 %v8465_v56, %v6563_v0  ;;  %v6928_v49 = vsub.f32 %v1807_v34, %v1791_v33 }
 0x37b   : > { %v6908_v18 = vpop.permute.xlu1 %1864  ;;  %8532 = vst [vmem:[#allocation87_spill] sm:$0xff] %v6918_v19  ;;  %v6931_v8 = vsub.f32 %v1809_v41, %v1793_v26  ;;  %v1965_v46 = vmin.f32 %v6351_v39, %v6594_v5  ;;  %v1981_v0 = vmax.f32 %v6354_v7, %v8536_v37  ;;  %v1689_v52 = vmax.f32 %v6916_v53, 0.0  ;;  %v8554_v41 = vld [vmem:[#allocation37_spill] sm:$0xff] }
 0x37c   : > { %8530 = vst [vmem:[#allocation94_spill] sm:$0xff] %v6908_v18  ;;  %8533 = vst [vmem:[#allocation100_spill] sm:$0xff] %v6921_v12  ;;  %v1660_v18 = vmax.f32 %v8467_v29, %v8513_v59  ;;  %v1687_v1 = vmax.f32 %v6906_v38, 0.0  ;;  %v1646_v24 = vmin.f32 %v6381_v50, %v6574_v14  ;;  %v1662_v34 = vmax.f32 %v8472_v28, %v8522_v15  ;;  %v8538_v15 = vld [vmem:[#allocation16_spill] sm:$0xff]  ;;  %v8539_v14 = vld [vmem:[#allocation47_spill] sm:$0xff] }
 0x37d   : > { %8534 = vst [vmem:[#allocation96_spill] sm:$0xff] %v6928_v49  ;;  %8535 = vst [vmem:[#allocation102_spill] sm:$0xff] %v6931_v8  ;;  %v1648_v33 = vmin.f32 %v6403_v4, %v6582_v32  ;;  %v1664_v38 = vmax.f32 %v6406_v60, %v8524_v63  ;;  %v1547_v53 = vpop.permute.xlu0 %1546  ;;  %v8553_v59 = vld [vmem:[#allocation130_spill] sm:$0xff]  ;;  %v8568_v12 = vld [vmem:[#allocation19_spill] sm:$0xff] }
 0x37e   : > { %v1676_v30 = vsub.f32 %v1660_v18, %v1644_v31  ;;  %v6958_v18 = vsub.f32 %v1981_v0, %v1965_v46  ;;  %v6966_v26 = vsub.f32 %v1662_v34, %v1646_v24  ;;  %v6973_v46 = vmul.f32 %v6795_v21, %v1682_v57  ;;  %v8541_v34 = vld [vmem:[#allocation121_spill] sm:$0xff]  ;;  %v8559_v8 = vld [vmem:[#allocation92_spill] sm:$0xff]  ;;  %v8567_v49 = vld [vmem:[#allocation14_spill] sm:$0xff] }
 0x37f   : > { %v6944_v2 = vpop.permute.xlu1 %1868  ;;  %v6975_v32 = vsub.f32 %v1664_v38, %v1648_v33  ;;  %v6981_v24 = vmul.f32 %v6653_v9, %v8539_v14  ;;  %v6985_v61 = vmul.f32 %v6658_v47, %v8541_v34  ;;  %v8543_v31 = vld [vmem:[#allocation113_spill] sm:$0xff]  ;;  %v8546_v33 = vld [vmem:[#allocation126_spill] sm:$0xff]  ;;  %v8550_v47 = vld [vmem:[#allocation43_spill] sm:$0xff]  ;;  %v7010_v57 = vmul.f32 %v8554_v41, %v8553_v59 }
 0x380   : > { %8537 = vst [vmem:[#allocation106_spill] sm:$0xff] %v6944_v2  ;;  %v1684_v0 = vmax.f32 %v1676_v30, 0.0  ;;  %v8544_v21 = vld [vmem:[#allocation125_spill] sm:$0xff]  ;;  %v6997_v38 = vmul.f32 %v6661_v6, %v8546_v33  ;;  %v7004_v34 = vmul.f32 %v8550_v47, %v1683_v54  ;;  %v8560_v6 = vmax.f32 %v8559_v8, 0.0  ;;  %v8561_v33 = vld [vmem:[#allocation98_spill] sm:$0xff]  ;;  %v8565_v59 = vld [vmem:[#allocation40_spill] sm:$0xff] }
 0x381   : > { %8540 = vst [vmem:[#allocation108_spill] sm:$0xff] %v6981_v24  ;;  %8542 = vst [vmem:[#allocation68_spill] sm:$0xff] %v6985_v61  ;;  %v6993_v30 = vmul.f32 %v6797_v16, %v8544_v21  ;;  %v8548_v9 = vld [vmem:[#allocation129_spill] sm:$0xff]  ;;  %v7024_v54 = vmul.f32 %v1543_v62, %v1506_v23  ;;  %v7026_v47 = vmul.f32 %v1547_v53, %v1508_v44  ;;  %4921 = vrcp.f32 %v6973_v46  ;;  %v8570_v23 = vld [vmem:[#allocation82_spill] sm:$0xff] }
 0x382   : > { %8547 = vst [vmem:[#allocation79_spill] sm:$0xff] %v6997_v38  ;;  %v7001_v14 = vmul.f32 %v6801_v48, %v8548_v9  ;;  %8551 = vst [vmem:[#allocation62_spill] sm:$0xff] %v7004_v34  ;;  %v8557_v16 = vld [vmem:[#allocation45_spill] sm:$0xff]  ;;  %v7019_v2 = vmul.f32 %v8561_v33, %v8560_v6  ;;  %v8562_v48 = vld [vmem:[#allocation44_spill] sm:$0xff]  ;;  %v7030_v41 = vmul.f32 %v8565_v59, %v1687_v1  ;;  %4923 = vrcp.f32 %v7004_v34 }
 0x383   : > { %8545 = vst [vmem:[#allocation61_spill] sm:$0xff] %v6993_v30  ;;  %v7006_v63 = vpop.permute.xlu1 %1872  ;;  %8555 = vst [vmem:[#allocation72_spill] sm:$0xff] %v7010_v57  ;;  %v7014_v21 = vmul.f32 %v8557_v16, %v8556_v51  ;;  %v7022_v9 = vmul.f32 %v8562_v48, %v1685_v58  ;;  %v8566_v51 = vld [vmem:[#allocation8_spill] sm:$0xff]  ;;  %v8569_v33 = vld [vmem:[#allocation5_spill] sm:$0xff]  ;;  %v7038_v58 = vmul.f32 %v8570_v23, %v1689_v52 }
 0x384   : > { %8549 = vst [vmem:[#allocation77_spill] sm:$0xff] %v7001_v14  ;;  %8552 = vst [vmem:[#allocation116_spill] sm:$0xff] %v7006_v63  ;;  %v8571_v44 = vld [vmem:[#allocation6_spill] sm:$0xff]  ;;  %v8572_v53 = vld [vmem:[#allocation7_spill] sm:$0xff] }
 0x385   : > { %8558 = vst [vmem:[#allocation118_spill] sm:$0xff] %v7014_v21  ;;  %8563 = vst [vmem:[#allocation12_spill] sm:$0xff] %v7022_v9  ;;  %4925 = vrcp.f32 %v7022_v9  ;;  %v8573_v23 = vld [vmem:[#allocation13_spill] sm:$0xff] }
 0x386   : > { %8564 = vst [vmem:[#allocation119_spill] sm:$0xff] %v7026_v47  ;;  %4927 = vrcp.f32 %v7030_v41 }
 0x387   : > { %4929 = vrcp.f32 %v7038_v58 }
 0x3a5   : > { %v1569_v63 = vpop.permute.xlu0 %1568 }
 0x3a6   : > { %v1581_v16 = vrot.slane %v1569_v63, %v8566_v51  ;;  %v1589_v8 = vrot.slane %v1569_v63, %v8567_v49  ;;  %v1597_v6 = vrot.slane %v1569_v63, %v8568_v12  ;;  %v1573_v19 = vrot.slane %v1569_v63, %v8569_v33  ;;  %v7047_v12 = vpop.permute.xlu1 %2037 }
 0x3a7   : > { %v1577_v62 = vrot.slane %v1569_v63, %v8571_v44  ;;  %v1585_v48 = vrot.slane %v1569_v63, %v8572_v53  ;;  %v1593_v51 = vrot.slane %v1569_v63, %v8573_v23  ;;  %v8574_v44 = vld [vmem:[#allocation18_spill] sm:$0xff] }
 0x3a8   : > { %v1612_v1 = vadd.f32 %v1581_v16, %v6985_v61  ;;  %v1614_v59 = vadd.f32 %v1589_v8, %v6997_v38  ;;  %v1616_v49 = vadd.f32 %v1597_v6, %v7010_v57  ;;  %v1610_v52 = vadd.f32 %v1573_v19, %v6981_v24  ;;  %v8575_v6 = vld [vmem:[#allocation76_spill] sm:$0xff]  ;;  %v8577_v38 = vld [vmem:[#allocation2_spill] sm:$0xff] }
 0x3a9   : > { %v1719_v33 = vpop.permute.xlu0 %1718  ;;  %v1601_v34 = vrot.slane %v1569_v63, %v8574_v44  ;;  %v1611_v8 = vadd.f32 %v1577_v62, %v6993_v30  ;;  %v8576_v57 = vmax.f32 %v8575_v6, 0.0  ;;  %v1613_v63 = vadd.f32 %v1585_v48, %v7001_v14  ;;  %v8584_v23 = vld [vmem:[#allocation38_spill] sm:$0xff]  ;;  %v8587_v30 = vld [vmem:[#allocation21_spill] sm:$0xff] }
 0x3aa   : > { %v7053_v53 = vsub.f32 %v1612_v1, %v7019_v2  ;;  %v7055_v9 = vmul.f32 %v1719_v33, %v1684_v0  ;;  %v7058_v16 = vsub.f32 %v1614_v59, %v7024_v54  ;;  %v7068_v19 = vsub.f32 %v1616_v49, %v7026_v47  ;;  %v8579_v1 = vld [vmem:[#allocation35_spill] sm:$0xff]  ;;  %v8582_v59 = vld [vmem:[#allocation89_spill] sm:$0xff] }
 0x3ab   : > { %v7064_v61 = vmul.f32 %v8577_v38, %v8576_v57  ;;  %v8580_v0 = vld [vmem:[#allocation15_spill] sm:$0xff]  ;;  %v8583_v44 = vmax.f32 %v8582_v59, 0.0  ;;  %v1686_v57 = vmax.f32 %v6966_v26, 0.0  ;;  %v8590_v59 = vld [vmem:[#allocation34_spill] sm:$0xff]  ;;  %v2005_v47 = vmax.f32 %v6958_v18, 0.0 }
 0x3ac   : > { %8578 = vst [vmem:[#allocation30_spill] sm:$0xff] %v7068_v19  ;;  %v7073_v33 = vmul.f32 %v8580_v0, %v8579_v1  ;;  %4931 = vrcp.f32 %v7053_v53  ;;  %v8585_v38 = vld [vmem:[#allocation99_spill] sm:$0xff]  ;;  %v1615_v0 = vadd.f32 %v1593_v51, %v7014_v21  ;;  %v8601_v18 = vmin.f32 %v6425_v36, %v6626_v42 }
 0x3ad   : > { %v7078_v62 = vmul.f32 %v8584_v23, %v8583_v44  ;;  %v8586_v6 = vmax.f32 %v8585_v38, 0.0  ;;  %4933 = vrcp.f32 %v7055_v9  ;;  %v1723_v48 = vpop.permute.xlu0 %1722  ;;  %v7089_v1 = vsub.f32 %v1610_v52, %v7064_v61  ;;  %v8592_v52 = vld [vmem:[#allocation115_spill] sm:$0xff] }
 0x3ae   : > { %8581 = vst [vmem:[#allocation10_spill] sm:$0xff] %v7073_v33  ;;  %4935 = vrcp.f32 %v7058_v16  ;;  %v7093_v44 = vmul.f32 %v1723_v48, %v1686_v57  ;;  %v1617_v26 = vadd.f32 %v1601_v34, %v7073_v33  ;;  %v1806_v51 = vmin.f32 %v8472_v28, %v8592_v52  ;;  %v8595_v34 = vld [vmem:[#allocation20_spill] sm:$0xff] }
 0x3af   : > { %v7085_v49 = vmul.f32 %v8587_v30, %v8586_v6  ;;  %v7096_v23 = vsub.f32 %v1611_v8, %v7078_v62  ;;  %v8589_v30 = vmax.f32 %v6855_v55, 0.0  ;;  %v2040_v6 = vpop.permute.xlu1 %2039  ;;  %4937 = vrcp.f32 %v7068_v19  ;;  %v8594_v8 = vld [vmem:[#allocation36_spill] sm:$0xff] }
 0x3b0   : > { %v8593_v57 = vmax.f32 %v6877_v27, 0.0  ;;  %4939 = vrcp.f32 %v7093_v44  ;;  %v1688_v55 = vmax.f32 %v6975_v32, 0.0  ;;  %v8596_v33 = vld [vmem:[#allocation48_spill] sm:$0xff]  ;;  %v1983_v32 = vmax.f32 %v8467_v29, %v8543_v31 }
 0x3b1   : > { %8588 = vst [vmem:[#allocation32_spill] sm:$0xff] %v7085_v49  ;;  %v7102_v38 = vmul.f32 %v8590_v59, %v8589_v30  ;;  %v7108_v21 = vsub.f32 %v1613_v63, %v7085_v49  ;;  %v1792_v30 = vmax.f32 %v6403_v4, %v8595_v34  ;;  %v1727_v59 = vpop.permute.xlu0 %1726  ;;  %v1808_v14 = vmin.f32 %v6406_v60, %v8596_v33 }
 0x3b2   : > { %v7113_v48 = vmul.f32 %v8594_v8, %v8593_v57  ;;  %4941 = vrcp.f32 %v7089_v1  ;;  %v1967_v63 = vmin.f32 %v8465_v56, %v8538_v15  ;;  %v7127_v57 = vpop.eup %4921  ;;  %v7129_v8 = vmul.f32 %v1727_v59, %v1688_v55 }
 0x3b3   : > { %8591 = vst [vmem:[#allocation42_spill] sm:$0xff] %v7102_v38  ;;  %v7125_v27 = vsub.f32 %v1615_v0, %v7102_v38  ;;  %4943 = vrcp.f32 %v7096_v23  ;;  %v8597_v49 = vmin.f32 %v6375_v13, %v6711_v35  ;;  %v8598_v0 = vmax.f32 %v6378_v43, %v8526_v20  ;;  %v8615_v43 = vld [vmem:[#allocation85_spill] sm:$0xff] }
 0x3b4   : > { %v7135_v24 = vsub.f32 %v1617_v26, %v7113_v48  ;;  %v8599_v55 = vmin.f32 %v6397_v10, %v6615_v40  ;;  %v8600_v59 = vmax.f32 %v6400_v3, %v8528_v17  ;;  %4945 = vrcp.f32 %v7108_v21  ;;  %v7151_v26 = vpop.eup %4923 }
 0x3b5   : > { %v1998_v38 = vsub.f32 %v8598_v0, %v8597_v49  ;;  %v8602_v35 = vmax.f32 %v6428_v11, %v8529_v45  ;;  %4947 = vrcp.f32 %v7129_v8  ;;  %v8603_v40 = vmax.f32 %v6351_v39, %v6594_v5  ;;  %v7176_v45 = vpop.eup %4925 }
 0x3b6   : > { %v2000_v19 = vsub.f32 %v8600_v59, %v8599_v55  ;;  %v8604_v20 = vmin.f32 %v6354_v7, %v8536_v37  ;;  %v8605_v49 = vmax.f32 %v8465_v56, %v8538_v15  ;;  %v8606_v42 = vmin.f32 %v8467_v29, %v8543_v31  ;;  %v2044_v55 = vpop.permute.xlu1 %2043  ;;  %v7178_v59 = vpop.permute.xlu0 %1858  ;;  %v8613_v29 = vld [vmem:[#allocation87_spill] sm:$0xff] }
 0x3b7   : > { %v2002_v13 = vsub.f32 %v8602_v35, %v8601_v18  ;;  %v8607_v5 = vmax.f32 %v6381_v50, %v6722_v22  ;;  %4949 = vrcp.f32 %v7125_v27  ;;  %v1969_v37 = vmin.f32 %v6381_v50, %v6722_v22  ;;  %v7190_v31 = vpop.eup %4927  ;;  %v8608_v35 = vld [vmem:[#allocation31_spill] sm:$0xff] }
 0x3b8   : > { %v7166_v17 = vsub.f32 %v8604_v20, %v8603_v40  ;;  %v7174_v0 = vsub.f32 %v8606_v42, %v8605_v49  ;;  %v1985_v15 = vmax.f32 %v8472_v28, %v8592_v52  ;;  %v7194_v20 = vsub.f32 %v1808_v14, %v1792_v30  ;;  %v8609_v14 = vld [vmem:[#allocation117_spill] sm:$0xff]  ;;  %v8610_v30 = vld [vmem:[#allocation11_spill] sm:$0xff] }
 0x3b9   : > { %v7183_v18 = vsub.f32 %v1806_v51, %v8607_v5  ;;  %v7196_v49 = vsub.f32 %v1983_v32, %v1967_v63  ;;  %4951 = vrcp.f32 %v7135_v24  ;;  %v7200_v51 = vmul.f32 %v7047_v12, %v2005_v47  ;;  %v7206_v5 = vpop.eup %4929 }
 0x3ba   : > { %v2006_v42 = vmax.f32 %v1998_v38, 0.0  ;;  %v1971_v22 = vmin.f32 %v6403_v4, %v8595_v34  ;;  %v1987_v52 = vmax.f32 %v6406_v60, %v8596_v33  ;;  %v2008_v11 = vmax.f32 %v2000_v19, 0.0  ;;  %v4932_v28 = vpop.eup %4931  ;;  %v7214_v47 = vpop.permute.xlu0 %1862  ;;  %v8612_v19 = vld [vmem:[#allocation12_spill] sm:$0xff] }
 0x3bb   : > { %v2010_v40 = vmax.f32 %v2002_v13, 0.0  ;;  %v7217_v34 = vsub.f32 %v1985_v15, %v1969_v37  ;;  %v4934_v33 = vpop.eup %4933  ;;  %v1748_v13 = vsub.f32 %v7055_v9, %v7053_v53  ;;  %4953 = vrcp.f32 %v7200_v51  ;;  %v8611_v37 = vld [vmem:[#allocation62_spill] sm:$0xff] }
 0x3bc   : > { %v7211_v3 = vmul.f32 %v2040_v6, %v2006_v42  ;;  %v7219_v60 = vmul.f32 %v2044_v55, %v2008_v11  ;;  %v4936_v6 = vpop.eup %4935  ;;  %v2048_v42 = vpop.permute.xlu1 %2047  ;;  %v1746_v12 = vsub.f32 %v6973_v46, %v7089_v1  ;;  %v1747_v15 = vsub.f32 %v8611_v37, %v7096_v23  ;;  %v8616_v1 = vld [vmem:[#allocation100_spill] sm:$0xff] }
 0x3bd   : > { %v7230_v38 = vsub.f32 %v1987_v52, %v1971_v22  ;;  %v4938_v11 = vpop.eup %4937  ;;  %v1631_v55 = vmul.f32 %v4932_v28, %v7019_v2  ;;  %v1759_v9 = vmul.f32 %v4934_v33, %v1748_v13  ;;  %v1750_v53 = vsub.f32 %v7093_v44, %v7058_v16  ;;  %v8618_v22 = vld [vmem:[#allocation94_spill] sm:$0xff] }
 0x3be   : > { %v1749_v63 = vsub.f32 %v8612_v19, %v7108_v21  ;;  %v4940_v32 = vpop.eup %4939  ;;  %v8614_v7 = vmax.f32 %v8613_v29, 0.0  ;;  %v8617_v23 = vmax.f32 %v8616_v1, 0.0  ;;  %4955 = vrcp.f32 %v7211_v3  ;;  %v1867_v28 = vpop.permute.xlu0 %1866 }
 0x3bf   : > { %v2009_v2 = vmax.f32 %v7217_v34, 0.0  ;;  %v4942_v16 = vpop.eup %4941  ;;  %4957 = vrcp.f32 %v7219_v60  ;;  %v7250_v21 = vmul.f32 %v2048_v42, %v2010_v40  ;;  %v1763_v44 = vmul.f32 %v4940_v32, %v1750_v53  ;;  %v8648_v34 = vld [vmem:[#allocation116_spill] sm:$0xff] }
 0x3c0   : > { %v7240_v46 = vmul.f32 %v8615_v43, %v8614_v7  ;;  %v7245_v52 = vmul.f32 %v8618_v22, %v8617_v23  ;;  %v1751_v7 = vsub.f32 %v7030_v41, %v7125_v27  ;;  %v4944_v43 = vpop.eup %4943  ;;  %v1635_v29 = vmul.f32 %v4936_v6, %v7024_v54  ;;  %v8619_v27 = vld [vmem:[#allocation30_spill] sm:$0xff] }
 0x3c1   : > { %v1627_v33 = vmul.f32 %v4942_v16, %v7064_v61  ;;  %v1755_v13 = vmul.f32 %v7127_v57, %v1746_v12  ;;  %v1753_v19 = vsub.f32 %v7038_v58, %v7135_v24  ;;  %v4946_v37 = vpop.eup %4945  ;;  %v1772_v1 = vsub.f32 %v1631_v55, %v1759_v9  ;;  %v8620_v57 = vld [vmem:[#allocation32_spill] sm:$0xff]  ;;  %v8623_v55 = vld [vmem:[#allocation106_spill] sm:$0xff] }
 0x3c2   : > { %v1629_v23 = vmul.f32 %v4944_v43, %v7078_v62  ;;  %v1757_v40 = vmul.f32 %v7151_v26, %v1747_v15  ;;  %v1761_v32 = vmul.f32 %v7176_v45, %v1749_v63  ;;  %v4948_v42 = vpop.eup %4947  ;;  %v1774_v41 = vsub.f32 %v1635_v29, %v1763_v44  ;;  %v7264_v6 = vpop.permute.xlu0 %1870  ;;  %v8621_v24 = vld [vmem:[#allocation96_spill] sm:$0xff]  ;;  %v8624_v22 = vld [vmem:[#allocation42_spill] sm:$0xff]  ;;  %v8625_v44 = vld [vmem:[#allocation119_spill] sm:$0xff] }
 0x3c3   : > { %v1752_v54 = vsub.f32 %v7129_v8, %v8619_v27  ;;  %v1770_v61 = vsub.f32 %v1627_v33, %v1755_v13  ;;  %v1633_v12 = vmul.f32 %v4946_v37, %v8620_v57  ;;  %v8622_v58 = vmax.f32 %v8621_v24, 0.0 }
 0x3c4   : > { %v4950_v53 = vpop.eup %4949  ;;  %4959 = vrcp.f32 %v7250_v21  ;;  %v1771_v62 = vsub.f32 %v1629_v23, %v1757_v40  ;;  %v1765_v26 = vmul.f32 %v7190_v31, %v1751_v7  ;;  %v1639_v43 = vmul.f32 %v4938_v11, %v8625_v44  ;;  %v8626_v40 = vld [vmem:[#allocation8_spill] sm:$0xff]  ;;  %v8627_v7 = vld [vmem:[#allocation14_spill] sm:$0xff] }
 0x3c5   : > { %v7270_v9 = vmul.f32 %v8623_v55, %v8622_v58  ;;  %v1767_v63 = vmul.f32 %v4948_v42, %v1752_v54  ;;  %v1778_v15 = vsub.f32 0.0, %v1770_v61  ;;  %v1773_v8 = vsub.f32 %v1633_v12, %v1761_v32 }
 0x3c6   : > { %v4952_v45 = vpop.eup %4951  ;;  %v1637_v16 = vmul.f32 %v4950_v53, %v8624_v22  ;;  %v1779_v29 = vsub.f32 0.0, %v1771_v62  ;;  %v1780_v33 = vsub.f32 0.0, %v1772_v1  ;;  %v1769_v13 = vmul.f32 %v7206_v5, %v1753_v19  ;;  %v1892_v27 = vpop.permute.xlu0 %1891 }
 0x3c7   : > { %v3327_v37 = vmul.f32 2.0, %v1778_v15  ;;  %v1781_v57 = vsub.f32 0.0, %v1773_v8  ;;  %v1782_v24 = vsub.f32 0.0, %v1774_v41  ;;  %v1904_v31 = vrot.slane %v1892_v27, %v8626_v40  ;;  %v8634_v15 = vld [vmem:[#allocation6_spill] sm:$0xff] }
 0x3c8   : > { %v1775_v58 = vsub.f32 %v1637_v16, %v1765_v26  ;;  %v3328_v23 = vmul.f32 2.0, %v1779_v29  ;;  %v1912_v42 = vrot.slane %v1892_v27, %v8627_v7  ;;  %v1641_v32 = vmul.f32 %v4952_v45, %v7113_v48  ;;  %v7294_v12 = vpop.eup %4953  ;;  %v8631_v48 = vld [vmem:[#allocation68_spill] sm:$0xff] }
 0x3c9   : > { %v1776_v54 = vsub.f32 %v1639_v43, %v1767_v63  ;;  %v8628_v61 = vmax.f32 %v7166_v17, 0.0  ;;  %v8629_v5 = vmax.f32 %v7174_v0, 0.0  ;;  %v8630_v1 = vmax.f32 %v7183_v18, 0.0  ;;  %3344 = vperm.xlu1 %4851, %v3327_v37   ;;  %v8632_v17 = vld [vmem:[#allocation79_spill] sm:$0xff]  ;;  %v8636_v43 = vld [vmem:[#allocation108_spill] sm:$0xff] }
 0x3ca   : > { %3347 = vperm.xlu0 %4850, %v3328_v23   ;;  %v1935_v53 = vadd.f32 %v1904_v31, %v8631_v48  ;;  %v1783_v55 = vsub.f32 0.0, %v1775_v58  ;;  %v1937_v62 = vadd.f32 %v1912_v42, %v8632_v17  ;;  %v3329_v45 = vmul.f32 2.0, %v1780_v33  ;;  %v2042_v63 = vpop.permute.xlu0 %2041  ;;  %v8638_v58 = vld [vmem:[#allocation61_spill] sm:$0xff]  ;;  %v8639_v31 = vld [vmem:[#allocation7_spill] sm:$0xff]  ;;  %v8642_v17 = vld [vmem:[#allocation18_spill] sm:$0xff] }
 0x3cb   : > { %v7283_v11 = vmul.f32 %v7178_v59, %v8628_v61  ;;  %v7288_v19 = vmul.f32 %v7214_v47, %v8629_v5  ;;  %v7292_v41 = vmul.f32 %v1867_v28, %v8630_v1  ;;  %v8633_v59 = vld [vmem:[#allocation5_spill] sm:$0xff]  ;;  %v3330_v0 = vmul.f32 2.0, %v1781_v57  ;;  %v7300_v18 = vpop.eup %4955  ;;  %v8637_v57 = vld [vmem:[#allocation19_spill] sm:$0xff] }
 0x3cc   : > { %v1896_v26 = vrot.slane %v1892_v27, %v8633_v59  ;;  %v3331_v47 = vmul.f32 2.0, %v1782_v24  ;;  %v1900_v8 = vrot.slane %v1892_v27, %v8634_v15  ;;  %v8635_v22 = vmax.f32 %v7196_v49, 0.0  ;;  %v7310_v37 = vpop.eup %4957  ;;  %v8641_v48 = vld [vmem:[#allocation77_spill] sm:$0xff] }
 0x3cd   : > { %v7303_v28 = vsub.f32 %v1935_v53, %v7288_v19  ;;  %v1777_v44 = vsub.f32 %v1641_v32, %v1769_v13  ;;  %3350 = vperm.xlu1 %4851, %v3329_v45   ;;  %v7313_v33 = vsub.f32 %v1937_v62, %v7292_v41  ;;  %v1920_v24 = vrot.slane %v1892_v27, %v8637_v57  ;;  %v8640_v13 = vld [vmem:[#allocation13_spill] sm:$0xff] }
 0x3ce   : > { %v7307_v16 = vmul.f32 %v2042_v63, %v8635_v22  ;;  %v1933_v29 = vadd.f32 %v1896_v26, %v8636_v43  ;;  %v1934_v23 = vadd.f32 %v1900_v8, %v8638_v58  ;;  %v1908_v42 = vrot.slane %v1892_v27, %v8639_v31  ;;  %3353 = vperm.xlu0 %4850, %v3330_v0   ;;  %v2046_v5 = vpop.permute.xlu0 %2045  ;;  %v8643_v63 = vld [vmem:[#allocation118_spill] sm:$0xff]  ;;  %v8644_v8 = vld [vmem:[#allocation72_spill] sm:$0xff] }
 0x3cf   : > { %4961 = vrcp.f32 %v7303_v28  ;;  %v3332_v49 = vmul.f32 2.0, %v1783_v55  ;;  %v1784_v61 = vsub.f32 0.0, %v1776_v54  ;;  %v1916_v32 = vrot.slane %v1892_v27, %v8640_v13 }
 0x3d0   : > { %4963 = vrcp.f32 %v7307_v16  ;;  %v1941_v1 = vsub.f32 %v1933_v29, %v7283_v11  ;;  %v1936_v53 = vadd.f32 %v1908_v42, %v8641_v48  ;;  %v1924_v62 = vrot.slane %v1892_v27, %v8642_v17  ;;  %v8645_v29 = vld [vmem:[#allocation10_spill] sm:$0xff] }
 0x3d1   : > { %v2065_v26 = vmul.f32 %v2046_v5, %v2009_v2  ;;  %v1785_v45 = vsub.f32 0.0, %v1777_v44  ;;  %v1942_v0 = vsub.f32 %v1934_v23, %v7240_v46  ;;  %v1938_v55 = vadd.f32 %v1916_v32, %v8643_v63  ;;  %v7328_v54 = vpop.eup %4959  ;;  %3356 = vperm.xlu1 %4851, %v3331_v47   ;;  %v8646_v27 = vld [vmem:[#allocation102_spill] sm:$0xff] }
 0x3d2   : > { %4965 = vrcp.f32 %v7313_v33  ;;  %v1939_v22 = vadd.f32 %v1920_v24, %v8644_v8  ;;  %v1944_v43 = vsub.f32 %v1936_v53, %v7245_v52  ;;  %v1940_v58 = vadd.f32 %v1924_v62, %v8645_v29  ;;  %3359 = vperm.xlu0 %4850, %v3332_v49   ;;  %v2050_v53 = vpop.permute.xlu0 %2049  ;;  %v2052_v49 = vpop.permute.xlu1 %2051 }
 0x3d3   : > { %v8647_v42 = vmax.f32 %v8646_v27, 0.0  ;;  %v8649_v44 = vmin.f32 %v8608_v35, %v6638_v25  ;;  %v8650_v23 = vmax.f32 %v8610_v30, %v8609_v14  ;;  %4967 = vrcp.f32 %v2065_v26 }
 0x3d4   : > { %v2011_v24 = vmax.f32 %v7230_v38, 0.0  ;;  %v8651_v32 = vmax.f32 %v7194_v20, 0.0  ;;  %v3333_v48 = vmul.f32 2.0, %v1784_v61  ;;  %4969 = vrcp.f32 %v1941_v1 }
 0x3d5   : > { %v7337_v2 = vmul.f32 %v8648_v34, %v8647_v42  ;;  %v2004_v47 = vsub.f32 %v8650_v23, %v8649_v44  ;;  %v1946_v62 = vsub.f32 %v1938_v55, %v7270_v9  ;;  %v3334_v63 = vmul.f32 2.0, %v1785_v45 }
 0x3d6   : > { %v7349_v5 = vmul.f32 %v7264_v6, %v8651_v32  ;;  %v2067_v25 = vmul.f32 %v2050_v53, %v2011_v24  ;;  %4971 = vrcp.f32 %v1942_v0  ;;  %3362 = vperm.xlu1 %4851, %v3333_v48   ;;  %v8652_v61 = vmov 4  }
 0x3d7   : > { %v7353_v14 = vsub.f32 %v1940_v58, %v7337_v2  ;;  %4973 = vrcp.f32 %v1944_v43  ;;  %v2012_v20 = vmax.f32 %v2004_v47, 0.0  ;;  %3365 = vperm.xlu0 %4850, %v3334_v63   ;;  %v2071_v8 = vsub.f32 %v7307_v16, %v7303_v28 }
 0x3d8   : > { %v1947_v38 = vsub.f32 %v1939_v22, %v7349_v5  ;;  %4975 = vrcp.f32 %v2067_v25  ;;  %v2069_v22 = vsub.f32 %v7200_v51, %v1941_v1  ;;  %v2070_v58 = vsub.f32 %v7211_v3, %v1942_v0 }
 0x3d9   : > { %4977 = vrcp.f32 %v1946_v62  ;;  %v2068_v6 = vmul.f32 %v2052_v49, %v2012_v20  ;;  %v2072_v27 = vsub.f32 %v7219_v60, %v1944_v43  ;;  %v2073_v24 = vsub.f32 %v2065_v26, %v7313_v33 }
 0x3da   : > { %4979 = vrcp.f32 %v7353_v14  ;;  %4853 = vset.pattern.permute.xlu1 %v8652_v61  ;;  %v2078_v48 = vmul.f32 %v7294_v12, %v2069_v22  ;;  %v2080_v16 = vmul.f32 %v7300_v18, %v2070_v58  ;;  %v2074_v60 = vsub.f32 %v7250_v21, %v1946_v62 }
 0x3db   : > { %4981 = vrcp.f32 %v1947_v38  ;;  %4852 = vset.pattern.permute.xlu0 %v8652_v61  ;;  %v2084_v3 = vmul.f32 %v7310_v37, %v2072_v27  ;;  %v2075_v26 = vsub.f32 %v2067_v25, %v1947_v38  ;;  %v2076_v62 = vsub.f32 %v2068_v6, %v7353_v14 }
 0x3dc   : > { %v4962_v45 = vpop.eup %4961  ;;  %4983 = vrcp.f32 %v2068_v6  ;;  %v2088_v21 = vmul.f32 %v7328_v54, %v2074_v60  ;;  %v8655_v60 = vld [vmem:[#allocation4_spill] sm:$0xff] }
 0x3dd   : > { %v4964_v55 = vpop.eup %4963  ;;  %v1954_v34 = vmul.f32 %v4962_v45, %v7288_v19 }
 0x3de   : > { %v2082_v44 = vmul.f32 %v4964_v55, %v2071_v8 }
 0x3df   : > { %v4966_v29 = vpop.eup %4965 }
 0x3e0   : > { %v4968_v42 = vpop.eup %4967  ;;  %v2095_v19 = vsub.f32 %v1954_v34, %v2082_v44  ;;  %v1958_v12 = vmul.f32 %v4966_v29, %v7292_v41 }
 0x3e1   : > { %v4970_v23 = vpop.eup %4969  ;;  %v2086_v0 = vmul.f32 %v4968_v42, %v2073_v24 }
 0x3e2   : > { %v1950_v32 = vmul.f32 %v4970_v23, %v7283_v11 }
 0x3e3   : > { %v4972_v47 = vpop.eup %4971  ;;  %v2097_v45 = vsub.f32 %v1958_v12, %v2086_v0  ;;  %v8656_v0 = vld [vmem:[#allocation58_spill] sm:$0xff] }
 0x3e4   : > { %v4974_v28 = vpop.eup %4973  ;;  %v1952_v51 = vmul.f32 %v4972_v47, %v7240_v46  ;;  %v2093_v43 = vsub.f32 %v1950_v32, %v2078_v48  ;;  %v7381_v48 = vpop.permute.xlu1 %3266 }
 0x3e5   : > { %v4976_v1 = vpop.eup %4975  ;;  %v1956_v53 = vmul.f32 %v4974_v28, %v7245_v52  ;;  %v2103_v52 = vsub.f32 0.0, %v2095_v19  ;;  %v2105_v54 = vsub.f32 0.0, %v2097_v45 }
 0x3e6   : > { %v4978_v33 = vpop.eup %4977  ;;  %v2094_v11 = vsub.f32 %v1952_v51, %v2080_v16  ;;  %v2101_v49 = vsub.f32 0.0, %v2093_v43  ;;  %v2090_v55 = vmul.f32 %v4976_v1, %v2075_v26  ;;  %v8654_v51 = vlaneseq  ;;  %v8658_v26 = vld [vmem:[#allocation50_spill] sm:$0xff] }
 0x3e7   : > { %v4980_v63 = vpop.eup %4979  ;;  %v2096_v46 = vsub.f32 %v1956_v53, %v2084_v3  ;;  %v1960_v18 = vmul.f32 %v4978_v33, %v7270_v9  ;;  %v3491_v42 = vmul.f32 2.0, %v2103_v52  ;;  %v3493_v44 = vmul.f32 2.0, %v2105_v54  ;;  %v7388_v3 = vpop.permute.xlu0 %3428  ;;  %v8657_v53 = vld [vmem:[#allocation60_spill] sm:$0xff]  ;;  %v8666_v54 = vld [vmem:[#allocation71_spill] sm:$0xff] }
 0x3e8   : > { %v4982_v20 = vpop.eup %4981  ;;  %v2102_v37 = vsub.f32 0.0, %v2094_v11  ;;  %v3489_v8 = vmul.f32 2.0, %v2101_v49  ;;  %v1964_v58 = vmul.f32 %v4980_v63, %v7337_v2  ;;  %v7383_v28 = vpop.permute.xlu1 %3269  ;;  %v7386_v16 = vand.u32 127, %v8654_v51  ;;  %v8659_v63 = vld [vmem:[#allocation57_spill] sm:$0xff] }
 0x3e9   : > { %v2104_v25 = vsub.f32 0.0, %v2096_v46  ;;  %v2098_v38 = vsub.f32 %v1960_v18, %v2088_v21  ;;  %v4984_v41 = vpop.eup %4983  ;;  %v1962_v29 = vmul.f32 %v4982_v20, %v7349_v5  ;;  %v8653_v5 = vmov 0   ;;  %v8660_v46 = vld [vmem:[#allocation49_spill] sm:$0xff] }
 0x3ea   : > { %v3490_v22 = vmul.f32 2.0, %v2102_v37  ;;  %3506 = vperm.xlu0 %4852, %v3489_v8   ;;  %v2092_v9 = vmul.f32 %v4984_v41, %v2076_v62  ;;  %v7392_v1 = vsub.s32 %v7386_v16, %v8655_v60  ;;  %v8661_v62 = vld [vmem:[#allocation67_spill] sm:$0xff]  ;;  %v8662_v8 = vld [vmem:[#allocation52_spill] sm:$0xff]  ;;  %v8665_v41 = vld [vmem:[#allocation54_spill] sm:$0xff] }
 0x3eb   : > { %v2099_v27 = vsub.f32 %v1962_v29, %v2090_v55  ;;  %v3492_v34 = vmul.f32 2.0, %v2104_v25  ;;  %v2106_v14 = vsub.f32 0.0, %v2098_v38  ;;  %v7404_v49 = vpop.permute.xlu0 %3437  ;;  %v8664_v38 = vld [vmem:[#allocation51_spill] sm:$0xff]  ;;  %v8669_v51 = vld [vmem:[#allocation53_spill] sm:$0xff] }
 0x3ec   : > { %3509 = vperm.xlu1 %4853, %v3490_v22   ;;  %v2100_v6 = vsub.f32 %v1964_v58, %v2092_v9  ;;  %v7394_v19 = vpop.permute.xlu1 %3275  ;;  %v584_v43 = vrot.slane %v8656_v0, %v7392_v1  ;;  %v592_v33 = vrot.slane %v8657_v53, %v7392_v1  ;;  %v509_v11 = vrot.slane %v8658_v26, %v7392_v1  ;;  %v8663_v22 = vld [vmem:[#allocation59_spill] sm:$0xff] }
 0x3ed   : > { %v2107_v23 = vsub.f32 0.0, %v2099_v27  ;;  %v3494_v47 = vmul.f32 2.0, %v2106_v14  ;;  %v588_v12 = vrot.slane %v8659_v63, %v7392_v1  ;;  %v505_v18 = vrot.slane %v8660_v46, %v7392_v1 }
 0x3ee   : > { %3512 = vperm.xlu0 %4852, %v3491_v42   ;;  %v2108_v24 = vsub.f32 0.0, %v2100_v6  ;;  %v600_v45 = vrot.slane %v8661_v62, %v7392_v1  ;;  %v517_v52 = vrot.slane %v8662_v8, %v7392_v1  ;;  %v596_v25 = vrot.slane %v8663_v22, %v7392_v1 }
 0x3ef   : > { %v3495_v2 = vmul.f32 2.0, %v2107_v23  ;;  %v613_v20 = vsel %vm534_vm1, %v588_v12, %v584_v43  ;;  %v535_v55 = vsel %vm534_vm1, %v509_v11, %v505_v18  ;;  %v513_v58 = vrot.slane %v8664_v38, %v7392_v1  ;;  %v7428_v14 = vpop.permute.xlu0 %3443  ;;  %v8671_v12 = vld [vmem:[#allocation55_spill] sm:$0xff] }
 0x3f0   : > { %3515 = vperm.xlu1 %4853, %v3492_v34   ;;  %v3496_v32 = vmul.f32 2.0, %v2108_v24  ;;  %v7409_v37 = vpop.permute.xlu1 %3281  ;;  %v614_v21 = vsel %vm536_vm2, %v592_v33, %v613_v20  ;;  %v521_v29 = vrot.slane %v8665_v41, %v7392_v1  ;;  %v608_v34 = vrot.slane %v8666_v54, %v7392_v1  ;;  %v8670_v33 = vld [vmem:[#allocation70_spill] sm:$0xff] }
 0x3f1   : > { %v615_v9 = vsel %vm538_vm5, %v596_v25, %v614_v21  ;;  %v537_v27 = vsel %vm536_vm2, %v513_v58, %v535_v55  ;;  %v525_v60 = vrot.slane %v8669_v51, %v7392_v1  ;;  %v612_v26 = vrot.slane %v8670_v33, %v7392_v1  ;;  %v8672_v21 = vld [vmem:[#allocation3_spill] sm:$0xff] }
 0x3f2   : > { %3518 = vperm.xlu0 %4852, %v3493_v44   ;;  %v616_v42 = vsel %vm540_vm6, %v600_v45, %v615_v9  ;;  %v539_v6 = vsel %vm538_vm5, %v517_v52, %v537_v27  ;;  %v8667_v44 = vld [vmem:[#allocation66_spill] sm:$0xff]  ;;  %v533_v46 = vrot.slane %v8671_v12, %v7392_v1  ;;  %vm467_vm12 = vcmp.eq.s32.totalorder %v8672_v21, 1 }
 0x3f3   : > { %v604_v23 = vrot.slane %v8667_v44, %v7392_v1  ;;  %v541_v24 = vsel %vm540_vm6, %v521_v29, %v539_v6  ;;  %v3264_v63 = vpop.permute.xlu0 %3263 }
 0x3f4   : > { %3521 = vperm.xlu1 %4853, %v3494_v47   ;;  %v3426_v47 = vpop.permute.xlu1 %3425  ;;  %v543_v53 = vsel %vm542_vm7, %v525_v60, %v541_v24  ;;  %v3289_v6 = vrot.slane %v3264_v63, %v7392_v1  ;;  %v3293_v24 = vrot.slane %v7381_v48, %v7392_v1  ;;  %v3455_v60 = vrot.slane %v7388_v3, %v7392_v1 }
 0x3f5   : > { %v617_v0 = vsel %vm542_vm7, %v604_v23, %v616_v42  ;;  %v3451_v33 = vrot.slane %v3426_v47, %v7392_v1  ;;  %v3305_v47 = vrot.slane %v7394_v19, %v7392_v1 }
 0x3f6   : > { %3524 = vperm.xlu0 %4852, %v3495_v2   ;;  %v8668_v2 = vld [vmem:[#allocation56_spill] sm:$0xff]  ;;  %v618_v43 = vsel %vm544_vm8, %v608_v34, %v617_v0  ;;  %v3318_v0 = vsel %vm534_vm1, %v3293_v24, %v3289_v6 }
 0x3f7   : > { %v7447_v18 = vsel %vm546_vm9, %v612_v26, %v618_v43  ;;  %v3273_v55 = vpop.permute.xlu0 %3272  ;;  %v3480_v21 = vsel %vm534_vm1, %v3455_v60, %v3451_v33 }
 0x3f8   : > { %3527 = vperm.xlu1 %4853, %v3496_v32   ;;  %v529_v32 = vrot.slane %v8668_v2, %v7392_v1  ;;  %v3432_v20 = vpop.permute.xlu1 %3431  ;;  %v3301_v43 = vrot.slane %v3273_v55, %v7392_v1 }
 0x3f9   : > { %v3459_v55 = vrot.slane %v3432_v20, %v7392_v1 }
 0x3fa   : > { %4854 = vset.pattern.permute.xlu0 %v8653_v5  ;;  %v545_v11 = vsel %vm544_vm8, %v529_v32, %v543_v53  ;;  %v3297_v53 = vrot.slane %v7383_v28, %v7392_v1 }
 0x3fb   : > { %v7451_v62 = vsel %vm546_vm9, %v533_v46, %v545_v11  ;;  %v3279_v25 = vpop.permute.xlu0 %3278 }
 0x3fc   : > { %4855 = vset.pattern.permute.xlu1 %v8653_v5  ;;  %v621_v45 = vsel %vm467_vm12, %v7451_v62, %v7447_v18  ;;  %v3435_v52 = vpop.permute.xlu1 %3434  ;;  %v3319_v63 = vsel %vm536_vm2, %v3297_v53, %v3318_v0  ;;  %v3309_v28 = vrot.slane %v3279_v25, %v7392_v1  ;;  %vm4427_vm12 = vcmp.eq.s32.totalorder %v7386_v16, 0 }
 0x3fd   : > { %v622_v8 = vsub.f32 0.0, %v621_v45  ;;  %v3320_v45 = vsel %vm538_vm5, %v3301_v43, %v3319_v63 }
 0x3ff   : > { %v623_v22 = vmul.f32 1.442695, %v622_v8  ;;  %v3285_v58 = vpop.permute.xlu0 %3284  ;;  %v3463_v8 = vrot.slane %v3435_v52, %v7392_v1 }
 0x400   : > { %v7455_v38 = vpop.permute.xlu1 %3440  ;;  %v3317_v20 = vrot.slane %v3285_v58, %v7392_v1 }
 0x401   : > { %4985 = vpow2.f32 %v623_v22 }
 0x404   : > { %v7457_v41 = vpop.permute.xlu1 %3446 }
 0x40e   : > { %v4986_v27 = vpop.eup %4985 }
 0x40f   : > { %v625_v34 = vadd.f32 1.0, %v4986_v27  ;;  %v3481_v27 = vsel %vm536_vm2, %v3459_v55, %v3480_v21 }
 0x411   : > { %4987 = vrcp.f32 %v625_v34 }
 0x41e   : > { %v4988_v24 = vpop.eup %4987 }
 0x444   : > { %v3345_v9 = vpop.permute.xlu1 %3344 }
 0x445   : > { %v3348_v29 = vpop.permute.xlu0 %3347  ;;  %v3370_v32 = vrot.slane %v3345_v9, %v7392_v1 }
 0x446   : > { %v3374_v2 = vrot.slane %v3348_v29, %v7392_v1 }
 0x448   : > { %v3351_v54 = vpop.permute.xlu1 %3350  ;;  %v3399_v48 = vsel %vm534_vm1, %v3374_v2, %v3370_v32  ;;  %v3482_v2 = vsel %vm538_vm5, %v3463_v8, %v3481_v27  ;;  %v8673_v27 = vld [vmem:[#allocation84_spill] sm:$0xff] }
 0x449   : > { %v3354_v42 = vpop.permute.xlu0 %3353  ;;  %v3378_v51 = vrot.slane %v3351_v54, %v7392_v1 }
 0x44a   : > { %v3382_v26 = vrot.slane %v3354_v42, %v7392_v1  ;;  %v3321_v42 = vsel %vm540_vm6, %v3305_v47, %v3320_v45 }
 0x44b   : > { %v3400_v12 = vsel %vm536_vm2, %v3378_v51, %v3399_v48  ;;  %v3322_v19 = vsel %vm542_vm7, %v3309_v28, %v3321_v42  ;;  %v7523_v42 = vmul.f32 0.125, %v8673_v27 }
 0x44c   : > { %v3357_v23 = vpop.permute.xlu1 %3356  ;;  %v3401_v29 = vsel %vm538_vm5, %v3382_v26, %v3400_v12  ;;  %v3475_v26 = vrot.slane %v7428_v14, %v7392_v1  ;;  %v3471_v12 = vrot.slane %v7455_v38, %v7392_v1  ;;  %v3479_v38 = vrot.slane %v7457_v41, %v7392_v1 }
 0x44d   : > { %v3360_v44 = vpop.permute.xlu0 %3359  ;;  %v3386_v3 = vrot.slane %v3357_v23, %v7392_v1  ;;  %v3467_v23 = vrot.slane %v7404_v49, %v7392_v1  ;;  %v3570_v41 = vmul.f32 10.0, %v7523_v42 }
 0x44e   : > { %v3390_v22 = vrot.slane %v3360_v44, %v7392_v1  ;;  %v3313_v44 = vrot.slane %v7409_v37, %v7392_v1 }
 0x44f   : > { %v3402_v54 = vsel %vm540_vm6, %v3386_v3, %v3401_v29  ;;  %v3483_v48 = vsel %vm540_vm6, %v3467_v23, %v3482_v2 }
 0x450   : > { %v3403_v51 = vsel %vm542_vm7, %v3390_v22, %v3402_v54  ;;  %v3323_v58 = vsel %vm544_vm8, %v3313_v44, %v3322_v19  ;;  %v3484_v47 = vsel %vm542_vm7, %v3471_v12, %v3483_v48 }
 0x451   : > { %v3363_v46 = vpop.permute.xlu1 %3362  ;;  %v3324_v37 = vsel %vm546_vm9, %v3317_v20, %v3323_v58  ;;  %v3485_v14 = vsel %vm544_vm8, %v3475_v26, %v3484_v47 }
 0x452   : > { %v3366_v11 = vpop.permute.xlu0 %3365  ;;  %v3394_v25 = vrot.slane %v3363_v46, %v7392_v1 }
 0x453   : > { %v3398_v32 = vrot.slane %v3366_v11, %v7392_v1  ;;  %v627_v11 = vmul.f32 -1.0, %v4988_v24 }
 0x454   : > { %v3404_v0 = vsel %vm544_vm8, %v3394_v25, %v3403_v51  ;;  %v5017_v51 = vld [vmem:[%s5119_s19] sm:$0xff] }
 0x455   : > { %v3405_v3 = vsel %vm546_vm9, %v3398_v32, %v3404_v0  ;;  %v3326_v21 = vadd.f32 %v3324_v37, %v627_v11 }
 0x457   : > { %v3407_v22 = vadd.f32 %v3405_v3, %v3326_v21  ;;  %v8674_v21 = vmov 0.0  }
 0x465   : > { %v3507_v9 = vpop.permute.xlu0 %3506 }
 0x466   : > { %v3532_v52 = vrot.slane %v3507_v9, %v7392_v1 }
 0x467   : > { %v3510_v34 = vpop.permute.xlu1 %3509 }
 0x468   : > { %v3536_v6 = vrot.slane %v3510_v34, %v7392_v1  ;;  %v3486_v34 = vsel %vm546_vm9, %v3479_v38, %v3485_v14 }
 0x469   : > { %v3513_v60 = vpop.permute.xlu0 %3512 }
 0x46a   : > { %v3540_v43 = vrot.slane %v3513_v60, %v7392_v1  ;;  %v3561_v33 = vsel %vm534_vm1, %v3536_v6, %v3532_v52  ;;  %v3488_v6 = vadd.f32 %v3486_v34, %v3407_v22 }
 0x46b   : > { %v3516_v53 = vpop.permute.xlu1 %3515 }
 0x46c   : > { %v3544_v49 = vrot.slane %v3516_v53, %v7392_v1  ;;  %v3562_v63 = vsel %vm536_vm2, %v3540_v43, %v3561_v33 }
 0x46d   : > { %v3519_v46 = vpop.permute.xlu0 %3518 }
 0x46e   : > { %v3548_v45 = vrot.slane %v3519_v46, %v7392_v1  ;;  %v3563_v55 = vsel %vm538_vm5, %v3544_v49, %v3562_v63 }
 0x46f   : > { %v3522_v28 = vpop.permute.xlu1 %3521 }
 0x470   : > { %v3552_v8 = vrot.slane %v3522_v28, %v7392_v1  ;;  %v3564_v29 = vsel %vm540_vm6, %v3548_v45, %v3563_v55 }
 0x471   : > { %v3525_v9 = vpop.permute.xlu0 %3524 }
 0x472   : > { %v3556_v54 = vrot.slane %v3525_v9, %v7392_v1  ;;  %v3565_v19 = vsel %vm542_vm7, %v3552_v8, %v3564_v29 }
 0x473   : > { %v3528_v25 = vpop.permute.xlu1 %3527 }
 0x474   : > { %v3560_v20 = vrot.slane %v3528_v25, %v7392_v1  ;;  %v3566_v52 = vsel %vm544_vm8, %v3556_v54, %v3565_v19 }
 0x476   : > { %v3567_v44 = vsel %vm546_vm9, %v3560_v20, %v3566_v52 }
 0x477   : > { %v3569_v23 = vadd.f32 %v3567_v44, %v3488_v6 }
 0x479   : > { %v3571_v24 = vadd.f32 %v3570_v41, %v3569_v23  ;;  %v8675_v41 = vld [vmem:[#allocation122_spill] sm:$0xff] }
 0x47b   : > { %vm3572_vm14 = vcmp.ne.f32.partialorder %v3571_v24, %v3571_v24 }
 0x47c   : > { %v3573_v2 = vsel %vm3572_vm14, inf, %v3571_v24  ;;  %vm4431_vm14 = vcmp.eq.s32.totalorder %v7386_v16, 1 }
 0x47d   : > { %v3575_v32 = vsel %vm3574_vm13, %v3573_v2, inf }
 0x47e   : > { %3576 = vmin.xlane.f32.xlu0 %v3575_v32 }
 0x494   : > { %3599 = vperm.xlu0 %4854, %v5017_v51  }
 0x507   : > { %v3577_v60 = vpop.xlane.xlu0 %3576 }
 0x508   : > { %vm3578_vm15 = vcmp.eq.f32.partialorder %v3573_v2, %v3577_v60 }
 0x509   : > { %v3579_v58 = vsel %vm3578_vm15, %v7386_v16, 8  ;;  %vm4436_vm15 = vcmp.eq.s32.totalorder %v7386_v16, 2 }
 0x50a   : > { %v3580_v0 = vsel %vm3574_vm13, %v3579_v58, 2147483647 }
 0x50b   : > { %v3582_v43 = vshra.s32 %v3580_v0, 16  ;;  %v3581_v37 = vand.u32 65535, %v3580_v0 }
 0x50d   : > { %v3584_v53 = vcvt.s32.f32 %v3582_v43  ;;  %v3583_v49 = vcvt.s32.f32 %v3581_v37 }
 0x50f   : > { %3585 = vmin.xlane.f32.xlu1 %v3584_v53  ;;  %v3600_v26 = vpop.permute.xlu0 %3599 }
 0x598   : > { %v3586_v33 = vpop.xlane.xlu1 %3585 }
 0x599   : > { %vm3587_vm0 = vcmp.eq.f32.partialorder %v3584_v53, %v3586_v33  ;;  %v3592_v11 = vcvt.f32.s32 %v3586_v33  ;;  %v8676_v53 = vld [vmem:[#allocation123_spill] sm:$0xff]  ;;  %v8678_v33 = vld [vmem:[#allocation46_spill] sm:$0xff] }
 0x59a   : > { %v3588_v48 = vsel %vm3587_vm0, %v3583_v49, inf  ;;  %vm4446_vm0 = vcmp.eq.s32.totalorder %v7386_v16, 3 }
 0x59b   : > { %3589 = vmin.xlane.f32.xlu0 %v3588_v48  ;;  %v3593_v12 = vshll.u32 %v3592_v11, 16  ;;  %v8680_v48 = vld [vmem:[#allocation127_spill] sm:$0xff]  ;;  %v8681_v11 = vld [vmem:[#allocation124_spill] sm:$0xff] }
 0x624   : > { %v3590_v63 = vpop.xlane.xlu0 %3589 }
 0x625   : > { %v3591_v3 = vcvt.f32.s32 %v3590_v63 }
 0x627   : > { %v3594_v46 = vadd.s32 %v3593_v12, %v3591_v3  ;;  %v8682_v12 = vld [vmem:[#allocation9_spill] sm:$0xff] }
 0x629   : > { %vm3595_vm3 = vcmp.eq.s32.totalorder %v7386_v16, %v3594_v46  ;;  %v8683_v46 = vld [vmem:[#allocation128_spill] sm:$0xff] }
 0x62a   : > { %v7538_v45 = vsel %vm3595_vm3, 1.0, %v8674_v21  ;;  %v3601_v28 = vsel %vm3595_vm3, %v3600_v26, 0  ;;  %vm4456_vm3 = vcmp.eq.s32.totalorder %v7386_v16, 4 }
 0x62b   : > { %v3669_v47 = vrot.slane %v7538_v45, %v8637_v57  ;;  %v3627_v55 = vrot.slane %v7538_v45, %v8633_v59  ;;  %vm3602_vm4 = vcmp.eq.s32.totalorder %v3601_v28, 1  ;;  %v3634_v14 = vrot.slane %v7538_v45, %v8634_v15 }
 0x62c   : > { %v3603_v8 = vsel %vm3602_vm4, %v7451_v62, %v7447_v18  ;;  %v3641_v29 = vrot.slane %v7538_v45, %v8626_v40  ;;  %v3648_v57 = vrot.slane %v7538_v45, %v8639_v31  ;;  %v3655_v9 = vrot.slane %v7538_v45, %v8627_v7 }
 0x62d   : > { %3671 = vbcast.lane.b32.xlu0 %v3669_v47, 256  ;;  %3629 = vbcast.lane.b32.xlu1 %v3627_v55, 256  ;;  %v3606_v22 = vand.u32 2147483647, %v3603_v8  ;;  %v3662_v15 = vrot.slane %v7538_v45, %v8640_v13  ;;  %v3676_v18 = vrot.slane %v7538_v45, %v8642_v17  ;;  %v3604_v31 = vsub.f32 0.0, %v3603_v8 }
 0x62e   : > { %vm3614_vm10 = vcmp.eq.s32.totalorder %v3601_v28, 0  ;;  %v5043_v7 = vmov 1.0   ;;  %v8684_v47 = vmov 5   ;;  %vm4466_vm4 = vcmp.eq.s32.totalorder %v7386_v16, 5 }
 0x62f   : > { %v3607_v38 = vsub.f32 0.0, %v3606_v22  ;;  %v3605_v25 = vmax.f32 %v3604_v31, 0.0  ;;  %v3615_v19 = vsel %vm3614_vm10, 0.1, %v5043_v7  ;;  %vm4476_vm10 = vcmp.eq.s32.totalorder %v7386_v16, 6 }
 0x630   : > { %v3620_v20 = vsel %vm3574_vm13, %v3615_v19, 0.0 }
 0x631   : > { %3636 = vbcast.lane.b32.xlu1 %v3634_v14, 256  ;;  %v3608_v59 = vmul.f32 1.442695, %v3607_v38 }
 0x633   : > { %4989 = vpow2.f32 %v3608_v59 }
 0x635   : > { %3643 = vbcast.lane.b32.xlu1 %v3641_v29, 256 }
 0x639   : > { %3650 = vbcast.lane.b32.xlu1 %v3648_v57, 256 }
 0x63d   : > { %3657 = vbcast.lane.b32.xlu1 %v3655_v9, 256 }
 0x640   : > { %v4990_v40 = vpop.eup %4989 }
 0x641   : > { %3664 = vbcast.lane.b32.xlu1 %v3662_v15, 256  ;;  %v3610_v62 = vadd.f32 1.0, %v4990_v40 }
 0x643   : > { %4991 = vlog2.f32 %v3610_v62 }
 0x645   : > { %3678 = vbcast.lane.b32.xlu1 %v3676_v18, 256 }
 0x650   : > { %v4992_v27 = vpop.eup %4991 }
 0x651   : > { %v3612_v54 = vmul.f32 0.6931472, %v4992_v27 }
 0x653   : > { %v3613_v34 = vadd.f32 %v3612_v54, %v3605_v25 }
 0x655   : > { %v3616_v52 = vmul.f32 %v3615_v19, %v3613_v34 }
 0x657   : > { %v3617_v13 = vsel %vm3574_vm13, %v3616_v52, 0.0 }
 0x669   : > { %3621 = vadd.xlane.f32.xlu1 %v3620_v20 }
 0x66d   : > { %3618 = vadd.xlane.f32.xlu1 %v3617_v13 }
 0x69f   : > { %v3630_v17 = vpop.permute.xlu1 %3629  ;;  %v3672_v58 = vpop.permute.xlu0 %3671 }
 0x6a0   : > { %v7561_v6 = vmul.f32 %v3630_v17, %v6351_v39  ;;  %v7581_v43 = vmul.f32 %v3672_v58, %v6403_v4  ;;  %v7603_v49 = vmul.f32 %v3630_v17, %v8678_v33  ;;  %v7631_v28 = vmul.f32 %v3672_v58, %v8683_v46 }
 0x6a2   : > { %3705 = vperm.xlu0 %4854, %v7561_v6  }
 0x6a3   : > { %v3637_v44 = vpop.permute.xlu1 %3636 }
 0x6a4   : > { %v7565_v23 = vmul.f32 %v3637_v44, %v8675_v41  ;;  %v7589_v37 = vmul.f32 %v3637_v44, %v8676_v53 }
 0x6a6   : > { %3708 = vperm.xlu1 %4855, %v7565_v23  }
 0x6a7   : > { %v3644_v24 = vpop.permute.xlu1 %3643 }
 0x6a8   : > { %v7569_v2 = vmul.f32 %v3644_v24, %v8465_v56 }
 0x6aa   : > { %3711 = vperm.xlu0 %4854, %v7569_v2  }
 0x6ab   : > { %v3651_v32 = vpop.permute.xlu1 %3650 }
 0x6ac   : > { %v7573_v51 = vmul.f32 %v3651_v32, %v6397_v10  ;;  %v7616_v26 = vmul.f32 %v3651_v32, %v8680_v48 }
 0x6ae   : > { %3714 = vperm.xlu1 %4855, %v7573_v51  }
 0x6af   : > { %v3658_v39 = vpop.permute.xlu1 %3657 }
 0x6b0   : > { %v7577_v60 = vmul.f32 %v3658_v39, %v6381_v50  ;;  %v7621_v63 = vmul.f32 %v3658_v39, %v8681_v11 }
 0x6b2   : > { %3717 = vperm.xlu0 %4854, %v7577_v60  }
 0x6b3   : > { %v3665_v0 = vpop.permute.xlu1 %3664 }
 0x6b4   : > { %v7584_v56 = vmul.f32 %v3665_v0, %v6425_v36  ;;  %v8677_v36 = vmov 1   ;;  %v7626_v3 = vmul.f32 %v3665_v0, %v8682_v12 }
 0x6b6   : > { %3723 = vperm.xlu0 %4854, %v7581_v43   ;;  %3720 = vperm.xlu1 %4855, %v7584_v56  }
 0x6b7   : > { %v3679_v10 = vpop.permute.xlu1 %3678 }
 0x6b8   : > { %v7592_v50 = vmul.f32 %v3679_v10, %v8608_v35  ;;  %v7597_v4 = vmul.f32 %v3679_v10, %v8610_v30  ;;  %v8679_v35 = vld [vmem:[#allocation120_spill] sm:$0xff] }
 0x6b9   : > { %v7611_v30 = vmul.f32 %v3644_v24, %v8679_v35 }
 0x6ba   : > { %3858 = vperm.xlu0 %4854, %v7589_v37   ;;  %3726 = vperm.xlu1 %4855, %v7592_v50  }
 0x6be   : > { %3876 = vperm.xlu0 %4854, %v7597_v4   ;;  %4856 = vset.pattern.permute.xlu1 %v8677_v36 }
 0x6bf   : > { %3772 = vperm.xlu1 %4856, %v7561_v6  }
 0x6c2   : > { %4858 = vset.pattern.permute.xlu0 %v8677_v36 }
 0x6c3   : > { %3922 = vperm.xlu0 %4858, %v7603_v49   ;;  %3775 = vperm.xlu1 %4856, %v7565_v23  }
 0x6c7   : > { %3925 = vperm.xlu0 %4858, %v7589_v37   ;;  %3778 = vperm.xlu1 %4856, %v7569_v2  }
 0x6cb   : > { %3928 = vperm.xlu0 %4858, %v7611_v30   ;;  %3781 = vperm.xlu1 %4856, %v7573_v51  }
 0x6cf   : > { %3931 = vperm.xlu0 %4858, %v7616_v26   ;;  %3784 = vperm.xlu1 %4856, %v7577_v60  }
 0x6d3   : > { %3934 = vperm.xlu0 %4858, %v7621_v63   ;;  %3787 = vperm.xlu1 %4856, %v7584_v56  }
 0x6d7   : > { %3937 = vperm.xlu0 %4858, %v7626_v3   ;;  %3790 = vperm.xlu1 %4856, %v7581_v43  }
 0x6db   : > { %3940 = vperm.xlu0 %4858, %v7631_v28   ;;  %3793 = vperm.xlu1 %4856, %v7592_v50  }
 0x6df   : > { %3943 = vperm.xlu0 %4858, %v7597_v4   ;;  %4857 = vset.pattern.permute.xlu1 %v8653_v5 }
 0x6e0   : > { %3855 = vperm.xlu1 %4857, %v7603_v49  }
 0x6e3   : > { %4859 = vset.pattern.permute.xlu0 %v8652_v61 }
 0x6e4   : > { %3989 = vperm.xlu0 %4859, %v7561_v6   ;;  %3861 = vperm.xlu1 %4857, %v7611_v30  }
 0x6e8   : > { %4861 = vset.pattern.permute.xlu0 %v8684_v47  ;;  %3864 = vperm.xlu1 %4857, %v7616_v26  }
 0x6e9   : > { %4059 = vperm.xlu0 %4861, %v7565_v23  }
 0x6ec   : > { %3867 = vperm.xlu1 %4857, %v7621_v63  }
 0x6ed   : > { %4062 = vperm.xlu0 %4861, %v7569_v2  }
 0x6f0   : > { %3870 = vperm.xlu1 %4857, %v7626_v3  }
 0x6f1   : > { %4068 = vperm.xlu0 %4861, %v7577_v60  }
 0x6f2   : > { %v7673_v55 = vpop.xlane.xlu1 %3621 }
 0x6f4   : > { %3873 = vperm.xlu1 %4857, %v7631_v28  }
 0x6f5   : > { %4074 = vperm.xlu0 %4861, %v7581_v43  }
 0x6f6   : > { %v7676_v8 = vpop.xlane.xlu1 %3618 }
 0x6f8   : > { %4860 = vset.pattern.permute.xlu1 %v8684_v47 }
 0x6f9   : > { %4862 = vset.pattern.permute.xlu0 %v8652_v61  ;;  %4056 = vperm.xlu1 %4860, %v7561_v6  }
 0x6fa   : > { %3992 = vperm.xlu0 %4862, %v7565_v23  }
 0x6fd   : > { %4065 = vperm.xlu1 %4860, %v7573_v51  }
 0x6fe   : > { %4865 = vset.pattern.permute.xlu0 %v8684_v47 }
 0x6ff   : > { %4193 = vperm.xlu0 %4865, %v7589_v37  }
 0x701   : > { %4071 = vperm.xlu1 %4860, %v7584_v56  }
 0x703   : > { %4199 = vperm.xlu0 %4865, %v7616_v26  }
 0x705   : > { %4077 = vperm.xlu1 %4860, %v7592_v50  }
 0x707   : > { %4202 = vperm.xlu0 %4865, %v7621_v63  }
 0x709   : > { %4863 = vset.pattern.permute.xlu1 %v8652_v61 }
 0x70a   : > { %3995 = vperm.xlu1 %4863, %v7569_v2  }
 0x70b   : > { %4205 = vperm.xlu0 %4865, %v7626_v3  }
 0x70e   : > { %4864 = vset.pattern.permute.xlu1 %v8684_v47 }
 0x70f   : > { %4208 = vperm.xlu0 %4865, %v7631_v28   ;;  %4190 = vperm.xlu1 %4864, %v7603_v49  }
 0x713   : > { %4211 = vperm.xlu0 %4865, %v7597_v4   ;;  %4196 = vperm.xlu1 %4864, %v7611_v30  }
 0x717   : > { %4866 = vset.pattern.permute.xlu1 %v8652_v61  ;;  %4867 = vset.pattern.permute.xlu0 %v8652_v61 }
 0x718   : > { %3998 = vperm.xlu1 %4866, %v7573_v51  }
 0x71c   : > { %4001 = vperm.xlu1 %4866, %v7577_v60  }
 0x71d   : > { %v3706_v14 = vpop.permute.xlu0 %3705 }
 0x71e   : > { %v3731_v15 = vrot.slane %v3706_v14, %v7392_v1 }
 0x720   : > { %4004 = vperm.xlu1 %4866, %v7584_v56  }
 0x721   : > { %v3709_v22 = vpop.permute.xlu1 %3708 }
 0x722   : > { %v3735_v57 = vrot.slane %v3709_v22, %v7392_v1 }
 0x724   : > { %4007 = vperm.xlu1 %4866, %v7581_v43   ;;  %v3760_v62 = vsel %vm534_vm1, %v3735_v57, %v3731_v15 }
 0x725   : > { %v3712_v29 = vpop.permute.xlu0 %3711 }
 0x726   : > { %v3739_v59 = vrot.slane %v3712_v29, %v7392_v1 }
 0x728   : > { %4010 = vperm.xlu1 %4866, %v7592_v50   ;;  %v3761_v27 = vsel %vm536_vm2, %v3739_v59, %v3760_v62 }
 0x729   : > { %v3715_v38 = vpop.permute.xlu1 %3714 }
 0x72a   : > { %v3743_v18 = vrot.slane %v3715_v38, %v7392_v1 }
 0x72c   : > { %4868 = vset.pattern.permute.xlu1 %v8653_v5  ;;  %v3762_v25 = vsel %vm538_vm5, %v3743_v18, %v3761_v27 }
 0x72d   : > { %v3718_v9 = vpop.permute.xlu0 %3717 }
 0x72e   : > { %v3747_v40 = vrot.slane %v3718_v9, %v7392_v1 }
 0x730   : > { %v3763_v7 = vsel %vm540_vm6, %v3747_v40, %v3762_v25 }
 0x731   : > { %v3724_v31 = vpop.permute.xlu0 %3723  ;;  %v3721_v54 = vpop.permute.xlu1 %3720 }
 0x732   : > { %v3751_v34 = vrot.slane %v3721_v54, %v7392_v1  ;;  %v3755_v19 = vrot.slane %v3724_v31, %v7392_v1 }
 0x734   : > { %v3764_v20 = vsel %vm542_vm7, %v3751_v34, %v3763_v7 }
 0x735   : > { %v3859_v52 = vpop.permute.xlu0 %3858  ;;  %v3727_v13 = vpop.permute.xlu1 %3726  ;;  %v3765_v6 = vsel %vm544_vm8, %v3755_v19, %v3764_v20 }
 0x736   : > { %v3759_v17 = vrot.slane %v3727_v13, %v7392_v1  ;;  %v3885_v13 = vrot.slane %v3859_v52, %v7392_v1 }
 0x738   : > { %v3766_v44 = vsel %vm546_vm9, %v3759_v17, %v3765_v6 }
 0x739   : > { %v7696_v41 = vpop.permute.xlu0 %3876  ;;  %v3768_v23 = vsel %vm3574_vm13, %v3766_v44, 0.0 }
 0x73a   : > { %3769 = vadd.xlane.f32.xlu0 %v3768_v23  ;;  %v3773_v24 = vpop.permute.xlu1 %3772 }
 0x73b   : > { %v3798_v36 = vrot.slane %v3773_v24, %v7392_v1 }
 0x73e   : > { %v3923_v2 = vpop.permute.xlu0 %3922  ;;  %v3776_v32 = vpop.permute.xlu1 %3775 }
 0x73f   : > { %v3802_v53 = vrot.slane %v3776_v32, %v7392_v1  ;;  %v3948_v32 = vrot.slane %v3923_v2, %v7392_v1 }
 0x741   : > { %v3827_v12 = vsel %vm534_vm1, %v3802_v53, %v3798_v36 }
 0x742   : > { %v3926_v51 = vpop.permute.xlu0 %3925  ;;  %v3779_v39 = vpop.permute.xlu1 %3778 }
 0x743   : > { %v3806_v50 = vrot.slane %v3779_v39, %v7392_v1  ;;  %v3952_v17 = vrot.slane %v3926_v51, %v7392_v1 }
 0x745   : > { %v3828_v47 = vsel %vm536_vm2, %v3806_v50, %v3827_v12  ;;  %v3977_v53 = vsel %vm534_vm1, %v3952_v17, %v3948_v32 }
 0x746   : > { %v3929_v60 = vpop.permute.xlu0 %3928  ;;  %v3782_v58 = vpop.permute.xlu1 %3781 }
 0x747   : > { %v3810_v33 = vrot.slane %v3782_v58, %v7392_v1  ;;  %v3956_v23 = vrot.slane %v3929_v60, %v7392_v1 }
 0x749   : > { %v3829_v22 = vsel %vm538_vm5, %v3810_v33, %v3828_v47  ;;  %v3978_v2 = vsel %vm536_vm2, %v3956_v23, %v3977_v53 }
 0x74a   : > { %v3932_v0 = vpop.permute.xlu0 %3931  ;;  %v3785_v43 = vpop.permute.xlu1 %3784 }
 0x74b   : > { %v3814_v35 = vrot.slane %v3785_v43, %v7392_v1  ;;  %v3960_v39 = vrot.slane %v3932_v0, %v7392_v1 }
 0x74d   : > { %v3830_v29 = vsel %vm540_vm6, %v3814_v35, %v3829_v22 }
 0x74e   : > { %v3935_v56 = vpop.permute.xlu0 %3934  ;;  %v3788_v10 = vpop.permute.xlu1 %3787 }
 0x74f   : > { %v3818_v46 = vrot.slane %v3788_v10, %v7392_v1  ;;  %v3964_v52 = vrot.slane %v3935_v56, %v7392_v1  ;;  %v3909_v56 = vrot.slane %v7696_v41, %v7392_v1 }
 0x751   : > { %v3831_v59 = vsel %vm542_vm7, %v3818_v46, %v3830_v29 }
 0x752   : > { %v3938_v48 = vpop.permute.xlu0 %3937  ;;  %v3791_v11 = vpop.permute.xlu1 %3790 }
 0x753   : > { %v3822_v14 = vrot.slane %v3791_v11, %v7392_v1  ;;  %v3968_v50 = vrot.slane %v3938_v48, %v7392_v1  ;;  %v3979_v11 = vsel %vm538_vm5, %v3960_v39, %v3978_v2 }
 0x754   : > { %v3980_v46 = vsel %vm540_vm6, %v3964_v52, %v3979_v11 }
 0x755   : > { %v3832_v15 = vsel %vm544_vm8, %v3822_v14, %v3831_v59  ;;  %v3981_v14 = vsel %vm542_vm7, %v3968_v50, %v3980_v46 }
 0x756   : > { %v3941_v38 = vpop.permute.xlu0 %3940  ;;  %v3794_v57 = vpop.permute.xlu1 %3793 }
 0x757   : > { %v3826_v9 = vrot.slane %v3794_v57, %v7392_v1  ;;  %v3972_v0 = vrot.slane %v3941_v38, %v7392_v1 }
 0x759   : > { %v3833_v18 = vsel %vm546_vm9, %v3826_v9, %v3832_v15  ;;  %v3982_v57 = vsel %vm544_vm8, %v3972_v0, %v3981_v14 }
 0x75a   : > { %v3835_v40 = vsel %vm3574_vm13, %v3833_v18, 0.0  ;;  %v3944_v62 = vpop.permute.xlu0 %3943 }
 0x75b   : > { %3836 = vadd.xlane.f32.xlu0 %v3835_v40  ;;  %v3856_v27 = vpop.permute.xlu1 %3855  ;;  %v3976_v12 = vrot.slane %v3944_v62, %v7392_v1 }
 0x75c   : > { %v3881_v19 = vrot.slane %v3856_v27, %v7392_v1 }
 0x75e   : > { %v3910_v58 = vsel %vm534_vm1, %v3885_v13, %v3881_v19 }
 0x75f   : > { %v3862_v31 = vpop.permute.xlu1 %3861  ;;  %v7715_v54 = vpop.permute.xlu0 %3989 }
 0x760   : > { %v3889_v20 = vrot.slane %v3862_v31, %v7392_v1 }
 0x762   : > { %v3911_v51 = vsel %vm536_vm2, %v3889_v20, %v3910_v58 }
 0x763   : > { %v3865_v25 = vpop.permute.xlu1 %3864 }
 0x764   : > { %v4060_v34 = vpop.permute.xlu0 %4059  ;;  %v3893_v6 = vrot.slane %v3865_v25, %v7392_v1 }
 0x765   : > { %v4086_v59 = vrot.slane %v4060_v34, %v7392_v1 }
 0x766   : > { %v3912_v60 = vsel %vm538_vm5, %v3893_v6, %v3911_v51 }
 0x767   : > { %v3868_v7 = vpop.permute.xlu1 %3867 }
 0x768   : > { %v3897_v24 = vrot.slane %v3868_v7, %v7392_v1  ;;  %v4063_v43 = vpop.permute.xlu0 %4062 }
 0x769   : > { %v4090_v18 = vrot.slane %v4063_v43, %v7392_v1 }
 0x76a   : > { %v3913_v33 = vsel %vm540_vm6, %v3897_v24, %v3912_v60 }
 0x76b   : > { %v3871_v44 = vpop.permute.xlu1 %3870 }
 0x76c   : > { %v3901_v10 = vrot.slane %v3871_v44, %v7392_v1  ;;  %v4069_v22 = vpop.permute.xlu0 %4068 }
 0x76d   : > { %v4098_v34 = vrot.slane %v4069_v22, %v7392_v1 }
 0x76e   : > { %v3914_v48 = vsel %vm542_vm7, %v3901_v10, %v3913_v33 }
 0x76f   : > { %v3874_v36 = vpop.permute.xlu1 %3873 }
 0x770   : > { %v3905_v35 = vrot.slane %v3874_v36, %v7392_v1  ;;  %v4075_v27 = vpop.permute.xlu0 %4074 }
 0x771   : > { %4123 = vperm.xlu0 %4867, %v7603_v49   ;;  %v3983_v49 = vsel %vm546_vm9, %v3976_v12, %v3982_v57  ;;  %v4106_v6 = vrot.slane %v4075_v27, %v7392_v1 }
 0x772   : > { %v3915_v47 = vsel %vm544_vm8, %v3905_v35, %v3914_v48  ;;  %v3985_v62 = vsel %vm3574_vm13, %v3983_v49, 0.0  ;;  %v4015_v48 = vrot.slane %v7715_v54, %v7392_v1 }
 0x773   : > { %v3916_v29 = vsel %vm546_vm9, %v3909_v56, %v3915_v47 }
 0x774   : > { %v4057_v38 = vpop.permute.xlu1 %4056  ;;  %v3918_v41 = vsel %vm3574_vm13, %v3916_v29, 0.0 }
 0x775   : > { %v4082_v9 = vrot.slane %v4057_v38, %v7392_v1  ;;  %4126 = vperm.xlu0 %4867, %v7589_v37   ;;  %3919 = vadd.xlane.f32.xlu1 %v3918_v41  ;;  %v3993_v13 = vpop.permute.xlu0 %3992 }
 0x776   : > { %v4019_v33 = vrot.slane %v3993_v13, %v7392_v1 }
 0x777   : > { %v4111_v15 = vsel %vm534_vm1, %v4086_v59, %v4082_v9 }
 0x778   : > { %v4066_v40 = vpop.permute.xlu1 %4065  ;;  %v4112_v25 = vsel %vm536_vm2, %v4090_v18, %v4111_v15  ;;  %v4044_v29 = vsel %vm534_vm1, %v4019_v33, %v4015_v48 }
 0x779   : > { %v4094_v31 = vrot.slane %v4066_v40, %v7392_v1  ;;  %4129 = vperm.xlu0 %4867, %v7611_v30   ;;  %3986 = vadd.xlane.f32.xlu1 %v3985_v62 }
 0x77a   : > { %v4194_v39 = vpop.permute.xlu0 %4193 }
 0x77b   : > { %v4113_v37 = vsel %vm538_vm5, %v4094_v31, %v4112_v25  ;;  %v4220_v60 = vrot.slane %v4194_v39, %v7392_v1 }
 0x77c   : > { %v4072_v7 = vpop.permute.xlu1 %4071  ;;  %v4114_v20 = vsel %vm540_vm6, %v4098_v34, %v4113_v37 }
 0x77d   : > { %v4102_v19 = vrot.slane %v4072_v7, %v7392_v1  ;;  %4132 = vperm.xlu0 %4867, %v7616_v26  }
 0x77e   : > { %v4200_v43 = vpop.permute.xlu0 %4199 }
 0x77f   : > { %v4115_v17 = vsel %vm542_vm7, %v4102_v19, %v4114_v20  ;;  %v4228_v0 = vrot.slane %v4200_v43, %v7392_v1 }
 0x780   : > { %v4078_v30 = vpop.permute.xlu1 %4077  ;;  %v4116_v23 = vsel %vm544_vm8, %v4106_v6, %v4115_v17  ;;  %v7811_v6 = vld [vmem:[%s5113_s16] sm:$0xff] }
 0x781   : > { %v4110_v44 = vrot.slane %v4078_v30, %v7392_v1  ;;  %4135 = vperm.xlu0 %4867, %v7621_v63   ;;  %v8685_v63 = vmov 6  }
 0x782   : > { %v4203_v52 = vpop.permute.xlu0 %4202 }
 0x783   : > { %v4117_v24 = vsel %vm546_vm9, %v4110_v44, %v4116_v23  ;;  %v4232_v56 = vrot.slane %v4203_v52, %v7392_v1 }
 0x784   : > { %v4119_v32 = vsel %vm3574_vm13, %v4117_v24, 0.0 }
 0x785   : > { %4138 = vperm.xlu0 %4867, %v7626_v3   ;;  %4120 = vadd.xlane.f32.xlu1 %v4119_v32  ;;  %v3996_v26 = vpop.permute.xlu1 %3995 }
 0x786   : > { %v4206_v3 = vpop.permute.xlu0 %4205  ;;  %v4023_v11 = vrot.slane %v3996_v26, %v7392_v1 }
 0x787   : > { %v4236_v38 = vrot.slane %v4206_v3, %v7392_v1 }
 0x788   : > { %v4045_v57 = vsel %vm536_vm2, %v4023_v11, %v4044_v29 }
 0x789   : > { %4141 = vperm.xlu0 %4867, %v7631_v28  }
 0x78a   : > { %v4191_v58 = vpop.permute.xlu1 %4190  ;;  %v4209_v12 = vpop.permute.xlu0 %4208 }
 0x78b   : > { %v4216_v53 = vrot.slane %v4191_v58, %v7392_v1  ;;  %v4240_v49 = vrot.slane %v4209_v12, %v7392_v1 }
 0x78d   : > { %4144 = vperm.xlu0 %4867, %v7597_v4   ;;  %v4245_v2 = vsel %vm534_vm1, %v4220_v60, %v4216_v53 }
 0x78e   : > { %v4197_v10 = vpop.permute.xlu1 %4196  ;;  %v4212_v15 = vpop.permute.xlu0 %4211 }
 0x78f   : > { %v4224_v50 = vrot.slane %v4197_v10, %v7392_v1  ;;  %v4244_v37 = vrot.slane %v4212_v15, %v7392_v1 }
 0x791   : > { %4872 = vset.pattern.permute.xlu0 %v8685_v63  ;;  %v4246_v28 = vsel %vm536_vm2, %v4224_v50, %v4245_v2 }
 0x792   : > { %v4247_v35 = vsel %vm538_vm5, %v4228_v0, %v4246_v28 }
 0x793   : > { %v3999_v51 = vpop.permute.xlu1 %3998  ;;  %v4248_v22 = vsel %vm540_vm6, %v4232_v56, %v4247_v35 }
 0x794   : > { %v4027_v46 = vrot.slane %v3999_v51, %v7392_v1  ;;  %v4249_v54 = vsel %vm542_vm7, %v4236_v38, %v4248_v22 }
 0x795   : > { %v4250_v25 = vsel %vm544_vm8, %v4240_v49, %v4249_v54 }
 0x796   : > { %v4046_v9 = vsel %vm538_vm5, %v4027_v46, %v4045_v57  ;;  %v4251_v19 = vsel %vm546_vm9, %v4244_v37, %v4250_v25 }
 0x797   : > { %v4002_v36 = vpop.permute.xlu1 %4001  ;;  %v4253_v20 = vsel %vm3574_vm13, %v4251_v19, 0.0 }
 0x798   : > { %v4031_v47 = vrot.slane %v4002_v36, %v7392_v1 }
 0x79a   : > { %v4047_v18 = vsel %vm540_vm6, %v4031_v47, %v4046_v9 }
 0x79b   : > { %v4005_v4 = vpop.permute.xlu1 %4004 }
 0x79c   : > { %v4035_v41 = vrot.slane %v4005_v4, %v7392_v1 }
 0x79e   : > { %v4048_v62 = vsel %vm542_vm7, %v4035_v41, %v4047_v18 }
 0x79f   : > { %v4008_v14 = vpop.permute.xlu1 %4007 }
 0x7a0   : > { %v4039_v59 = vrot.slane %v4008_v14, %v7392_v1 }
 0x7a2   : > { %v4049_v31 = vsel %vm544_vm8, %v4039_v59, %v4048_v62 }
 0x7a3   : > { %v4011_v40 = vpop.permute.xlu1 %4010 }
 0x7a4   : > { %v4043_v27 = vrot.slane %v4011_v40, %v7392_v1 }
 0x7a6   : > { %v4050_v34 = vsel %vm546_vm9, %v4043_v27, %v4049_v31 }
 0x7a7   : > { %v4052_v7 = vsel %vm3574_vm13, %v4050_v34, 0.0 }
 0x7a8   : > { %4053 = vadd.xlane.f32.xlu1 %v4052_v7 }
 0x7ac   : > { %4254 = vadd.xlane.f32.xlu0 %v4253_v20 }
 0x7c3   : > { %v7808_v13 = vpop.xlane.xlu0 %3769 }
 0x7c4   : > { %v4302_v57 = vmax.f32 %v7808_v13, %v7811_v6 }
 0x7e4   : > { %v3837_v17 = vpop.xlane.xlu0 %3836 }
 0x7e5   : > { %v4303_v30 = vmax.f32 %v3837_v17, %v7811_v6  ;;  %v4338_v44 = vmin.f32 %v3837_v17, %v7811_v6  ;;  %v4258_v27 = vsub.f32 %v3837_v17, %v7811_v6 }
 0x7e7   : > { %4312 = vrot.lane.b32.xlu1 %v4303_v30, %s5042_s18  ;;  %v4259_v37 = vand.u32 2147483647, %v4258_v27 }
 0x7eb   : > { %4347 = vrot.lane.b32.xlu1 %v4338_v44, %s5042_s18 }
 0x7ec   : > { %v4124_v23 = vpop.permute.xlu0 %4123 }
 0x7ed   : > { %v4149_v50 = vrot.slane %v4124_v23, %v7392_v1 }
 0x7f0   : > { %v4127_v24 = vpop.permute.xlu0 %4126 }
 0x7f1   : > { %v4153_v52 = vrot.slane %v4127_v24, %v7392_v1 }
 0x7f3   : > { %v4178_v28 = vsel %vm534_vm1, %v4153_v52, %v4149_v50 }
 0x7f4   : > { %v4130_v32 = vpop.permute.xlu0 %4129 }
 0x7f5   : > { %v4157_v51 = vrot.slane %v4130_v32, %v7392_v1 }
 0x7f7   : > { %v4179_v33 = vsel %vm536_vm2, %v4157_v51, %v4178_v28 }
 0x7f8   : > { %v4133_v39 = vpop.permute.xlu0 %4132 }
 0x7f9   : > { %v4161_v60 = vrot.slane %v4133_v39, %v7392_v1 }
 0x7fb   : > { %v4180_v56 = vsel %vm538_vm5, %v4161_v60, %v4179_v33 }
 0x7fc   : > { %v4136_v26 = vpop.permute.xlu0 %4135 }
 0x7fd   : > { %v4165_v36 = vrot.slane %v4136_v26, %v7392_v1 }
 0x7fe   : > { %v7817_v58 = vpop.xlane.xlu1 %3919 }
 0x7ff   : > { %v4329_v43 = vsub.f32 %v7817_v58, %v7808_v13  ;;  %v4181_v11 = vsel %vm540_vm6, %v4165_v36, %v4180_v56  ;;  %v4265_v32 = vsub.f32 %v7817_v58, %v7811_v6  ;;  %v4304_v56 = vmin.f32 %v7817_v58, %v7811_v6 }
 0x800   : > { %v4139_v10 = vpop.permute.xlu0 %4138 }
 0x801   : > { %v4169_v0 = vrot.slane %v4139_v10, %v7392_v1  ;;  %v4266_v26 = vand.u32 2147483647, %v4265_v32 }
 0x802   : > { %v3987_v53 = vpop.xlane.xlu1 %3986 }
 0x803   : > { %v4330_v3 = vsub.f32 %v3987_v53, %v3837_v17  ;;  %v4182_v48 = vsel %vm542_vm7, %v4169_v0, %v4181_v11  ;;  %v4305_v54 = vmin.f32 %v3987_v53, %v7811_v6  ;;  %v4340_v40 = vmax.f32 %v3987_v53, %v7811_v6 }
 0x804   : > { %v4142_v2 = vpop.permute.xlu0 %4141  ;;  %v4272_v34 = vsub.f32 %v3987_v53, %v7811_v6 }
 0x805   : > { %v7828_v4 = vmul.f32 %v4330_v3, %v4329_v43  ;;  %v4173_v35 = vrot.slane %v4142_v2, %v7392_v1  ;;  %v4422_v2 = vmul.f32 %v7538_v45, %v7523_v42  ;;  %v8686_v42 = vld [vmem:[#allocation17_spill] sm:$0xff] }
 0x806   : > { %v4273_v7 = vand.u32 2147483647, %v4272_v34 }
 0x807   : > { %v4183_v47 = vsel %vm544_vm8, %v4173_v35, %v4182_v48  ;;  %v4423_v28 = vsel %vm3574_vm13, %v4422_v2, 0.0  ;;  %v4332_v45 = vadd.f32 %v7828_v4, %v8686_v42 }
 0x808   : > { %v4145_v12 = vpop.permute.xlu0 %4144 }
 0x809   : > { %v4177_v46 = vrot.slane %v4145_v12, %v7392_v1  ;;  %v4337_v1 = vmin.f32 %v7808_v13, %v7811_v6 }
 0x80b   : > { %v4184_v14 = vsel %vm546_vm9, %v4177_v46, %v4183_v47  ;;  %v4339_v46 = vmax.f32 %v7817_v58, %v7811_v6 }
 0x80c   : > { %v4186_v22 = vsel %vm3574_vm13, %v4184_v14, 0.0 }
 0x80d   : > { %4187 = vadd.xlane.f32.xlu0 %v4186_v22 }
 0x80e   : > { %v4121_v29 = vpop.xlane.xlu1 %4120 }
 0x80f   : > { %v4363_v38 = vmax.f32 %v4121_v29, %v7811_v6  ;;  %v4398_v41 = vmin.f32 %v4121_v29, %v7811_v6  ;;  %v4281_v43 = vsub.f32 %v4121_v29, %v7811_v6 }
 0x811   : > { %4372 = vrot.lane.b32.xlu1 %v4363_v38, %s5042_s18 }
 0x815   : > { %4407 = vrot.lane.b32.xlu1 %v4398_v41, %s5042_s18 }
 0x819   : > { %4307 = vrot.lane.b32.xlu1 %v4302_v57, %s5042_s18 }
 0x81d   : > { %4342 = vrot.lane.b32.xlu1 %v4337_v1, %s5042_s18 }
 0x831   : > { %v7849_v59 = vpop.xlane.xlu1 %4053 }
 0x832   : > { %v4362_v9 = vmax.f32 %v7849_v59, %v7811_v6  ;;  %v4397_v31 = vmin.f32 %v7849_v59, %v7811_v6 }
 0x834   : > { %4367 = vrot.lane.b32.xlu1 %v4362_v9, %s5042_s18 }
 0x835   : > { %v4255_v19 = vpop.xlane.xlu0 %4254 }
 0x836   : > { %v4365_v20 = vmin.f32 %v4255_v19, %v7811_v6  ;;  %v4400_v24 = vmax.f32 %v4255_v19, %v7811_v6  ;;  %v4295_v10 = vsub.f32 %v4255_v19, %v7811_v6  ;;  %v4390_v51 = vsub.f32 %v4255_v19, %v4121_v29 }
 0x838   : > { %v4296_v60 = vand.u32 2147483647, %v4295_v10 }
 0x859   : > { %v4313_v49 = vpop.permute.xlu1 %4312 }
 0x85a   : > { %vm4315_vm1 = vcmp.gt.f32.partialorder %v4305_v54, %v4313_v49  ;;  %v4322_v15 = vsub.f32 %v4305_v54, %v4313_v49 }
 0x85b   : > { %v4316_v18 = vsel %vm4315_vm1, 1, %v8653_v5 }
 0x85c   : > { %4324 = vrot.lane.b32.xlu1 %v4322_v15, %s5036_s26  ;;  %4317 = vrot.lane.b32.xlu0 %v4316_v18, %s5036_s26 }
 0x85d   : > { %v4348_v62 = vpop.permute.xlu1 %4347 }
 0x85e   : > { %v4350_v25 = vsub.f32 %v4340_v40, %v4348_v62 }
 0x860   : > { %4402 = vrot.lane.b32.xlu0 %v4397_v31, %s5042_s18  ;;  %4352 = vrot.lane.b32.xlu1 %v4350_v25, %s5036_s26 }
 0x864   : > { %4261 = vrot.lane.b32.xlu0 %v4259_v37, %s5036_s26  ;;  %v4256_v37 = vsub.f32 %v7808_v13, %v7811_v6 }
 0x868   : > { %4275 = vrot.lane.b32.xlu0 %v4273_v7, %s5038_s30 }
 0x883   : > { %v4373_v17 = vpop.permute.xlu1 %4372 }
 0x884   : > { %vm4375_vm2 = vcmp.gt.f32.partialorder %v4365_v20, %v4373_v17  ;;  %v4382_v44 = vsub.f32 %v4365_v20, %v4373_v17 }
 0x885   : > { %v4376_v30 = vsel %vm4375_vm2, 1, %v8653_v5  ;;  %v4282_v5 = vand.u32 2147483647, %v4281_v43 }
 0x886   : > { %4377 = vrot.lane.b32.xlu1 %v4376_v30, %s5036_s26 }
 0x887   : > { %v4408_v23 = vpop.permute.xlu1 %4407 }
 0x888   : > { %v4410_v39 = vsub.f32 %v4400_v24, %v4408_v23  ;;  %v4257_v23 = vand.u32 2147483647, %v4256_v37 }
 0x88a   : > { %4384 = vrot.lane.b32.xlu1 %v4382_v44, %s5036_s26 }
 0x88b   : > { %v4308_v0 = vpop.permute.xlu1 %4307 }
 0x88c   : > { %v4321_v11 = vsub.f32 %v4304_v56, %v4308_v0  ;;  %vm4310_vm5 = vcmp.gt.f32.partialorder %v4304_v56, %v4308_v0 }
 0x88e   : > { %4412 = vrot.lane.b32.xlu1 %v4410_v39, %s5036_s26 }
 0x88f   : > { %v4343_v33 = vpop.permute.xlu1 %4342 }
 0x890   : > { %v4345_v14 = vsub.f32 %v4339_v46, %v4343_v33  ;;  %v4629_v46 = vsel %vm4431_vm14, 1.0, %v8674_v21 }
 0x892   : > { %4268 = vrot.lane.b32.xlu1 %v4266_v26, %s5037_s28 }
 0x896   : > { %v4188_v52 = vpop.xlane.xlu0 %4187  ;;  %4284 = vrot.lane.b32.xlu1 %v4282_v5, %s5036_s26 }
 0x897   : > { %v4288_v53 = vsub.f32 %v4188_v52, %v7811_v6  ;;  %v4389_v50 = vsub.f32 %v4188_v52, %v7849_v59  ;;  %v4364_v62 = vmin.f32 %v4188_v52, %v7811_v6  ;;  %v4399_v25 = vmax.f32 %v4188_v52, %v7811_v6 }
 0x898   : > { %v4279_v52 = vsub.f32 %v7849_v59, %v7811_v6  ;;  %v4628_v59 = vsel %vm4427_vm12, 1.0, %v8674_v21 }
 0x899   : > { %v4289_v3 = vand.u32 2147483647, %v4288_v53  ;;  %v4391_v36 = vmul.f32 %v4390_v51, %v4389_v50 }
 0x89a   : > { %4298 = vrot.lane.b32.xlu1 %v4296_v60, %s5038_s30  ;;  %v4280_v50 = vand.u32 2147483647, %v4279_v52 }
 0x89b   : > { %4291 = vrot.lane.b32.xlu0 %v4289_v3, %s5037_s28  ;;  %v4392_v7 = vadd.f32 %v4391_v36, %v8686_v42  ;;  %v4430_v42 = vmul.f32 %v4628_v59, %v7676_v8 }
 0x8a6   : > { %v4368_v35 = vpop.permute.xlu1 %4367 }
 0x8a7   : > { %v4381_v4 = vsub.f32 %v4364_v62, %v4368_v35  ;;  %vm4370_vm9 = vcmp.gt.f32.partialorder %v4364_v62, %v4368_v35 }
 0x8ba   : > { %4424 = vadd.xlane.f32.xlu0 %v4423_v28 }
 0x8ce   : > { %v4318_v12 = vpop.permute.xlu0 %4317  ;;  %v4325_v48 = vpop.permute.xlu1 %4324 }
 0x8cf   : > { %vm4319_vm6 = vcmp.ne.s32.totalorder %v4318_v12, 0  ;;  %v4327_v47 = vmul.f32 %v4325_v48, %v4321_v11  ;;  %v8687_v48 = vmov 2  }
 0x8d0   : > { %vm4320_vm7 = vmand %vm4310_vm5, %vm4319_vm6 }
 0x8d1   : > { %v4328_v22 = vsel %vm4320_vm7, %v4327_v47, 0.0  ;;  %v4630_v47 = vsel %vm4436_vm15, 1.0, %v8674_v21 }
 0x8d2   : > { %v4333_v29 = vsub.f32 %v4332_v45, %v4328_v22  ;;  %v4353_v38 = vpop.permute.xlu1 %4352  ;;  %v4403_v27 = vpop.permute.xlu0 %4402 }
 0x8d3   : > { %v4355_v41 = vmul.f32 %v4353_v38, %v4345_v14  ;;  %v4405_v19 = vsub.f32 %v4399_v25, %v4403_v27  ;;  %v4632_v38 = vsel %vm4456_vm3, 1.0, %v8674_v21 }
 0x8d4   : > { %v4334_v57 = vadd.f32 1e-07, %v4333_v29 }
 0x8d5   : > { %v4356_v1 = vsub.f32 %v4355_v41, %v4333_v29  ;;  %v4357_v9 = vadd.f32 1e-07, %v4355_v41 }
 0x8d6   : > { %4993 = vrcp.f32 %v4334_v57  ;;  %v4262_v17 = vpop.permute.xlu0 %4261 }
 0x8d7   : > { %4995 = vrcp.f32 %v4357_v9  ;;  %v4264_v39 = vadd.f32 %v4262_v17, %v4257_v23 }
 0x8da   : > { %v4276_v13 = vpop.permute.xlu0 %4275 }
 0x8e3   : > { %v4994_v54 = vpop.eup %4993 }
 0x8e4   : > { %v4996_v49 = vpop.eup %4995  ;;  %v4336_v15 = vmul.f32 %v4994_v54, %v4328_v22  ;;  %v4631_v22 = vsel %vm4446_vm0, 1.0, %v8674_v21 }
 0x8e5   : > { %v4359_v58 = vmul.f32 %v4996_v49, %v4356_v1 }
 0x8e7   : > { %v4360_v18 = vsub.f32 %v4336_v15, %v4359_v58  ;;  %v4634_v15 = vsel %vm4476_vm10, 1.0, %v8674_v21 }
 0x8e9   : > { %v4361_v11 = vsub.f32 1.0, %v4360_v18 }
 0x8f8   : > { %v4378_v40 = vpop.permute.xlu1 %4377 }
 0x8f9   : > { %vm4379_vm8 = vcmp.ne.s32.totalorder %v4378_v40, 0 }
 0x8fa   : > { %vm4380_vm11 = vmand %vm4370_vm9, %vm4379_vm8 }
 0x8fc   : > { %v4385_v31 = vpop.permute.xlu1 %4384 }
 0x8fd   : > { %v4387_v34 = vmul.f32 %v4385_v31, %v4381_v4 }
 0x8ff   : > { %v4388_v20 = vsel %vm4380_vm11, %v4387_v34, 0.0 }
 0x900   : > { %v4393_v30 = vsub.f32 %v4392_v7, %v4388_v20  ;;  %v4413_v44 = vpop.permute.xlu1 %4412 }
 0x901   : > { %v4415_v24 = vmul.f32 %v4413_v44, %v4405_v19 }
 0x902   : > { %v4394_v32 = vadd.f32 1e-07, %v4393_v30 }
 0x903   : > { %v4416_v26 = vsub.f32 %v4415_v24, %v4393_v30  ;;  %v4417_v43 = vadd.f32 1e-07, %v4415_v24 }
 0x904   : > { %4997 = vrcp.f32 %v4394_v32  ;;  %v4269_v5 = vpop.permute.xlu1 %4268 }
 0x905   : > { %4999 = vrcp.f32 %v4417_v43  ;;  %v4271_v10 = vadd.f32 %v4269_v5, %v4264_v39 }
 0x907   : > { %v4278_v51 = vadd.f32 %v4276_v13, %v4271_v10 }
 0x908   : > { %v4285_v53 = vpop.permute.xlu1 %4284 }
 0x909   : > { %4441 = vperm.xlu1 %4868, %v4278_v51   ;;  %v4287_v60 = vadd.f32 %v4285_v53, %v4280_v50 }
 0x90c   : > { %v4299_v2 = vpop.permute.xlu1 %4298 }
 0x90d   : > { %v4292_v3 = vpop.permute.xlu0 %4291  ;;  %4869 = vset.pattern.permute.xlu1 %v8652_v61 }
 0x90e   : > { %v4294_v36 = vadd.f32 %v4292_v3, %v4287_v60 }
 0x910   : > { %v4301_v28 = vadd.f32 %v4299_v2, %v4294_v36 }
 0x911   : > { %v4998_v0 = vpop.eup %4997 }
 0x912   : > { %v5000_v33 = vpop.eup %4999  ;;  %v4396_v35 = vmul.f32 %v4998_v0, %v4388_v20  ;;  %4461 = vperm.xlu1 %4869, %v4301_v28  }
 0x913   : > { %v4419_v56 = vmul.f32 %v5000_v33, %v4416_v26 }
 0x915   : > { %v4420_v12 = vsub.f32 %v4396_v35, %v4419_v56 }
 0x916   : > { %4870 = vset.pattern.permute.xlu1 %v8687_v48 }
 0x917   : > { %4451 = vperm.xlu1 %4870, %v4361_v11   ;;  %v4421_v6 = vsub.f32 1.0, %v4420_v12 }
 0x91b   : > { %4871 = vset.pattern.permute.xlu1 %v8685_v63  ;;  %v4434_v63 = vmul.f32 %v4629_v46, %v7673_v55  ;;  %v4633_v55 = vsel %vm4466_vm4, 1.0, %v8674_v21 }
 0x91c   : > { %4471 = vperm.xlu1 %4871, %v4421_v6  }
 0x91d   : > { %v4435_v29 = vadd.f32 %v4434_v63, %v4430_v42 }
 0x943   : > { %v4425_v57 = vpop.xlane.xlu0 %4424 }
 0x944   : > { %v4426_v49 = vmul.f32 8.0, %v4425_v57 }
 0x946   : > { %v4479_v62 = vmul.f32 %v4634_v15, %v4426_v49 }
 0x984   : > { %v4442_v61 = vpop.permute.xlu1 %4441 }
 0x985   : > { %v4444_v14 = vmul.f32 %v4630_v47, %v4442_v61 }
 0x987   : > { %v4445_v1 = vadd.f32 %v4444_v14, %v4435_v29 }
 0x98d   : > { %v4462_v45 = vpop.permute.xlu1 %4461 }
 0x98e   : > { %v4464_v9 = vmul.f32 %v4632_v38, %v4462_v45 }
 0x992   : > { %v4452_v41 = vpop.permute.xlu1 %4451 }
 0x993   : > { %v4454_v8 = vmul.f32 %v4631_v22, %v4452_v41 }
 0x995   : > { %v4455_v54 = vadd.f32 %v4454_v8, %v4445_v1 }
 0x997   : > { %v4465_v58 = vadd.f32 %v4464_v9, %v4455_v54  ;;  %v4472_v18 = vpop.permute.xlu1 %4471 }
 0x998   : > { %v4474_v40 = vmul.f32 %v4633_v55, %v4472_v18 }
 0x99a   : > { %v4475_v27 = vadd.f32 %v4474_v40, %v4465_v58 }
 0x99c   : > { %v4480_v4 = vadd.f32 %v4479_v62, %v4475_v27 }
 0x99e   : > { %4481 = vst.msk [vmem:[%s403_s25] sm:$0xff] %vm3574_vm13, %v4480_v4 }
 0x99f PF: > { %s18_s27 = sadd.s32 1, %s5025_s27  }
 0x9a0   : > { %p15_p5 = scmp.ge.s32.totalorder %s18_s27, 4  }
 0x9a2   :  { %17 = sbr.rel (!%p15_p5) target bundleno = 1 (0x1), region = 97 }

</bundles_post_ra>
